<compile_context>
chip_gen: v7x
topology: tpu7x:2x2x1
jax: 0.10.0
libtpu: 0.0.40
codegen_flags: <defaults>
</compile_context>

<pallas_src>
import functools
import numpy as np
import jax
import jax.numpy as jnp
from jax.experimental import pallas as pl
from jax.experimental.pallas import tpu as pltpu

LANE = 128     # lane width for padded input features / output block
SUB = 8        # sublane group: batch padded to this
OUT_PAD = 128  # out2loc's 2-wide output padded to a full lane vector inside the kernel


def _round_up(x, m):
    return ((x + m - 1) // m) * m


# ----------------------------------------------------------------------------
# Pallas kernel factory (T, Bp, H, E, GW, GW4, pred_len are static -> fully unrolled).
# ----------------------------------------------------------------------------
def make_enc_dec_kernel(T, Bp, H, E, GW, GW4, pred_len):
    def kernel(obs_ref,                                       # (T*Bp, LANE)  bf16
               we_ref, be_ref,                                # loc_embedding
               wih1_ref, whh1_ref, bic1_ref, bhn1_ref,        # gru_loc
               wih2_ref, whh2_ref, bic2_ref, bhn2_ref,        # gru_loc_2
               wihd1_ref, whhd1_ref, bicd1_ref, bhnd1_ref,    # gru_loc_dec
               wd2_ref, bd2_ref,                              # folded gru_loc_dec_2
               wf_ref, bf_ref,                                # fused out2loc∘loc_embedding_dec
               wo_ref, bo_ref,                                # out2loc (lane padded, f32)
               out_ref,                                       # (pred_len*Bp, OUT_PAD) f32
               gi1_scr, gi2_scr, enc1_scr, hd2_scr):          # VMEM scratch
        f32 = jnp.float32
        bf16 = jnp.bfloat16

        # ---- hoisted bias broadcasts (emitted once, reused by every unrolled step) ----
        bhn1_b = jnp.broadcast_to(bhn1_ref[...], (Bp, H))
        bhn2_b = jnp.broadcast_to(bhn2_ref[...], (Bp, H))
        bhnd1_b = jnp.broadcast_to(bhnd1_ref[...], (Bp, H))
        bicd1_b = jnp.broadcast_to(bicd1_ref[...], (Bp, GW))
        bd2_b = jnp.broadcast_to(bd2_ref[...], (Bp, GW4))
        bf_b = jnp.broadcast_to(bf_ref[...], (Bp, E))

        def gru_gates(gi, gh, h, bhn_b):
            # PyTorch GRU cell, gates packed at lanes [0:H|H:2H|2H:3H] = [r|z|n].
            # gi already contains bih + [bhh_r, bhh_z, 0]; bhn_b carries bhh_n
            # (must stay inside the r*(...) term).
            rz = jax.nn.sigmoid(gi[:, 0:2 * H] + gh[:, 0:2 * H])   # fused r/z sigmoid
            r = rz[:, 0:H]
            z = rz[:, H:2 * H]
            n = jnp.tanh(gi[:, 2 * H:3 * H] + r * (gh[:, 2 * H:3 * H] + bhn_b))
            return (1.0 - z) * n + z * h

        # ---- hoisted: embedding + gru_loc input projection (batched matmuls) ----
        emb_all = jnp.tanh(
            jnp.dot(obs_ref[...], we_ref[...], preferred_element_type=f32)
            + be_ref[...])                                                    # (T*Bp, E)
        gi1_scr[...] = (jnp.dot(emb_all.astype(bf16), wih1_ref[...],
                                preferred_element_type=f32) + bic1_ref[...])  # (T*Bp, GW)

        # ---- encoder layer 1 (gru_loc): only the h @ W_hh matmul stays serial ----
        h = jnp.zeros((Bp, H), f32)
        for t in range(T):
            gi = gi1_scr[pl.ds(t * Bp, Bp), :]
            gh = jnp.dot(h.astype(bf16), whh1_ref[...], preferred_element_type=f32)
            h = gru_gates(gi, gh, h, bhn1_b)
            enc1_scr[pl.ds(t * Bp, Bp), :] = h            # stage layer-1 outputs
        h1_final = h

        # ---- hoisted: gru_loc_2 input projection over all staged layer-1 outputs ----
        gi2_scr[...] = (jnp.dot(enc1_scr[...].astype(bf16), wih2_ref[...],
                                preferred_element_type=f32) + bic2_ref[...])  # (T*Bp, GW)

        # ---- encoder layer 2 (gru_loc_2); initial hidden = gru_loc's FINAL hidden ----
        h = h1_final
        h_tm2 = h  # snapshot of enc2 output at t == T-2 (requires T >= 2)
        for t in range(T):
            gi = gi2_scr[pl.ds(t * Bp, Bp), :]
            gh = jnp.dot(h.astype(bf16), whh2_ref[...], preferred_element_type=f32)
            h = gru_gates(gi, gh, h, bhn2_b)
            if t == T - 2:                # trace-time pick, no runtime select
                h_tm2 = h
        h_dec = h

        # ---- autoregressive decoder ----
        # fb carries the hidden whose out2loc output feeds loc_embedding_dec next step;
        # step 0 uses enc2's step-(T-2) hidden (== out2loc(enc_out)[:, -2:-1, :]).
        fb = h_tm2
        h = h_dec
        for s in range(pred_len):
            # fused out2loc -> loc_embedding_dec feedback (single affine map)
            emb = jnp.tanh(jnp.dot(fb.astype(bf16), wf_ref[...],
                                   preferred_element_type=f32) + bf_b)
            gi = (jnp.dot(emb.astype(bf16), wihd1_ref[...],
                          preferred_element_type=f32) + bicd1_b)
            gh = jnp.dot(h.astype(bf16), whhd1_ref[...], preferred_element_type=f32)
            hd1 = gru_gates(gi, gh, h, bhnd1_b)
            # gru_loc_dec_2 with x == h == hd1: single folded projection,
            # blocks packed at lanes [r | z | n_ih | n_hh].
            g = (jnp.dot(hd1.astype(bf16), wd2_ref[...],
                         preferred_element_type=f32) + bd2_b)
            rz2 = jax.nn.sigmoid(g[:, 0:2 * H])
            n2 = jnp.tanh(g[:, 2 * H:3 * H] + rz2[:, 0:H] * g[:, 3 * H:4 * H])
            hd2 = (1.0 - rz2[:, H:2 * H]) * n2 + rz2[:, H:2 * H] * hd1
            hd2_scr[pl.ds(s * Bp, Bp), :] = hd2           # stage; out2loc done after loop
            fb = hd2
            h = hd2

        # ---- out2loc hoisted out of the loop: one matmul + one lane-dense store ----
        out_ref[...] = (jnp.dot(hd2_scr[...], wo_ref[...],
                                preferred_element_type=f32) + bo_ref[...])

    return kernel


# ----------------------------------------------------------------------------
# One-time parameter packing (model-load time, OUTSIDE the jitted forward):
# gate-pack to a single lane block, fold biases, fuse decoder feedback, fold dec2,
# cast matmul weights to bf16 (padded columns stay exactly zero).
# ----------------------------------------------------------------------------
def pack_params(params):
    H = params["wo"].shape[0]
    E = params["we"].shape[1]
    GW = _round_up(3 * H, LANE)    # packed 3-gate block width (128 for H=32)
    GW4 = _round_up(4 * H, LANE)   # packed 4-block width for folded dec2

    def pack_gru(g):
        in_dim = g["wih"].shape[0]
        wih_p = jnp.zeros((in_dim, GW), jnp.float32).at[:, :3 * H].set(g["wih"])
        whh_p = jnp.zeros((H, GW), jnp.float32).at[:, :3 * H].set(g["whh"])
        # bih + [bhh_r, bhh_z, 0]: r/z recurrent biases fold into the hoisted input term.
        bic = jnp.concatenate(
            [g["bih"][:, :2 * H] + g["bhh"][:, :2 * H], g["bih"][:, 2 * H:]], axis=1)
        bic_p = jnp.zeros((1, GW), jnp.float32).at[:, :3 * H].set(bic)
        bhn = g["bhh"][:, 2 * H:3 * H].astype(jnp.float32)      # (1, H)
        return (wih_p.astype(jnp.bfloat16), whh_p.astype(jnp.bfloat16), bic_p, bhn)

    p = {}
    p["we"] = (jnp.zeros((LANE, E), jnp.float32)
               .at[:params["we"].shape[0], :].set(params["we"]).astype(jnp.bfloat16))
    p["be"] = params["be"].astype(jnp.float32)

    p["enc1"] = pack_gru(params["enc1"])   # gru_loc       (input dim E)
    p["enc2"] = pack_gru(params["enc2"])   # gru_loc_2     (input dim H)
    p["dec1"] = pack_gru(params["dec1"])   # gru_loc_dec   (input dim E)

    # gru_loc_dec_2 fold (x == h): blocks [Wih_r+Whh_r | Wih_z+Whh_z | Wih_n | Whh_n]
    wih, whh = params["dec2"]["wih"], params["dec2"]["whh"]
    bih, bhh = params["dec2"]["bih"], params["dec2"]["bhh"]
    wd2 = jnp.zeros((H, GW4), jnp.float32)
    wd2 = wd2.at[:, 0 * H:1 * H].set(wih[:, 0:H] + whh[:, 0:H])
    wd2 = wd2.at[:, 1 * H:2 * H].set(wih[:, H:2 * H] + whh[:, H:2 * H])
    wd2 = wd2.at[:, 2 * H:3 * H].set(wih[:, 2 * H:3 * H])
    wd2 = wd2.at[:, 3 * H:4 * H].set(whh[:, 2 * H:3 * H])
    bd2 = jnp.zeros((1, GW4), jnp.float32)
    bd2 = bd2.at[:, 0 * H:1 * H].set(bih[:, 0:H] + bhh[:, 0:H])
    bd2 = bd2.at[:, 1 * H:2 * H].set(bih[:, H:2 * H] + bhh[:, H:2 * H])
    bd2 = bd2.at[:, 2 * H:3 * H].set(bih[:, 2 * H:3 * H])
    bd2 = bd2.at[:, 3 * H:4 * H].set(bhh[:, 2 * H:3 * H])
    p["wd2"] = wd2.astype(jnp.bfloat16)
    p["bd2"] = bd2

    # fused out2loc -> loc_embedding_dec feedback map (affine ∘ affine), folded in f32
    wf = params["wo"] @ params["wd"]                    # (H, E)
    bf = params["bo"] @ params["wd"] + params["bd"]     # (1, E)
    p["wf"] = wf.astype(jnp.bfloat16)
    p["bf"] = bf.astype(jnp.float32)

    # final out2loc stays f32 (single post-loop matmul, off the critical chain)
    p["wo"] = jnp.zeros((H, OUT_PAD), jnp.float32).at[:, :2].set(params["wo"])
    p["bo"] = jnp.zeros((1, OUT_PAD), jnp.float32).at[:, :2].set(params["bo"])
    return p


# ----------------------------------------------------------------------------
# Jitted forward: obs layout transform + pallas_call + output slice only.
# ----------------------------------------------------------------------------
@functools.partial(jax.jit, static_argnames=("pred_len",))
def baseline_enc_dec_forward(obs, packed, *, pred_len):
    B, T, in_dim = obs.shape
    assert T >= 2, "out2loc(enc_out)[:, -2:-1, :] requires at least 2 observed steps"

    whh1 = packed["enc1"][1]
    H = whh1.shape[0]
    GW = whh1.shape[1]
    GW4 = packed["wd2"].shape[1]
    E = packed["we"].shape[1]
    Bp = _round_up(B, SUB)

    # obs: (B, T, 2) -> time-major, batch/feature zero-padded, flattened to (T*Bp, LANE)
    obs_tbm = jnp.transpose(obs.astype(jnp.float32), (1, 0, 2))
    obs_p = jnp.zeros((T, Bp, LANE), jnp.float32).at[:, :B, :in_dim].set(obs_tbm)
    obs_p = obs_p.reshape(T * Bp, LANE).astype(jnp.bfloat16)

    args = [obs_p, packed["we"], packed["be"],
            *packed["enc1"], *packed["enc2"], *packed["dec1"],
            packed["wd2"], packed["bd2"], packed["wf"], packed["bf"],
            packed["wo"], packed["bo"]]

    out = pl.pallas_call(
        make_enc_dec_kernel(T, Bp, H, E, GW, GW4, pred_len),
        out_shape=jax.ShapeDtypeStruct((pred_len * Bp, OUT_PAD), jnp.float32),
        in_specs=[pl.BlockSpec(memory_space=pltpu.MemorySpace.VMEM)] * len(args),
        out_specs=pl.BlockSpec(memory_space=pltpu.MemorySpace.VMEM),
        scratch_shapes=[
            pltpu.VMEM((T * Bp, GW), jnp.float32),         # staged gi for encoder layer 1
            pltpu.VMEM((T * Bp, GW), jnp.float32),         # staged gi for encoder layer 2
            pltpu.VMEM((T * Bp, H), jnp.float32),          # layer-1 encoder outputs
            pltpu.VMEM((pred_len * Bp, H), jnp.float32),   # decoder hd2 staging
        ],
    )(*args)

    # back to PyTorch convention: (B, pred_len, 2)
    out = out.reshape(pred_len, Bp, OUT_PAD)[:, :B, :2]
    return jnp.transpose(out, (1, 0, 2))


# ----------------------------------------------------------------------------
# Deterministic parameter init (mirrors the shapes in the nn.Module __init__).
# Weights are stored pre-transposed (x @ W) with gate order [r, z, n].
# ----------------------------------------------------------------------------
def _uniform(key, shape, fan_in):
    bound = 1.0 / float(np.sqrt(fan_in))
    return jax.random.uniform(key, shape, jnp.float32, minval=-bound, maxval=bound)


def init_params(key, embedding_dim, hidden_dim):
    E, H = embedding_dim, hidden_dim
    keys = iter(jax.random.split(key, 64))
    p = {}
    p["we"] = _uniform(next(keys), (2, E), 2)      # loc_embedding.weight^T
    p["be"] = _uniform(next(keys), (1, E), 2)
    p["wd"] = _uniform(next(keys), (2, E), 2)      # loc_embedding_dec.weight^T
    p["bd"] = _uniform(next(keys), (1, E), 2)

    def gru(in_dim):
        return {
            "wih": _uniform(next(keys), (in_dim, 3 * H), H),  # weight_ih_l0^T, gates [r,z,n]
            "whh": _uniform(next(keys), (H, 3 * H), H),       # weight_hh_l0^T
            "bih": _uniform(next(keys), (1, 3 * H), H),
            "bhh": _uniform(next(keys), (1, 3 * H), H),
        }

    p["enc1"] = gru(E)   # gru_loc
    p["enc2"] = gru(H)   # gru_loc_2
    p["dec1"] = gru(E)   # gru_loc_dec
    p["dec2"] = gru(H)   # gru_loc_dec_2
    p["wo"] = _uniform(next(keys), (H, 2), H)      # out2loc.weight^T
    p["bo"] = _uniform(next(keys), (1, 2), H)
    return p


# ----------------------------------------------------------------------------
# Pure-JAX f32 reference (mirrors the PyTorch forward) for a sanity check.
# ----------------------------------------------------------------------------
def _gru_cell_ref(x, h, g):
    H = h.shape[-1]
    gi = x @ g["wih"] + g["bih"]
    gh = h @ g["whh"] + g["bhh"]
    r = jax.nn.sigmoid(gi[:, :H] + gh[:, :H])
    z = jax.nn.sigmoid(gi[:, H:2 * H] + gh[:, H:2 * H])
    n = jnp.tanh(gi[:, 2 * H:] + r * gh[:, 2 * H:])
    return (1.0 - z) * n + z * h


def reference_forward(obs, p, pred_len):
    B, T, _ = obs.shape
    H = p["wo"].shape[0]
    emb = jnp.tanh(obs @ p["we"] + p["be"])
    h = jnp.zeros((B, H), jnp.float32)
    outs1 = []
    for t in range(T):
        h = _gru_cell_ref(emb[:, t, :], h, p["enc1"])
        outs1.append(h)
    h2 = h
    outs2 = []
    for t in range(T):
        h2 = _gru_cell_ref(outs1[t], h2, p["enc2"])
        outs2.append(h2)
    last = outs2[T - 2] @ p["wo"] + p["bo"]
    preds = []
    for _ in range(pred_len):
        embd = jnp.tanh(last @ p["wd"] + p["bd"])
        h1d = _gru_cell_ref(embd, h2, p["dec1"])
        h2d = _gru_cell_ref(h1d, h1d, p["dec2"])
        last = h2d @ p["wo"] + p["bo"]
        h2 = h2d
        preds.append(last)
    return jnp.stack(preds, axis=1)


if __name__ == "__main__":
    B, T = 2, 8                  # batch, observed sequence length
    E, H = 32, 32                # embedding_dim, hidden_dim
    PRED_LEN = 4                 # pred_len

    key = jax.random.PRNGKey(0)
    k_obs, k_par = jax.random.split(key)
    obs = jax.random.normal(k_obs, (B, T, 2), jnp.float32)   # trajectory (x, y) inputs
    params = init_params(k_par, E, H)

    # One-time (model-load) packing: kept outside the jitted per-call forward.
    packed = pack_params(params)

    out = baseline_enc_dec_forward(obs, packed, pred_len=PRED_LEN)
    out = jax.block_until_ready(out)

    ref = reference_forward(obs, params, PRED_LEN)
    assert out.shape == (B, PRED_LEN, 2), out.shape
    assert np.isfinite(np.asarray(out)).all()
    # Tolerance accounts for bf16 matmul operands in the kernel (f32 accumulation,
    # f32 gate math); the f32-only variant matched the reference to ~1e-6.
    err = float(jnp.max(jnp.abs(out - ref)))
    assert err < 5e-2, f"kernel/reference mismatch: max abs err = {err}"

    print("KERNEL_OK")
</pallas_src>

<mosaic_0001>
module attributes {stable_mosaic.version = 11 : i64} {
  func.func @kernel(%arg0: memref<64x128xbf16, #tpu.memory_space<vmem>>, %arg1: memref<128x32xbf16, #tpu.memory_space<vmem>>, %arg2: memref<1x32xf32, #tpu.memory_space<vmem>>, %arg3: memref<32x128xbf16, #tpu.memory_space<vmem>>, %arg4: memref<32x128xbf16, #tpu.memory_space<vmem>>, %arg5: memref<1x128xf32, #tpu.memory_space<vmem>>, %arg6: memref<1x32xf32, #tpu.memory_space<vmem>>, %arg7: memref<32x128xbf16, #tpu.memory_space<vmem>>, %arg8: memref<32x128xbf16, #tpu.memory_space<vmem>>, %arg9: memref<1x128xf32, #tpu.memory_space<vmem>>, %arg10: memref<1x32xf32, #tpu.memory_space<vmem>>, %arg11: memref<32x128xbf16, #tpu.memory_space<vmem>>, %arg12: memref<32x128xbf16, #tpu.memory_space<vmem>>, %arg13: memref<1x128xf32, #tpu.memory_space<vmem>>, %arg14: memref<1x32xf32, #tpu.memory_space<vmem>>, %arg15: memref<32x128xbf16, #tpu.memory_space<vmem>>, %arg16: memref<1x128xf32, #tpu.memory_space<vmem>>, %arg17: memref<32x32xbf16, #tpu.memory_space<vmem>>, %arg18: memref<1x32xf32, #tpu.memory_space<vmem>>, %arg19: memref<32x128xf32, #tpu.memory_space<vmem>>, %arg20: memref<1x128xf32, #tpu.memory_space<vmem>>, %arg21: memref<32x128xf32, #tpu.memory_space<vmem>>, %arg22: memref<64x128xf32, #tpu.memory_space<vmem>>, %arg23: memref<64x128xf32, #tpu.memory_space<vmem>>, %arg24: memref<64x32xf32, #tpu.memory_space<vmem>>, %arg25: memref<32x32xf32, #tpu.memory_space<vmem>>) attributes {dimension_semantics = [], scalar_prefetch = 0 : i64, scratch_operands = 4 : i64, tpu.core_type = #tpu.core_type<tc>} {
    %c0 = arith.constant 0 : index
    %c0_0 = arith.constant 0 : index
    %0 = vector.load %arg6[%c0, %c0_0] : memref<1x32xf32, #tpu.memory_space<vmem>>, vector<1x32xf32>
    %1 = vector.shape_cast %0 : vector<1x32xf32> to vector<1x32xf32>
    %2 = vector.broadcast %1 : vector<1x32xf32> to vector<8x32xf32>
    %c0_1 = arith.constant 0 : index
    %c0_2 = arith.constant 0 : index
    %3 = vector.load %arg10[%c0_1, %c0_2] : memref<1x32xf32, #tpu.memory_space<vmem>>, vector<1x32xf32>
    %4 = vector.shape_cast %3 : vector<1x32xf32> to vector<1x32xf32>
    %5 = vector.broadcast %4 : vector<1x32xf32> to vector<8x32xf32>
    %c0_3 = arith.constant 0 : index
    %c0_4 = arith.constant 0 : index
    %6 = vector.load %arg14[%c0_3, %c0_4] : memref<1x32xf32, #tpu.memory_space<vmem>>, vector<1x32xf32>
    %7 = vector.shape_cast %6 : vector<1x32xf32> to vector<1x32xf32>
    %8 = vector.broadcast %7 : vector<1x32xf32> to vector<8x32xf32>
    %c0_5 = arith.constant 0 : index
    %c0_6 = arith.constant 0 : index
    %9 = vector.load %arg13[%c0_5, %c0_6] : memref<1x128xf32, #tpu.memory_space<vmem>>, vector<1x128xf32>
    %10 = vector.shape_cast %9 : vector<1x128xf32> to vector<1x128xf32>
    %11 = vector.broadcast %10 : vector<1x128xf32> to vector<8x128xf32>
    %c0_7 = arith.constant 0 : index
    %c0_8 = arith.constant 0 : index
    %12 = vector.load %arg16[%c0_7, %c0_8] : memref<1x128xf32, #tpu.memory_space<vmem>>, vector<1x128xf32>
    %13 = vector.shape_cast %12 : vector<1x128xf32> to vector<1x128xf32>
    %14 = vector.broadcast %13 : vector<1x128xf32> to vector<8x128xf32>
    %c0_9 = arith.constant 0 : index
    %c0_10 = arith.constant 0 : index
    %15 = vector.load %arg18[%c0_9, %c0_10] : memref<1x32xf32, #tpu.memory_space<vmem>>, vector<1x32xf32>
    %16 = vector.shape_cast %15 : vector<1x32xf32> to vector<1x32xf32>
    %17 = vector.broadcast %16 : vector<1x32xf32> to vector<8x32xf32>
    %c0_11 = arith.constant 0 : index
    %c0_12 = arith.constant 0 : index
    %18 = vector.load %arg0[%c0_11, %c0_12] : memref<64x128xbf16, #tpu.memory_space<vmem>>, vector<64x128xbf16>
    %c0_13 = arith.constant 0 : index
    %c0_14 = arith.constant 0 : index
    %19 = vector.load %arg1[%c0_13, %c0_14] : memref<128x32xbf16, #tpu.memory_space<vmem>>, vector<128x32xbf16>
    %cst = arith.constant dense<0.000000e+00> : vector<64x32xf32>
    %20 = tpu.matmul %18, %19, %cst {dimension_numbers = #tpu.dot_dimension_numbers<[1], [0], [0], [1], [0, 0, 1, 1], [], []>} : vector<64x128xbf16>, vector<128x32xbf16>, vector<64x32xf32> -> vector<64x32xf32>
    %c0_15 = arith.constant 0 : index
    %c0_16 = arith.constant 0 : index
    %21 = vector.load %arg2[%c0_15, %c0_16] : memref<1x32xf32, #tpu.memory_space<vmem>>, vector<1x32xf32>
    %22 = vector.broadcast %21 : vector<1x32xf32> to vector<64x32xf32>
    %23 = arith.addf %20, %22 : vector<64x32xf32>
    %24 = math.tanh %23 : vector<64x32xf32>
    %25 = arith.truncf %24 : vector<64x32xf32> to vector<64x32xbf16>
    %c0_17 = arith.constant 0 : index
    %c0_18 = arith.constant 0 : index
    %26 = vector.load %arg3[%c0_17, %c0_18] : memref<32x128xbf16, #tpu.memory_space<vmem>>, vector<32x128xbf16>
    %cst_19 = arith.constant dense<0.000000e+00> : vector<64x128xf32>
    %27 = tpu.matmul %25, %26, %cst_19 {dimension_numbers = #tpu.dot_dimension_numbers<[1], [0], [0], [1], [0, 0, 1, 1], [], []>} : vector<64x32xbf16>, vector<32x128xbf16>, vector<64x128xf32> -> vector<64x128xf32>
    %c0_20 = arith.constant 0 : index
    %c0_21 = arith.constant 0 : index
    %28 = vector.load %arg5[%c0_20, %c0_21] : memref<1x128xf32, #tpu.memory_space<vmem>>, vector<1x128xf32>
    %29 = vector.broadcast %28 : vector<1x128xf32> to vector<64x128xf32>
    %30 = arith.addf %27, %29 : vector<64x128xf32>
    %c0_22 = arith.constant 0 : index
    %c0_23 = arith.constant 0 : index
    %31 = vector.load %arg22[%c0_22, %c0_23] : memref<64x128xf32, #tpu.memory_space<vmem>>, vector<64x128xf32>
    tpu.vector_store %arg22[%c0_22, %c0_23], %30 {strides = array<i32>} : memref<64x128xf32, #tpu.memory_space<vmem>>, vector<64x128xf32>,
    %cst_24 = arith.constant 0.000000e+00 : f32
    %32 = vector.broadcast %cst_24 : f32 to vector<8x32xf32>
    %c0_25 = arith.constant 0 : index
    %c0_26 = arith.constant 0 : index
    %33 = vector.load %arg22[%c0_25, %c0_26] : memref<64x128xf32, #tpu.memory_space<vmem>>, vector<8x128xf32>
    %34 = arith.truncf %32 : vector<8x32xf32> to vector<8x32xbf16>
    %c0_27 = arith.constant 0 : index
    %c0_28 = arith.constant 0 : index
    %35 = vector.load %arg4[%c0_27, %c0_28] : memref<32x128xbf16, #tpu.memory_space<vmem>>, vector<32x128xbf16>
    %cst_29 = arith.constant dense<0.000000e+00> : vector<8x128xf32>
    %36 = tpu.matmul %34, %35, %cst_29 {dimension_numbers = #tpu.dot_dimension_numbers<[1], [0], [0], [1], [0, 0, 1, 1], [], []>} : vector<8x32xbf16>, vector<32x128xbf16>, vector<8x128xf32> -> vector<8x128xf32>
    %37 = vector.extract_strided_slice %33 {offsets = [0, 0], sizes = [8, 64], strides = [1, 1]} : vector<8x128xf32> to vector<8x64xf32>
    %38 = vector.extract_strided_slice %36 {offsets = [0, 0], sizes = [8, 64], strides = [1, 1]} : vector<8x128xf32> to vector<8x64xf32>
    %39 = arith.addf %37, %38 : vector<8x64xf32>
    %40 = arith.negf %39 : vector<8x64xf32>
    %41 = math.exp %40 : vector<8x64xf32>
    %cst_30 = arith.constant 1.000000e+00 : f32
    %42 = vector.broadcast %cst_30 : f32 to vector<8x64xf32>
    %43 = arith.addf %42, %41 : vector<8x64xf32>
    %44 = arith.divf %42, %43 : vector<8x64xf32>
    %45 = vector.extract_strided_slice %44 {offsets = [0, 0], sizes = [8, 32], strides = [1, 1]} : vector<8x64xf32> to vector<8x32xf32>
    %46 = vector.extract_strided_slice %44 {offsets = [0, 32], sizes = [8, 32], strides = [1, 1]} : vector<8x64xf32> to vector<8x32xf32>
    %47 = vector.extract_strided_slice %33 {offsets = [0, 64], sizes = [8, 32], strides = [1, 1]} : vector<8x128xf32> to vector<8x32xf32>
    %48 = vector.extract_strided_slice %36 {offsets = [0, 64], sizes = [8, 32], strides = [1, 1]} : vector<8x128xf32> to vector<8x32xf32>
    %49 = arith.addf %48, %2 : vector<8x32xf32>
    %50 = arith.mulf %45, %49 : vector<8x32xf32>
    %51 = arith.addf %47, %50 : vector<8x32xf32>
    %52 = math.tanh %51 : vector<8x32xf32>
    %cst_31 = arith.constant 1.000000e+00 : f32
    %53 = vector.broadcast %cst_31 : f32 to vector<8x32xf32>
    %54 = arith.subf %53, %46 : vector<8x32xf32>
    %55 = arith.mulf %54, %52 : vector<8x32xf32>
    %56 = arith.mulf %46, %32 : vector<8x32xf32>
    %57 = arith.addf %55, %56 : vector<8x32xf32>
    %c0_32 = arith.constant 0 : index
    %c0_33 = arith.constant 0 : index
    %58 = vector.load %arg24[%c0_32, %c0_33] : memref<64x32xf32, #tpu.memory_space<vmem>>, vector<8x32xf32>
    tpu.vector_store %arg24[%c0_32, %c0_33], %57 {strides = array<i32>} : memref<64x32xf32, #tpu.memory_space<vmem>>, vector<8x32xf32>,
    %c8 = arith.constant 8 : index
    %c0_34 = arith.constant 0 : index
    %59 = vector.load %arg22[%c8, %c0_34] : memref<64x128xf32, #tpu.memory_space<vmem>>, vector<8x128xf32>
    %60 = arith.truncf %57 : vector<8x32xf32> to vector<8x32xbf16>
    %c0_35 = arith.constant 0 : index
    %c0_36 = arith.constant 0 : index
    %61 = vector.load %arg4[%c0_35, %c0_36] : memref<32x128xbf16, #tpu.memory_space<vmem>>, vector<32x128xbf16>
    %cst_37 = arith.constant dense<0.000000e+00> : vector<8x128xf32>
    %62 = tpu.matmul %60, %61, %cst_37 {dimension_numbers = #tpu.dot_dimension_numbers<[1], [0], [0], [1], [0, 0, 1, 1], [], []>} : vector<8x32xbf16>, vector<32x128xbf16>, vector<8x128xf32> -> vector<8x128xf32>
    %63 = vector.extract_strided_slice %59 {offsets = [0, 0], sizes = [8, 64], strides = [1, 1]} : vector<8x128xf32> to vector<8x64xf32>
    %64 = vector.extract_strided_slice %62 {offsets = [0, 0], sizes = [8, 64], strides = [1, 1]} : vector<8x128xf32> to vector<8x64xf32>
    %65 = arith.addf %63, %64 : vector<8x64xf32>
    %66 = arith.negf %65 : vector<8x64xf32>
    %67 = math.exp %66 : vector<8x64xf32>
    %cst_38 = arith.constant 1.000000e+00 : f32
    %68 = vector.broadcast %cst_38 : f32 to vector<8x64xf32>
    %69 = arith.addf %68, %67 : vector<8x64xf32>
    %70 = arith.divf %68, %69 : vector<8x64xf32>
    %71 = vector.extract_strided_slice %70 {offsets = [0, 0], sizes = [8, 32], strides = [1, 1]} : vector<8x64xf32> to vector<8x32xf32>
    %72 = vector.extract_strided_slice %70 {offsets = [0, 32], sizes = [8, 32], strides = [1, 1]} : vector<8x64xf32> to vector<8x32xf32>
    %73 = vector.extract_strided_slice %59 {offsets = [0, 64], sizes = [8, 32], strides = [1, 1]} : vector<8x128xf32> to vector<8x32xf32>
    %74 = vector.extract_strided_slice %62 {offsets = [0, 64], sizes = [8, 32], strides = [1, 1]} : vector<8x128xf32> to vector<8x32xf32>
    %75 = arith.addf %74, %2 : vector<8x32xf32>
    %76 = arith.mulf %71, %75 : vector<8x32xf32>
    %77 = arith.addf %73, %76 : vector<8x32xf32>
    %78 = math.tanh %77 : vector<8x32xf32>
    %cst_39 = arith.constant 1.000000e+00 : f32
    %79 = vector.broadcast %cst_39 : f32 to vector<8x32xf32>
    %80 = arith.subf %79, %72 : vector<8x32xf32>
    %81 = arith.mulf %80, %78 : vector<8x32xf32>
    %82 = arith.mulf %72, %57 : vector<8x32xf32>
    %83 = arith.addf %81, %82 : vector<8x32xf32>
    %c8_40 = arith.constant 8 : index
    %c0_41 = arith.constant 0 : index
    %84 = vector.load %arg24[%c8_40, %c0_41] : memref<64x32xf32, #tpu.memory_space<vmem>>, vector<8x32xf32>
    tpu.vector_store %arg24[%c8_40, %c0_41], %83 {strides = array<i32>} : memref<64x32xf32, #tpu.memory_space<vmem>>, vector<8x32xf32>,
    %c16 = arith.constant 16 : index
    %c0_42 = arith.constant 0 : index
    %85 = vector.load %arg22[%c16, %c0_42] : memref<64x128xf32, #tpu.memory_space<vmem>>, vector<8x128xf32>
    %86 = arith.truncf %83 : vector<8x32xf32> to vector<8x32xbf16>
    %c0_43 = arith.constant 0 : index
    %c0_44 = arith.constant 0 : index
    %87 = vector.load %arg4[%c0_43, %c0_44] : memref<32x128xbf16, #tpu.memory_space<vmem>>, vector<32x128xbf16>
    %cst_45 = arith.constant dense<0.000000e+00> : vector<8x128xf32>
    %88 = tpu.matmul %86, %87, %cst_45 {dimension_numbers = #tpu.dot_dimension_numbers<[1], [0], [0], [1], [0, 0, 1, 1], [], []>} : vector<8x32xbf16>, vector<32x128xbf16>, vector<8x128xf32> -> vector<8x128xf32>
    %89 = vector.extract_strided_slice %85 {offsets = [0, 0], sizes = [8, 64], strides = [1, 1]} : vector<8x128xf32> to vector<8x64xf32>
    %90 = vector.extract_strided_slice %88 {offsets = [0, 0], sizes = [8, 64], strides = [1, 1]} : vector<8x128xf32> to vector<8x64xf32>
    %91 = arith.addf %89, %90 : vector<8x64xf32>
    %92 = arith.negf %91 : vector<8x64xf32>
    %93 = math.exp %92 : vector<8x64xf32>
    %cst_46 = arith.constant 1.000000e+00 : f32
    %94 = vector.broadcast %cst_46 : f32 to vector<8x64xf32>
    %95 = arith.addf %94, %93 : vector<8x64xf32>
    %96 = arith.divf %94, %95 : vector<8x64xf32>
    %97 = vector.extract_strided_slice %96 {offsets = [0, 0], sizes = [8, 32], strides = [1, 1]} : vector<8x64xf32> to vector<8x32xf32>
    %98 = vector.extract_strided_slice %96 {offsets = [0, 32], sizes = [8, 32], strides = [1, 1]} : vector<8x64xf32> to vector<8x32xf32>
    %99 = vector.extract_strided_slice %85 {offsets = [0, 64], sizes = [8, 32], strides = [1, 1]} : vector<8x128xf32> to vector<8x32xf32>
    %100 = vector.extract_strided_slice %88 {offsets = [0, 64], sizes = [8, 32], strides = [1, 1]} : vector<8x128xf32> to vector<8x32xf32>
    %101 = arith.addf %100, %2 : vector<8x32xf32>
    %102 = arith.mulf %97, %101 : vector<8x32xf32>
    %103 = arith.addf %99, %102 : vector<8x32xf32>
    %104 = math.tanh %103 : vector<8x32xf32>
    %cst_47 = arith.constant 1.000000e+00 : f32
    %105 = vector.broadcast %cst_47 : f32 to vector<8x32xf32>
    %106 = arith.subf %105, %98 : vector<8x32xf32>
    %107 = arith.mulf %106, %104 : vector<8x32xf32>
    %108 = arith.mulf %98, %83 : vector<8x32xf32>
    %109 = arith.addf %107, %108 : vector<8x32xf32>
    %c16_48 = arith.constant 16 : index
    %c0_49 = arith.constant 0 : index
    %110 = vector.load %arg24[%c16_48, %c0_49] : memref<64x32xf32, #tpu.memory_space<vmem>>, vector<8x32xf32>
    tpu.vector_store %arg24[%c16_48, %c0_49], %109 {strides = array<i32>} : memref<64x32xf32, #tpu.memory_space<vmem>>, vector<8x32xf32>,
    %c24 = arith.constant 24 : index
    %c0_50 = arith.constant 0 : index
    %111 = vector.load %arg22[%c24, %c0_50] : memref<64x128xf32, #tpu.memory_space<vmem>>, vector<8x128xf32>
    %112 = arith.truncf %109 : vector<8x32xf32> to vector<8x32xbf16>
    %c0_51 = arith.constant 0 : index
    %c0_52 = arith.constant 0 : index
    %113 = vector.load %arg4[%c0_51, %c0_52] : memref<32x128xbf16, #tpu.memory_space<vmem>>, vector<32x128xbf16>
    %cst_53 = arith.constant dense<0.000000e+00> : vector<8x128xf32>
    %114 = tpu.matmul %112, %113, %cst_53 {dimension_numbers = #tpu.dot_dimension_numbers<[1], [0], [0], [1], [0, 0, 1, 1], [], []>} : vector<8x32xbf16>, vector<32x128xbf16>, vector<8x128xf32> -> vector<8x128xf32>
    %115 = vector.extract_strided_slice %111 {offsets = [0, 0], sizes = [8, 64], strides = [1, 1]} : vector<8x128xf32> to vector<8x64xf32>
    %116 = vector.extract_strided_slice %114 {offsets = [0, 0], sizes = [8, 64], strides = [1, 1]} : vector<8x128xf32> to vector<8x64xf32>
    %117 = arith.addf %115, %116 : vector<8x64xf32>
    %118 = arith.negf %117 : vector<8x64xf32>
    %119 = math.exp %118 : vector<8x64xf32>
    %cst_54 = arith.constant 1.000000e+00 : f32
    %120 = vector.broadcast %cst_54 : f32 to vector<8x64xf32>
    %121 = arith.addf %120, %119 : vector<8x64xf32>
    %122 = arith.divf %120, %121 : vector<8x64xf32>
    %123 = vector.extract_strided_slice %122 {offsets = [0, 0], sizes = [8, 32], strides = [1, 1]} : vector<8x64xf32> to vector<8x32xf32>
    %124 = vector.extract_strided_slice %122 {offsets = [0, 32], sizes = [8, 32], strides = [1, 1]} : vector<8x64xf32> to vector<8x32xf32>
    %125 = vector.extract_strided_slice %111 {offsets = [0, 64], sizes = [8, 32], strides = [1, 1]} : vector<8x128xf32> to vector<8x32xf32>
    %126 = vector.extract_strided_slice %114 {offsets = [0, 64], sizes = [8, 32], strides = [1, 1]} : vector<8x128xf32> to vector<8x32xf32>
    %127 = arith.addf %126, %2 : vector<8x32xf32>
    %128 = arith.mulf %123, %127 : vector<8x32xf32>
    %129 = arith.addf %125, %128 : vector<8x32xf32>
    %130 = math.tanh %129 : vector<8x32xf32>
    %cst_55 = arith.constant 1.000000e+00 : f32
    %131 = vector.broadcast %cst_55 : f32 to vector<8x32xf32>
    %132 = arith.subf %131, %124 : vector<8x32xf32>
    %133 = arith.mulf %132, %130 : vector<8x32xf32>
    %134 = arith.mulf %124, %109 : vector<8x32xf32>
    %135 = arith.addf %133, %134 : vector<8x32xf32>
    %c24_56 = arith.constant 24 : index
    %c0_57 = arith.constant 0 : index
    %136 = vector.load %arg24[%c24_56, %c0_57] : memref<64x32xf32, #tpu.memory_space<vmem>>, vector<8x32xf32>
    tpu.vector_store %arg24[%c24_56, %c0_57], %135 {strides = array<i32>} : memref<64x32xf32, #tpu.memory_space<vmem>>, vector<8x32xf32>,
    %c32 = arith.constant 32 : index
    %c0_58 = arith.constant 0 : index
    %137 = vector.load %arg22[%c32, %c0_58] : memref<64x128xf32, #tpu.memory_space<vmem>>, vector<8x128xf32>
    %138 = arith.truncf %135 : vector<8x32xf32> to vector<8x32xbf16>
    %c0_59 = arith.constant 0 : index
    %c0_60 = arith.constant 0 : index
    %139 = vector.load %arg4[%c0_59, %c0_60] : memref<32x128xbf16, #tpu.memory_space<vmem>>, vector<32x128xbf16>
    %cst_61 = arith.constant dense<0.000000e+00> : vector<8x128xf32>
    %140 = tpu.matmul %138, %139, %cst_61 {dimension_numbers = #tpu.dot_dimension_numbers<[1], [0], [0], [1], [0, 0, 1, 1], [], []>} : vector<8x32xbf16>, vector<32x128xbf16>, vector<8x128xf32> -> vector<8x128xf32>
    %141 = vector.extract_strided_slice %137 {offsets = [0, 0], sizes = [8, 64], strides = [1, 1]} : vector<8x128xf32> to vector<8x64xf32>
    %142 = vector.extract_strided_slice %140 {offsets = [0, 0], sizes = [8, 64], strides = [1, 1]} : vector<8x128xf32> to vector<8x64xf32>
    %143 = arith.addf %141, %142 : vector<8x64xf32>
    %144 = arith.negf %143 : vector<8x64xf32>
    %145 = math.exp %144 : vector<8x64xf32>
    %cst_62 = arith.constant 1.000000e+00 : f32
    %146 = vector.broadcast %cst_62 : f32 to vector<8x64xf32>
    %147 = arith.addf %146, %145 : vector<8x64xf32>
    %148 = arith.divf %146, %147 : vector<8x64xf32>
    %149 = vector.extract_strided_slice %148 {offsets = [0, 0], sizes = [8, 32], strides = [1, 1]} : vector<8x64xf32> to vector<8x32xf32>
    %150 = vector.extract_strided_slice %148 {offsets = [0, 32], sizes = [8, 32], strides = [1, 1]} : vector<8x64xf32> to vector<8x32xf32>
    %151 = vector.extract_strided_slice %137 {offsets = [0, 64], sizes = [8, 32], strides = [1, 1]} : vector<8x128xf32> to vector<8x32xf32>
    %152 = vector.extract_strided_slice %140 {offsets = [0, 64], sizes = [8, 32], strides = [1, 1]} : vector<8x128xf32> to vector<8x32xf32>
    %153 = arith.addf %152, %2 : vector<8x32xf32>
    %154 = arith.mulf %149, %153 : vector<8x32xf32>
    %155 = arith.addf %151, %154 : vector<8x32xf32>
    %156 = math.tanh %155 : vector<8x32xf32>
    %cst_63 = arith.constant 1.000000e+00 : f32
    %157 = vector.broadcast %cst_63 : f32 to vector<8x32xf32>
    %158 = arith.subf %157, %150 : vector<8x32xf32>
    %159 = arith.mulf %158, %156 : vector<8x32xf32>
    %160 = arith.mulf %150, %135 : vector<8x32xf32>
    %161 = arith.addf %159, %160 : vector<8x32xf32>
    %c32_64 = arith.constant 32 : index
    %c0_65 = arith.constant 0 : index
    %162 = vector.load %arg24[%c32_64, %c0_65] : memref<64x32xf32, #tpu.memory_space<vmem>>, vector<8x32xf32>
    tpu.vector_store %arg24[%c32_64, %c0_65], %161 {strides = array<i32>} : memref<64x32xf32, #tpu.memory_space<vmem>>, vector<8x32xf32>,
    %c40 = arith.constant 40 : index
    %c0_66 = arith.constant 0 : index
    %163 = vector.load %arg22[%c40, %c0_66] : memref<64x128xf32, #tpu.memory_space<vmem>>, vector<8x128xf32>
    %164 = arith.truncf %161 : vector<8x32xf32> to vector<8x32xbf16>
    %c0_67 = arith.constant 0 : index
    %c0_68 = arith.constant 0 : index
    %165 = vector.load %arg4[%c0_67, %c0_68] : memref<32x128xbf16, #tpu.memory_space<vmem>>, vector<32x128xbf16>
    %cst_69 = arith.constant dense<0.000000e+00> : vector<8x128xf32>
    %166 = tpu.matmul %164, %165, %cst_69 {dimension_numbers = #tpu.dot_dimension_numbers<[1], [0], [0], [1], [0, 0, 1, 1], [], []>} : vector<8x32xbf16>, vector<32x128xbf16>, vector<8x128xf32> -> vector<8x128xf32>
    %167 = vector.extract_strided_slice %163 {offsets = [0, 0], sizes = [8, 64], strides = [1, 1]} : vector<8x128xf32> to vector<8x64xf32>
    %168 = vector.extract_strided_slice %166 {offsets = [0, 0], sizes = [8, 64], strides = [1, 1]} : vector<8x128xf32> to vector<8x64xf32>
    %169 = arith.addf %167, %168 : vector<8x64xf32>
    %170 = arith.negf %169 : vector<8x64xf32>
    %171 = math.exp %170 : vector<8x64xf32>
    %cst_70 = arith.constant 1.000000e+00 : f32
    %172 = vector.broadcast %cst_70 : f32 to vector<8x64xf32>
    %173 = arith.addf %172, %171 : vector<8x64xf32>
    %174 = arith.divf %172, %173 : vector<8x64xf32>
    %175 = vector.extract_strided_slice %174 {offsets = [0, 0], sizes = [8, 32], strides = [1, 1]} : vector<8x64xf32> to vector<8x32xf32>
    %176 = vector.extract_strided_slice %174 {offsets = [0, 32], sizes = [8, 32], strides = [1, 1]} : vector<8x64xf32> to vector<8x32xf32>
    %177 = vector.extract_strided_slice %163 {offsets = [0, 64], sizes = [8, 32], strides = [1, 1]} : vector<8x128xf32> to vector<8x32xf32>
    %178 = vector.extract_strided_slice %166 {offsets = [0, 64], sizes = [8, 32], strides = [1, 1]} : vector<8x128xf32> to vector<8x32xf32>
    %179 = arith.addf %178, %2 : vector<8x32xf32>
    %180 = arith.mulf %175, %179 : vector<8x32xf32>
    %181 = arith.addf %177, %180 : vector<8x32xf32>
    %182 = math.tanh %181 : vector<8x32xf32>
    %cst_71 = arith.constant 1.000000e+00 : f32
    %183 = vector.broadcast %cst_71 : f32 to vector<8x32xf32>
    %184 = arith.subf %183, %176 : vector<8x32xf32>
    %185 = arith.mulf %184, %182 : vector<8x32xf32>
    %186 = arith.mulf %176, %161 : vector<8x32xf32>
    %187 = arith.addf %185, %186 : vector<8x32xf32>
    %c40_72 = arith.constant 40 : index
    %c0_73 = arith.constant 0 : index
    %188 = vector.load %arg24[%c40_72, %c0_73] : memref<64x32xf32, #tpu.memory_space<vmem>>, vector<8x32xf32>
    tpu.vector_store %arg24[%c40_72, %c0_73], %187 {strides = array<i32>} : memref<64x32xf32, #tpu.memory_space<vmem>>, vector<8x32xf32>,
    %c48 = arith.constant 48 : index
    %c0_74 = arith.constant 0 : index
    %189 = vector.load %arg22[%c48, %c0_74] : memref<64x128xf32, #tpu.memory_space<vmem>>, vector<8x128xf32>
    %190 = arith.truncf %187 : vector<8x32xf32> to vector<8x32xbf16>
    %c0_75 = arith.constant 0 : index
    %c0_76 = arith.constant 0 : index
    %191 = vector.load %arg4[%c0_75, %c0_76] : memref<32x128xbf16, #tpu.memory_space<vmem>>, vector<32x128xbf16>
    %cst_77 = arith.constant dense<0.000000e+00> : vector<8x128xf32>
    %192 = tpu.matmul %190, %191, %cst_77 {dimension_numbers = #tpu.dot_dimension_numbers<[1], [0], [0], [1], [0, 0, 1, 1], [], []>} : vector<8x32xbf16>, vector<32x128xbf16>, vector<8x128xf32> -> vector<8x128xf32>
    %193 = vector.extract_strided_slice %189 {offsets = [0, 0], sizes = [8, 64], strides = [1, 1]} : vector<8x128xf32> to vector<8x64xf32>
    %194 = vector.extract_strided_slice %192 {offsets = [0, 0], sizes = [8, 64], strides = [1, 1]} : vector<8x128xf32> to vector<8x64xf32>
    %195 = arith.addf %193, %194 : vector<8x64xf32>
    %196 = arith.negf %195 : vector<8x64xf32>
    %197 = math.exp %196 : vector<8x64xf32>
    %cst_78 = arith.constant 1.000000e+00 : f32
    %198 = vector.broadcast %cst_78 : f32 to vector<8x64xf32>
    %199 = arith.addf %198, %197 : vector<8x64xf32>
    %200 = arith.divf %198, %199 : vector<8x64xf32>
    %201 = vector.extract_strided_slice %200 {offsets = [0, 0], sizes = [8, 32], strides = [1, 1]} : vector<8x64xf32> to vector<8x32xf32>
    %202 = vector.extract_strided_slice %200 {offsets = [0, 32], sizes = [8, 32], strides = [1, 1]} : vector<8x64xf32> to vector<8x32xf32>
    %203 = vector.extract_strided_slice %189 {offsets = [0, 64], sizes = [8, 32], strides = [1, 1]} : vector<8x128xf32> to vector<8x32xf32>
    %204 = vector.extract_strided_slice %192 {offsets = [0, 64], sizes = [8, 32], strides = [1, 1]} : vector<8x128xf32> to vector<8x32xf32>
    %205 = arith.addf %204, %2 : vector<8x32xf32>
    %206 = arith.mulf %201, %205 : vector<8x32xf32>
    %207 = arith.addf %203, %206 : vector<8x32xf32>
    %208 = math.tanh %207 : vector<8x32xf32>
    %cst_79 = arith.constant 1.000000e+00 : f32
    %209 = vector.broadcast %cst_79 : f32 to vector<8x32xf32>
    %210 = arith.subf %209, %202 : vector<8x32xf32>
    %211 = arith.mulf %210, %208 : vector<8x32xf32>
    %212 = arith.mulf %202, %187 : vector<8x32xf32>
    %213 = arith.addf %211, %212 : vector<8x32xf32>
    %c48_80 = arith.constant 48 : index
    %c0_81 = arith.constant 0 : index
    %214 = vector.load %arg24[%c48_80, %c0_81] : memref<64x32xf32, #tpu.memory_space<vmem>>, vector<8x32xf32>
    tpu.vector_store %arg24[%c48_80, %c0_81], %213 {strides = array<i32>} : memref<64x32xf32, #tpu.memory_space<vmem>>, vector<8x32xf32>,
    %c56 = arith.constant 56 : index
    %c0_82 = arith.constant 0 : index
    %215 = vector.load %arg22[%c56, %c0_82] : memref<64x128xf32, #tpu.memory_space<vmem>>, vector<8x128xf32>
    %216 = arith.truncf %213 : vector<8x32xf32> to vector<8x32xbf16>
    %c0_83 = arith.constant 0 : index
    %c0_84 = arith.constant 0 : index
    %217 = vector.load %arg4[%c0_83, %c0_84] : memref<32x128xbf16, #tpu.memory_space<vmem>>, vector<32x128xbf16>
    %cst_85 = arith.constant dense<0.000000e+00> : vector<8x128xf32>
    %218 = tpu.matmul %216, %217, %cst_85 {dimension_numbers = #tpu.dot_dimension_numbers<[1], [0], [0], [1], [0, 0, 1, 1], [], []>} : vector<8x32xbf16>, vector<32x128xbf16>, vector<8x128xf32> -> vector<8x128xf32>
    %219 = vector.extract_strided_slice %215 {offsets = [0, 0], sizes = [8, 64], strides = [1, 1]} : vector<8x128xf32> to vector<8x64xf32>
    %220 = vector.extract_strided_slice %218 {offsets = [0, 0], sizes = [8, 64], strides = [1, 1]} : vector<8x128xf32> to vector<8x64xf32>
    %221 = arith.addf %219, %220 : vector<8x64xf32>
    %222 = arith.negf %221 : vector<8x64xf32>
    %223 = math.exp %222 : vector<8x64xf32>
    %cst_86 = arith.constant 1.000000e+00 : f32
    %224 = vector.broadcast %cst_86 : f32 to vector<8x64xf32>
    %225 = arith.addf %224, %223 : vector<8x64xf32>
    %226 = arith.divf %224, %225 : vector<8x64xf32>
    %227 = vector.extract_strided_slice %226 {offsets = [0, 0], sizes = [8, 32], strides = [1, 1]} : vector<8x64xf32> to vector<8x32xf32>
    %228 = vector.extract_strided_slice %226 {offsets = [0, 32], sizes = [8, 32], strides = [1, 1]} : vector<8x64xf32> to vector<8x32xf32>
    %229 = vector.extract_strided_slice %215 {offsets = [0, 64], sizes = [8, 32], strides = [1, 1]} : vector<8x128xf32> to vector<8x32xf32>
    %230 = vector.extract_strided_slice %218 {offsets = [0, 64], sizes = [8, 32], strides = [1, 1]} : vector<8x128xf32> to vector<8x32xf32>
    %231 = arith.addf %230, %2 : vector<8x32xf32>
    %232 = arith.mulf %227, %231 : vector<8x32xf32>
    %233 = arith.addf %229, %232 : vector<8x32xf32>
    %234 = math.tanh %233 : vector<8x32xf32>
    %cst_87 = arith.constant 1.000000e+00 : f32
    %235 = vector.broadcast %cst_87 : f32 to vector<8x32xf32>
    %236 = arith.subf %235, %228 : vector<8x32xf32>
    %237 = arith.mulf %236, %234 : vector<8x32xf32>
    %238 = arith.mulf %228, %213 : vector<8x32xf32>
    %239 = arith.addf %237, %238 : vector<8x32xf32>
    %c56_88 = arith.constant 56 : index
    %c0_89 = arith.constant 0 : index
    %240 = vector.load %arg24[%c56_88, %c0_89] : memref<64x32xf32, #tpu.memory_space<vmem>>, vector<8x32xf32>
    tpu.vector_store %arg24[%c56_88, %c0_89], %239 {strides = array<i32>} : memref<64x32xf32, #tpu.memory_space<vmem>>, vector<8x32xf32>,
    %c0_90 = arith.constant 0 : index
    %c0_91 = arith.constant 0 : index
    %241 = vector.load %arg24[%c0_90, %c0_91] : memref<64x32xf32, #tpu.memory_space<vmem>>, vector<64x32xf32>
    %242 = arith.truncf %241 : vector<64x32xf32> to vector<64x32xbf16>
    %c0_92 = arith.constant 0 : index
    %c0_93 = arith.constant 0 : index
    %243 = vector.load %arg7[%c0_92, %c0_93] : memref<32x128xbf16, #tpu.memory_space<vmem>>, vector<32x128xbf16>
    %cst_94 = arith.constant dense<0.000000e+00> : vector<64x128xf32>
    %244 = tpu.matmul %242, %243, %cst_94 {dimension_numbers = #tpu.dot_dimension_numbers<[1], [0], [0], [1], [0, 0, 1, 1], [], []>} : vector<64x32xbf16>, vector<32x128xbf16>, vector<64x128xf32> -> vector<64x128xf32>
    %c0_95 = arith.constant 0 : index
    %c0_96 = arith.constant 0 : index
    %245 = vector.load %arg9[%c0_95, %c0_96] : memref<1x128xf32, #tpu.memory_space<vmem>>, vector<1x128xf32>
    %246 = vector.broadcast %245 : vector<1x128xf32> to vector<64x128xf32>
    %247 = arith.addf %244, %246 : vector<64x128xf32>
    %c0_97 = arith.constant 0 : index
    %c0_98 = arith.constant 0 : index
    %248 = vector.load %arg23[%c0_97, %c0_98] : memref<64x128xf32, #tpu.memory_space<vmem>>, vector<64x128xf32>
    tpu.vector_store %arg23[%c0_97, %c0_98], %247 {strides = array<i32>} : memref<64x128xf32, #tpu.memory_space<vmem>>, vector<64x128xf32>,
    %c0_99 = arith.constant 0 : index
    %c0_100 = arith.constant 0 : index
    %249 = vector.load %arg23[%c0_99, %c0_100] : memref<64x128xf32, #tpu.memory_space<vmem>>, vector<8x128xf32>
    %250 = arith.truncf %239 : vector<8x32xf32> to vector<8x32xbf16>
    %c0_101 = arith.constant 0 : index
    %c0_102 = arith.constant 0 : index
    %251 = vector.load %arg8[%c0_101, %c0_102] : memref<32x128xbf16, #tpu.memory_space<vmem>>, vector<32x128xbf16>
    %cst_103 = arith.constant dense<0.000000e+00> : vector<8x128xf32>
    %252 = tpu.matmul %250, %251, %cst_103 {dimension_numbers = #tpu.dot_dimension_numbers<[1], [0], [0], [1], [0, 0, 1, 1], [], []>} : vector<8x32xbf16>, vector<32x128xbf16>, vector<8x128xf32> -> vector<8x128xf32>
    %253 = vector.extract_strided_slice %249 {offsets = [0, 0], sizes = [8, 64], strides = [1, 1]} : vector<8x128xf32> to vector<8x64xf32>
    %254 = vector.extract_strided_slice %252 {offsets = [0, 0], sizes = [8, 64], strides = [1, 1]} : vector<8x128xf32> to vector<8x64xf32>
    %255 = arith.addf %253, %254 : vector<8x64xf32>
    %256 = arith.negf %255 : vector<8x64xf32>
    %257 = math.exp %256 : vector<8x64xf32>
    %cst_104 = arith.constant 1.000000e+00 : f32
    %258 = vector.broadcast %cst_104 : f32 to vector<8x64xf32>
    %259 = arith.addf %258, %257 : vector<8x64xf32>
    %260 = arith.divf %258, %259 : vector<8x64xf32>
    %261 = vector.extract_strided_slice %260 {offsets = [0, 0], sizes = [8, 32], strides = [1, 1]} : vector<8x64xf32> to vector<8x32xf32>
    %262 = vector.extract_strided_slice %260 {offsets = [0, 32], sizes = [8, 32], strides = [1, 1]} : vector<8x64xf32> to vector<8x32xf32>
    %263 = vector.extract_strided_slice %249 {offsets = [0, 64], sizes = [8, 32], strides = [1, 1]} : vector<8x128xf32> to vector<8x32xf32>
    %264 = vector.extract_strided_slice %252 {offsets = [0, 64], sizes = [8, 32], strides = [1, 1]} : vector<8x128xf32> to vector<8x32xf32>
    %265 = arith.addf %264, %5 : vector<8x32xf32>
    %266 = arith.mulf %261, %265 : vector<8x32xf32>
    %267 = arith.addf %263, %266 : vector<8x32xf32>
    %268 = math.tanh %267 : vector<8x32xf32>
    %cst_105 = arith.constant 1.000000e+00 : f32
    %269 = vector.broadcast %cst_105 : f32 to vector<8x32xf32>
    %270 = arith.subf %269, %262 : vector<8x32xf32>
    %271 = arith.mulf %270, %268 : vector<8x32xf32>
    %272 = arith.mulf %262, %239 : vector<8x32xf32>
    %273 = arith.addf %271, %272 : vector<8x32xf32>
    %c8_106 = arith.constant 8 : index
    %c0_107 = arith.constant 0 : index
    %274 = vector.load %arg23[%c8_106, %c0_107] : memref<64x128xf32, #tpu.memory_space<vmem>>, vector<8x128xf32>
    %275 = arith.truncf %273 : vector<8x32xf32> to vector<8x32xbf16>
    %c0_108 = arith.constant 0 : index
    %c0_109 = arith.constant 0 : index
    %276 = vector.load %arg8[%c0_108, %c0_109] : memref<32x128xbf16, #tpu.memory_space<vmem>>, vector<32x128xbf16>
    %cst_110 = arith.constant dense<0.000000e+00> : vector<8x128xf32>
    %277 = tpu.matmul %275, %276, %cst_110 {dimension_numbers = #tpu.dot_dimension_numbers<[1], [0], [0], [1], [0, 0, 1, 1], [], []>} : vector<8x32xbf16>, vector<32x128xbf16>, vector<8x128xf32> -> vector<8x128xf32>
    %278 = vector.extract_strided_slice %274 {offsets = [0, 0], sizes = [8, 64], strides = [1, 1]} : vector<8x128xf32> to vector<8x64xf32>
    %279 = vector.extract_strided_slice %277 {offsets = [0, 0], sizes = [8, 64], strides = [1, 1]} : vector<8x128xf32> to vector<8x64xf32>
    %280 = arith.addf %278, %279 : vector<8x64xf32>
    %281 = arith.negf %280 : vector<8x64xf32>
    %282 = math.exp %281 : vector<8x64xf32>
    %cst_111 = arith.constant 1.000000e+00 : f32
    %283 = vector.broadcast %cst_111 : f32 to vector<8x64xf32>
    %284 = arith.addf %283, %282 : vector<8x64xf32>
    %285 = arith.divf %283, %284 : vector<8x64xf32>
    %286 = vector.extract_strided_slice %285 {offsets = [0, 0], sizes = [8, 32], strides = [1, 1]} : vector<8x64xf32> to vector<8x32xf32>
    %287 = vector.extract_strided_slice %285 {offsets = [0, 32], sizes = [8, 32], strides = [1, 1]} : vector<8x64xf32> to vector<8x32xf32>
    %288 = vector.extract_strided_slice %274 {offsets = [0, 64], sizes = [8, 32], strides = [1, 1]} : vector<8x128xf32> to vector<8x32xf32>
    %289 = vector.extract_strided_slice %277 {offsets = [0, 64], sizes = [8, 32], strides = [1, 1]} : vector<8x128xf32> to vector<8x32xf32>
    %290 = arith.addf %289, %5 : vector<8x32xf32>
    %291 = arith.mulf %286, %290 : vector<8x32xf32>
    %292 = arith.addf %288, %291 : vector<8x32xf32>
    %293 = math.tanh %292 : vector<8x32xf32>
    %cst_112 = arith.constant 1.000000e+00 : f32
    %294 = vector.broadcast %cst_112 : f32 to vector<8x32xf32>
    %295 = arith.subf %294, %287 : vector<8x32xf32>
    %296 = arith.mulf %295, %293 : vector<8x32xf32>
    %297 = arith.mulf %287, %273 : vector<8x32xf32>
    %298 = arith.addf %296, %297 : vector<8x32xf32>
    %c16_113 = arith.constant 16 : index
    %c0_114 = arith.constant 0 : index
    %299 = vector.load %arg23[%c16_113, %c0_114] : memref<64x128xf32, #tpu.memory_space<vmem>>, vector<8x128xf32>
    %300 = arith.truncf %298 : vector<8x32xf32> to vector<8x32xbf16>
    %c0_115 = arith.constant 0 : index
    %c0_116 = arith.constant 0 : index
    %301 = vector.load %arg8[%c0_115, %c0_116] : memref<32x128xbf16, #tpu.memory_space<vmem>>, vector<32x128xbf16>
    %cst_117 = arith.constant dense<0.000000e+00> : vector<8x128xf32>
    %302 = tpu.matmul %300, %301, %cst_117 {dimension_numbers = #tpu.dot_dimension_numbers<[1], [0], [0], [1], [0, 0, 1, 1], [], []>} : vector<8x32xbf16>, vector<32x128xbf16>, vector<8x128xf32> -> vector<8x128xf32>
    %303 = vector.extract_strided_slice %299 {offsets = [0, 0], sizes = [8, 64], strides = [1, 1]} : vector<8x128xf32> to vector<8x64xf32>
    %304 = vector.extract_strided_slice %302 {offsets = [0, 0], sizes = [8, 64], strides = [1, 1]} : vector<8x128xf32> to vector<8x64xf32>
    %305 = arith.addf %303, %304 : vector<8x64xf32>
    %306 = arith.negf %305 : vector<8x64xf32>
    %307 = math.exp %306 : vector<8x64xf32>
    %cst_118 = arith.constant 1.000000e+00 : f32
    %308 = vector.broadcast %cst_118 : f32 to vector<8x64xf32>
    %309 = arith.addf %308, %307 : vector<8x64xf32>
    %310 = arith.divf %308, %309 : vector<8x64xf32>
    %311 = vector.extract_strided_slice %310 {offsets = [0, 0], sizes = [8, 32], strides = [1, 1]} : vector<8x64xf32> to vector<8x32xf32>
    %312 = vector.extract_strided_slice %310 {offsets = [0, 32], sizes = [8, 32], strides = [1, 1]} : vector<8x64xf32> to vector<8x32xf32>
    %313 = vector.extract_strided_slice %299 {offsets = [0, 64], sizes = [8, 32], strides = [1, 1]} : vector<8x128xf32> to vector<8x32xf32>
    %314 = vector.extract_strided_slice %302 {offsets = [0, 64], sizes = [8, 32], strides = [1, 1]} : vector<8x128xf32> to vector<8x32xf32>
    %315 = arith.addf %314, %5 : vector<8x32xf32>
    %316 = arith.mulf %311, %315 : vector<8x32xf32>
    %317 = arith.addf %313, %316 : vector<8x32xf32>
    %318 = math.tanh %317 : vector<8x32xf32>
    %cst_119 = arith.constant 1.000000e+00 : f32
    %319 = vector.broadcast %cst_119 : f32 to vector<8x32xf32>
    %320 = arith.subf %319, %312 : vector<8x32xf32>
    %321 = arith.mulf %320, %318 : vector<8x32xf32>
    %322 = arith.mulf %312, %298 : vector<8x32xf32>
    %323 = arith.addf %321, %322 : vector<8x32xf32>
    %c24_120 = arith.constant 24 : index
    %c0_121 = arith.constant 0 : index
    %324 = vector.load %arg23[%c24_120, %c0_121] : memref<64x128xf32, #tpu.memory_space<vmem>>, vector<8x128xf32>
    %325 = arith.truncf %323 : vector<8x32xf32> to vector<8x32xbf16>
    %c0_122 = arith.constant 0 : index
    %c0_123 = arith.constant 0 : index
    %326 = vector.load %arg8[%c0_122, %c0_123] : memref<32x128xbf16, #tpu.memory_space<vmem>>, vector<32x128xbf16>
    %cst_124 = arith.constant dense<0.000000e+00> : vector<8x128xf32>
    %327 = tpu.matmul %325, %326, %cst_124 {dimension_numbers = #tpu.dot_dimension_numbers<[1], [0], [0], [1], [0, 0, 1, 1], [], []>} : vector<8x32xbf16>, vector<32x128xbf16>, vector<8x128xf32> -> vector<8x128xf32>
    %328 = vector.extract_strided_slice %324 {offsets = [0, 0], sizes = [8, 64], strides = [1, 1]} : vector<8x128xf32> to vector<8x64xf32>
    %329 = vector.extract_strided_slice %327 {offsets = [0, 0], sizes = [8, 64], strides = [1, 1]} : vector<8x128xf32> to vector<8x64xf32>
    %330 = arith.addf %328, %329 : vector<8x64xf32>
    %331 = arith.negf %330 : vector<8x64xf32>
    %332 = math.exp %331 : vector<8x64xf32>
    %cst_125 = arith.constant 1.000000e+00 : f32
    %333 = vector.broadcast %cst_125 : f32 to vector<8x64xf32>
    %334 = arith.addf %333, %332 : vector<8x64xf32>
    %335 = arith.divf %333, %334 : vector<8x64xf32>
    %336 = vector.extract_strided_slice %335 {offsets = [0, 0], sizes = [8, 32], strides = [1, 1]} : vector<8x64xf32> to vector<8x32xf32>
    %337 = vector.extract_strided_slice %335 {offsets = [0, 32], sizes = [8, 32], strides = [1, 1]} : vector<8x64xf32> to vector<8x32xf32>
    %338 = vector.extract_strided_slice %324 {offsets = [0, 64], sizes = [8, 32], strides = [1, 1]} : vector<8x128xf32> to vector<8x32xf32>
    %339 = vector.extract_strided_slice %327 {offsets = [0, 64], sizes = [8, 32], strides = [1, 1]} : vector<8x128xf32> to vector<8x32xf32>
    %340 = arith.addf %339, %5 : vector<8x32xf32>
    %341 = arith.mulf %336, %340 : vector<8x32xf32>
    %342 = arith.addf %338, %341 : vector<8x32xf32>
    %343 = math.tanh %342 : vector<8x32xf32>
    %cst_126 = arith.constant 1.000000e+00 : f32
    %344 = vector.broadcast %cst_126 : f32 to vector<8x32xf32>
    %345 = arith.subf %344, %337 : vector<8x32xf32>
    %346 = arith.mulf %345, %343 : vector<8x32xf32>
    %347 = arith.mulf %337, %323 : vector<8x32xf32>
    %348 = arith.addf %346, %347 : vector<8x32xf32>
    %c32_127 = arith.constant 32 : index
    %c0_128 = arith.constant 0 : index
    %349 = vector.load %arg23[%c32_127, %c0_128] : memref<64x128xf32, #tpu.memory_space<vmem>>, vector<8x128xf32>
    %350 = arith.truncf %348 : vector<8x32xf32> to vector<8x32xbf16>
    %c0_129 = arith.constant 0 : index
    %c0_130 = arith.constant 0 : index
    %351 = vector.load %arg8[%c0_129, %c0_130] : memref<32x128xbf16, #tpu.memory_space<vmem>>, vector<32x128xbf16>
    %cst_131 = arith.constant dense<0.000000e+00> : vector<8x128xf32>
    %352 = tpu.matmul %350, %351, %cst_131 {dimension_numbers = #tpu.dot_dimension_numbers<[1], [0], [0], [1], [0, 0, 1, 1], [], []>} : vector<8x32xbf16>, vector<32x128xbf16>, vector<8x128xf32> -> vector<8x128xf32>
    %353 = vector.extract_strided_slice %349 {offsets = [0, 0], sizes = [8, 64], strides = [1, 1]} : vector<8x128xf32> to vector<8x64xf32>
    %354 = vector.extract_strided_slice %352 {offsets = [0, 0], sizes = [8, 64], strides = [1, 1]} : vector<8x128xf32> to vector<8x64xf32>
    %355 = arith.addf %353, %354 : vector<8x64xf32>
    %356 = arith.negf %355 : vector<8x64xf32>
    %357 = math.exp %356 : vector<8x64xf32>
    %cst_132 = arith.constant 1.000000e+00 : f32
    %358 = vector.broadcast %cst_132 : f32 to vector<8x64xf32>
    %359 = arith.addf %358, %357 : vector<8x64xf32>
    %360 = arith.divf %358, %359 : vector<8x64xf32>
    %361 = vector.extract_strided_slice %360 {offsets = [0, 0], sizes = [8, 32], strides = [1, 1]} : vector<8x64xf32> to vector<8x32xf32>
    %362 = vector.extract_strided_slice %360 {offsets = [0, 32], sizes = [8, 32], strides = [1, 1]} : vector<8x64xf32> to vector<8x32xf32>
    %363 = vector.extract_strided_slice %349 {offsets = [0, 64], sizes = [8, 32], strides = [1, 1]} : vector<8x128xf32> to vector<8x32xf32>
    %364 = vector.extract_strided_slice %352 {offsets = [0, 64], sizes = [8, 32], strides = [1, 1]} : vector<8x128xf32> to vector<8x32xf32>
    %365 = arith.addf %364, %5 : vector<8x32xf32>
    %366 = arith.mulf %361, %365 : vector<8x32xf32>
    %367 = arith.addf %363, %366 : vector<8x32xf32>
    %368 = math.tanh %367 : vector<8x32xf32>
    %cst_133 = arith.constant 1.000000e+00 : f32
    %369 = vector.broadcast %cst_133 : f32 to vector<8x32xf32>
    %370 = arith.subf %369, %362 : vector<8x32xf32>
    %371 = arith.mulf %370, %368 : vector<8x32xf32>
    %372 = arith.mulf %362, %348 : vector<8x32xf32>
    %373 = arith.addf %371, %372 : vector<8x32xf32>
    %c40_134 = arith.constant 40 : index
    %c0_135 = arith.constant 0 : index
    %374 = vector.load %arg23[%c40_134, %c0_135] : memref<64x128xf32, #tpu.memory_space<vmem>>, vector<8x128xf32>
    %375 = arith.truncf %373 : vector<8x32xf32> to vector<8x32xbf16>
    %c0_136 = arith.constant 0 : index
    %c0_137 = arith.constant 0 : index
    %376 = vector.load %arg8[%c0_136, %c0_137] : memref<32x128xbf16, #tpu.memory_space<vmem>>, vector<32x128xbf16>
    %cst_138 = arith.constant dense<0.000000e+00> : vector<8x128xf32>
    %377 = tpu.matmul %375, %376, %cst_138 {dimension_numbers = #tpu.dot_dimension_numbers<[1], [0], [0], [1], [0, 0, 1, 1], [], []>} : vector<8x32xbf16>, vector<32x128xbf16>, vector<8x128xf32> -> vector<8x128xf32>
    %378 = vector.extract_strided_slice %374 {offsets = [0, 0], sizes = [8, 64], strides = [1, 1]} : vector<8x128xf32> to vector<8x64xf32>
    %379 = vector.extract_strided_slice %377 {offsets = [0, 0], sizes = [8, 64], strides = [1, 1]} : vector<8x128xf32> to vector<8x64xf32>
    %380 = arith.addf %378, %379 : vector<8x64xf32>
    %381 = arith.negf %380 : vector<8x64xf32>
    %382 = math.exp %381 : vector<8x64xf32>
    %cst_139 = arith.constant 1.000000e+00 : f32
    %383 = vector.broadcast %cst_139 : f32 to vector<8x64xf32>
    %384 = arith.addf %383, %382 : vector<8x64xf32>
    %385 = arith.divf %383, %384 : vector<8x64xf32>
    %386 = vector.extract_strided_slice %385 {offsets = [0, 0], sizes = [8, 32], strides = [1, 1]} : vector<8x64xf32> to vector<8x32xf32>
    %387 = vector.extract_strided_slice %385 {offsets = [0, 32], sizes = [8, 32], strides = [1, 1]} : vector<8x64xf32> to vector<8x32xf32>
    %388 = vector.extract_strided_slice %374 {offsets = [0, 64], sizes = [8, 32], strides = [1, 1]} : vector<8x128xf32> to vector<8x32xf32>
    %389 = vector.extract_strided_slice %377 {offsets = [0, 64], sizes = [8, 32], strides = [1, 1]} : vector<8x128xf32> to vector<8x32xf32>
    %390 = arith.addf %389, %5 : vector<8x32xf32>
    %391 = arith.mulf %386, %390 : vector<8x32xf32>
    %392 = arith.addf %388, %391 : vector<8x32xf32>
    %393 = math.tanh %392 : vector<8x32xf32>
    %cst_140 = arith.constant 1.000000e+00 : f32
    %394 = vector.broadcast %cst_140 : f32 to vector<8x32xf32>
    %395 = arith.subf %394, %387 : vector<8x32xf32>
    %396 = arith.mulf %395, %393 : vector<8x32xf32>
    %397 = arith.mulf %387, %373 : vector<8x32xf32>
    %398 = arith.addf %396, %397 : vector<8x32xf32>
    %c48_141 = arith.constant 48 : index
    %c0_142 = arith.constant 0 : index
    %399 = vector.load %arg23[%c48_141, %c0_142] : memref<64x128xf32, #tpu.memory_space<vmem>>, vector<8x128xf32>
    %400 = arith.truncf %398 : vector<8x32xf32> to vector<8x32xbf16>
    %c0_143 = arith.constant 0 : index
    %c0_144 = arith.constant 0 : index
    %401 = vector.load %arg8[%c0_143, %c0_144] : memref<32x128xbf16, #tpu.memory_space<vmem>>, vector<32x128xbf16>
    %cst_145 = arith.constant dense<0.000000e+00> : vector<8x128xf32>
    %402 = tpu.matmul %400, %401, %cst_145 {dimension_numbers = #tpu.dot_dimension_numbers<[1], [0], [0], [1], [0, 0, 1, 1], [], []>} : vector<8x32xbf16>, vector<32x128xbf16>, vector<8x128xf32> -> vector<8x128xf32>
    %403 = vector.extract_strided_slice %399 {offsets = [0, 0], sizes = [8, 64], strides = [1, 1]} : vector<8x128xf32> to vector<8x64xf32>
    %404 = vector.extract_strided_slice %402 {offsets = [0, 0], sizes = [8, 64], strides = [1, 1]} : vector<8x128xf32> to vector<8x64xf32>
    %405 = arith.addf %403, %404 : vector<8x64xf32>
    %406 = arith.negf %405 : vector<8x64xf32>
    %407 = math.exp %406 : vector<8x64xf32>
    %cst_146 = arith.constant 1.000000e+00 : f32
    %408 = vector.broadcast %cst_146 : f32 to vector<8x64xf32>
    %409 = arith.addf %408, %407 : vector<8x64xf32>
    %410 = arith.divf %408, %409 : vector<8x64xf32>
    %411 = vector.extract_strided_slice %410 {offsets = [0, 0], sizes = [8, 32], strides = [1, 1]} : vector<8x64xf32> to vector<8x32xf32>
    %412 = vector.extract_strided_slice %410 {offsets = [0, 32], sizes = [8, 32], strides = [1, 1]} : vector<8x64xf32> to vector<8x32xf32>
    %413 = vector.extract_strided_slice %399 {offsets = [0, 64], sizes = [8, 32], strides = [1, 1]} : vector<8x128xf32> to vector<8x32xf32>
    %414 = vector.extract_strided_slice %402 {offsets = [0, 64], sizes = [8, 32], strides = [1, 1]} : vector<8x128xf32> to vector<8x32xf32>
    %415 = arith.addf %414, %5 : vector<8x32xf32>
    %416 = arith.mulf %411, %415 : vector<8x32xf32>
    %417 = arith.addf %413, %416 : vector<8x32xf32>
    %418 = math.tanh %417 : vector<8x32xf32>
    %cst_147 = arith.constant 1.000000e+00 : f32
    %419 = vector.broadcast %cst_147 : f32 to vector<8x32xf32>
    %420 = arith.subf %419, %412 : vector<8x32xf32>
    %421 = arith.mulf %420, %418 : vector<8x32xf32>
    %422 = arith.mulf %412, %398 : vector<8x32xf32>
    %423 = arith.addf %421, %422 : vector<8x32xf32>
    %c56_148 = arith.constant 56 : index
    %c0_149 = arith.constant 0 : index
    %424 = vector.load %arg23[%c56_148, %c0_149] : memref<64x128xf32, #tpu.memory_space<vmem>>, vector<8x128xf32>
    %425 = arith.truncf %423 : vector<8x32xf32> to vector<8x32xbf16>
    %c0_150 = arith.constant 0 : index
    %c0_151 = arith.constant 0 : index
    %426 = vector.load %arg8[%c0_150, %c0_151] : memref<32x128xbf16, #tpu.memory_space<vmem>>, vector<32x128xbf16>
    %cst_152 = arith.constant dense<0.000000e+00> : vector<8x128xf32>
    %427 = tpu.matmul %425, %426, %cst_152 {dimension_numbers = #tpu.dot_dimension_numbers<[1], [0], [0], [1], [0, 0, 1, 1], [], []>} : vector<8x32xbf16>, vector<32x128xbf16>, vector<8x128xf32> -> vector<8x128xf32>
    %428 = vector.extract_strided_slice %424 {offsets = [0, 0], sizes = [8, 64], strides = [1, 1]} : vector<8x128xf32> to vector<8x64xf32>
    %429 = vector.extract_strided_slice %427 {offsets = [0, 0], sizes = [8, 64], strides = [1, 1]} : vector<8x128xf32> to vector<8x64xf32>
    %430 = arith.addf %428, %429 : vector<8x64xf32>
    %431 = arith.negf %430 : vector<8x64xf32>
    %432 = math.exp %431 : vector<8x64xf32>
    %cst_153 = arith.constant 1.000000e+00 : f32
    %433 = vector.broadcast %cst_153 : f32 to vector<8x64xf32>
    %434 = arith.addf %433, %432 : vector<8x64xf32>
    %435 = arith.divf %433, %434 : vector<8x64xf32>
    %436 = vector.extract_strided_slice %435 {offsets = [0, 0], sizes = [8, 32], strides = [1, 1]} : vector<8x64xf32> to vector<8x32xf32>
    %437 = vector.extract_strided_slice %435 {offsets = [0, 32], sizes = [8, 32], strides = [1, 1]} : vector<8x64xf32> to vector<8x32xf32>
    %438 = vector.extract_strided_slice %424 {offsets = [0, 64], sizes = [8, 32], strides = [1, 1]} : vector<8x128xf32> to vector<8x32xf32>
    %439 = vector.extract_strided_slice %427 {offsets = [0, 64], sizes = [8, 32], strides = [1, 1]} : vector<8x128xf32> to vector<8x32xf32>
    %440 = arith.addf %439, %5 : vector<8x32xf32>
    %441 = arith.mulf %436, %440 : vector<8x32xf32>
    %442 = arith.addf %438, %441 : vector<8x32xf32>
    %443 = math.tanh %442 : vector<8x32xf32>
    %cst_154 = arith.constant 1.000000e+00 : f32
    %444 = vector.broadcast %cst_154 : f32 to vector<8x32xf32>
    %445 = arith.subf %444, %437 : vector<8x32xf32>
    %446 = arith.mulf %445, %443 : vector<8x32xf32>
    %447 = arith.mulf %437, %423 : vector<8x32xf32>
    %448 = arith.addf %446, %447 : vector<8x32xf32>
    %449 = arith.truncf %423 : vector<8x32xf32> to vector<8x32xbf16>
    %c0_155 = arith.constant 0 : index
    %c0_156 = arith.constant 0 : index
    %450 = vector.load %arg17[%c0_155, %c0_156] : memref<32x32xbf16, #tpu.memory_space<vmem>>, vector<32x32xbf16>
    %cst_157 = arith.constant dense<0.000000e+00> : vector<8x32xf32>
    %451 = tpu.matmul %449, %450, %cst_157 {dimension_numbers = #tpu.dot_dimension_numbers<[1], [0], [0], [1], [0, 0, 1, 1], [], []>} : vector<8x32xbf16>, vector<32x32xbf16>, vector<8x32xf32> -> vector<8x32xf32>
    %452 = arith.addf %451, %17 : vector<8x32xf32>
    %453 = math.tanh %452 : vector<8x32xf32>
    %454 = arith.truncf %453 : vector<8x32xf32> to vector<8x32xbf16>
    %c0_158 = arith.constant 0 : index
    %c0_159 = arith.constant 0 : index
    %455 = vector.load %arg11[%c0_158, %c0_159] : memref<32x128xbf16, #tpu.memory_space<vmem>>, vector<32x128xbf16>
    %cst_160 = arith.constant dense<0.000000e+00> : vector<8x128xf32>
    %456 = tpu.matmul %454, %455, %cst_160 {dimension_numbers = #tpu.dot_dimension_numbers<[1], [0], [0], [1], [0, 0, 1, 1], [], []>} : vector<8x32xbf16>, vector<32x128xbf16>, vector<8x128xf32> -> vector<8x128xf32>
    %457 = arith.addf %456, %11 : vector<8x128xf32>
    %458 = arith.truncf %448 : vector<8x32xf32> to vector<8x32xbf16>
    %c0_161 = arith.constant 0 : index
    %c0_162 = arith.constant 0 : index
    %459 = vector.load %arg12[%c0_161, %c0_162] : memref<32x128xbf16, #tpu.memory_space<vmem>>, vector<32x128xbf16>
    %cst_163 = arith.constant dense<0.000000e+00> : vector<8x128xf32>
    %460 = tpu.matmul %458, %459, %cst_163 {dimension_numbers = #tpu.dot_dimension_numbers<[1], [0], [0], [1], [0, 0, 1, 1], [], []>} : vector<8x32xbf16>, vector<32x128xbf16>, vector<8x128xf32> -> vector<8x128xf32>
    %461 = vector.extract_strided_slice %457 {offsets = [0, 0], sizes = [8, 64], strides = [1, 1]} : vector<8x128xf32> to vector<8x64xf32>
    %462 = vector.extract_strided_slice %460 {offsets = [0, 0], sizes = [8, 64], strides = [1, 1]} : vector<8x128xf32> to vector<8x64xf32>
    %463 = arith.addf %461, %462 : vector<8x64xf32>
    %464 = arith.negf %463 : vector<8x64xf32>
    %465 = math.exp %464 : vector<8x64xf32>
    %cst_164 = arith.constant 1.000000e+00 : f32
    %466 = vector.broadcast %cst_164 : f32 to vector<8x64xf32>
    %467 = arith.addf %466, %465 : vector<8x64xf32>
    %468 = arith.divf %466, %467 : vector<8x64xf32>
    %469 = vector.extract_strided_slice %468 {offsets = [0, 0], sizes = [8, 32], strides = [1, 1]} : vector<8x64xf32> to vector<8x32xf32>
    %470 = vector.extract_strided_slice %468 {offsets = [0, 32], sizes = [8, 32], strides = [1, 1]} : vector<8x64xf32> to vector<8x32xf32>
    %471 = vector.extract_strided_slice %457 {offsets = [0, 64], sizes = [8, 32], strides = [1, 1]} : vector<8x128xf32> to vector<8x32xf32>
    %472 = vector.extract_strided_slice %460 {offsets = [0, 64], sizes = [8, 32], strides = [1, 1]} : vector<8x128xf32> to vector<8x32xf32>
    %473 = arith.addf %472, %8 : vector<8x32xf32>
    %474 = arith.mulf %469, %473 : vector<8x32xf32>
    %475 = arith.addf %471, %474 : vector<8x32xf32>
    %476 = math.tanh %475 : vector<8x32xf32>
    %cst_165 = arith.constant 1.000000e+00 : f32
    %477 = vector.broadcast %cst_165 : f32 to vector<8x32xf32>
    %478 = arith.subf %477, %470 : vector<8x32xf32>
    %479 = arith.mulf %478, %476 : vector<8x32xf32>
    %480 = arith.mulf %470, %448 : vector<8x32xf32>
    %481 = arith.addf %479, %480 : vector<8x32xf32>
    %482 = arith.truncf %481 : vector<8x32xf32> to vector<8x32xbf16>
    %c0_166 = arith.constant 0 : index
    %c0_167 = arith.constant 0 : index
    %483 = vector.load %arg15[%c0_166, %c0_167] : memref<32x128xbf16, #tpu.memory_space<vmem>>, vector<32x128xbf16>
    %cst_168 = arith.constant dense<0.000000e+00> : vector<8x128xf32>
    %484 = tpu.matmul %482, %483, %cst_168 {dimension_numbers = #tpu.dot_dimension_numbers<[1], [0], [0], [1], [0, 0, 1, 1], [], []>} : vector<8x32xbf16>, vector<32x128xbf16>, vector<8x128xf32> -> vector<8x128xf32>
    %485 = arith.addf %484, %14 : vector<8x128xf32>
    %486 = vector.extract_strided_slice %485 {offsets = [0, 0], sizes = [8, 64], strides = [1, 1]} : vector<8x128xf32> to vector<8x64xf32>
    %487 = arith.negf %486 : vector<8x64xf32>
    %488 = math.exp %487 : vector<8x64xf32>
    %cst_169 = arith.constant 1.000000e+00 : f32
    %489 = vector.broadcast %cst_169 : f32 to vector<8x64xf32>
    %490 = arith.addf %489, %488 : vector<8x64xf32>
    %491 = arith.divf %489, %490 : vector<8x64xf32>
    %492 = vector.extract_strided_slice %485 {offsets = [0, 64], sizes = [8, 32], strides = [1, 1]} : vector<8x128xf32> to vector<8x32xf32>
    %493 = vector.extract_strided_slice %491 {offsets = [0, 0], sizes = [8, 32], strides = [1, 1]} : vector<8x64xf32> to vector<8x32xf32>
    %494 = vector.extract_strided_slice %485 {offsets = [0, 96], sizes = [8, 32], strides = [1, 1]} : vector<8x128xf32> to vector<8x32xf32>
    %495 = arith.mulf %493, %494 : vector<8x32xf32>
    %496 = arith.addf %492, %495 : vector<8x32xf32>
    %497 = math.tanh %496 : vector<8x32xf32>
    %498 = vector.extract_strided_slice %491 {offsets = [0, 32], sizes = [8, 32], strides = [1, 1]} : vector<8x64xf32> to vector<8x32xf32>
    %cst_170 = arith.constant 1.000000e+00 : f32
    %499 = vector.broadcast %cst_170 : f32 to vector<8x32xf32>
    %500 = arith.subf %499, %498 : vector<8x32xf32>
    %501 = arith.mulf %500, %497 : vector<8x32xf32>
    %502 = vector.extract_strided_slice %491 {offsets = [0, 32], sizes = [8, 32], strides = [1, 1]} : vector<8x64xf32> to vector<8x32xf32>
    %503 = arith.mulf %502, %481 : vector<8x32xf32>
    %504 = arith.addf %501, %503 : vector<8x32xf32>
    %c0_171 = arith.constant 0 : index
    %c0_172 = arith.constant 0 : index
    %505 = vector.load %arg25[%c0_171, %c0_172] : memref<32x32xf32, #tpu.memory_space<vmem>>, vector<8x32xf32>
    tpu.vector_store %arg25[%c0_171, %c0_172], %504 {strides = array<i32>} : memref<32x32xf32, #tpu.memory_space<vmem>>, vector<8x32xf32>,
    %506 = arith.truncf %504 : vector<8x32xf32> to vector<8x32xbf16>
    %c0_173 = arith.constant 0 : index
    %c0_174 = arith.constant 0 : index
    %507 = vector.load %arg17[%c0_173, %c0_174] : memref<32x32xbf16, #tpu.memory_space<vmem>>, vector<32x32xbf16>
    %cst_175 = arith.constant dense<0.000000e+00> : vector<8x32xf32>
    %508 = tpu.matmul %506, %507, %cst_175 {dimension_numbers = #tpu.dot_dimension_numbers<[1], [0], [0], [1], [0, 0, 1, 1], [], []>} : vector<8x32xbf16>, vector<32x32xbf16>, vector<8x32xf32> -> vector<8x32xf32>
    %509 = arith.addf %508, %17 : vector<8x32xf32>
    %510 = math.tanh %509 : vector<8x32xf32>
    %511 = arith.truncf %510 : vector<8x32xf32> to vector<8x32xbf16>
    %c0_176 = arith.constant 0 : index
    %c0_177 = arith.constant 0 : index
    %512 = vector.load %arg11[%c0_176, %c0_177] : memref<32x128xbf16, #tpu.memory_space<vmem>>, vector<32x128xbf16>
    %cst_178 = arith.constant dense<0.000000e+00> : vector<8x128xf32>
    %513 = tpu.matmul %511, %512, %cst_178 {dimension_numbers = #tpu.dot_dimension_numbers<[1], [0], [0], [1], [0, 0, 1, 1], [], []>} : vector<8x32xbf16>, vector<32x128xbf16>, vector<8x128xf32> -> vector<8x128xf32>
    %514 = arith.addf %513, %11 : vector<8x128xf32>
    %515 = arith.truncf %504 : vector<8x32xf32> to vector<8x32xbf16>
    %c0_179 = arith.constant 0 : index
    %c0_180 = arith.constant 0 : index
    %516 = vector.load %arg12[%c0_179, %c0_180] : memref<32x128xbf16, #tpu.memory_space<vmem>>, vector<32x128xbf16>
    %cst_181 = arith.constant dense<0.000000e+00> : vector<8x128xf32>
    %517 = tpu.matmul %515, %516, %cst_181 {dimension_numbers = #tpu.dot_dimension_numbers<[1], [0], [0], [1], [0, 0, 1, 1], [], []>} : vector<8x32xbf16>, vector<32x128xbf16>, vector<8x128xf32> -> vector<8x128xf32>
    %518 = vector.extract_strided_slice %514 {offsets = [0, 0], sizes = [8, 64], strides = [1, 1]} : vector<8x128xf32> to vector<8x64xf32>
    %519 = vector.extract_strided_slice %517 {offsets = [0, 0], sizes = [8, 64], strides = [1, 1]} : vector<8x128xf32> to vector<8x64xf32>
    %520 = arith.addf %518, %519 : vector<8x64xf32>
    %521 = arith.negf %520 : vector<8x64xf32>
    %522 = math.exp %521 : vector<8x64xf32>
    %cst_182 = arith.constant 1.000000e+00 : f32
    %523 = vector.broadcast %cst_182 : f32 to vector<8x64xf32>
    %524 = arith.addf %523, %522 : vector<8x64xf32>
    %525 = arith.divf %523, %524 : vector<8x64xf32>
    %526 = vector.extract_strided_slice %525 {offsets = [0, 0], sizes = [8, 32], strides = [1, 1]} : vector<8x64xf32> to vector<8x32xf32>
    %527 = vector.extract_strided_slice %525 {offsets = [0, 32], sizes = [8, 32], strides = [1, 1]} : vector<8x64xf32> to vector<8x32xf32>
    %528 = vector.extract_strided_slice %514 {offsets = [0, 64], sizes = [8, 32], strides = [1, 1]} : vector<8x128xf32> to vector<8x32xf32>
    %529 = vector.extract_strided_slice %517 {offsets = [0, 64], sizes = [8, 32], strides = [1, 1]} : vector<8x128xf32> to vector<8x32xf32>
    %530 = arith.addf %529, %8 : vector<8x32xf32>
    %531 = arith.mulf %526, %530 : vector<8x32xf32>
    %532 = arith.addf %528, %531 : vector<8x32xf32>
    %533 = math.tanh %532 : vector<8x32xf32>
    %cst_183 = arith.constant 1.000000e+00 : f32
    %534 = vector.broadcast %cst_183 : f32 to vector<8x32xf32>
    %535 = arith.subf %534, %527 : vector<8x32xf32>
    %536 = arith.mulf %535, %533 : vector<8x32xf32>
    %537 = arith.mulf %527, %504 : vector<8x32xf32>
    %538 = arith.addf %536, %537 : vector<8x32xf32>
    %539 = arith.truncf %538 : vector<8x32xf32> to vector<8x32xbf16>
    %c0_184 = arith.constant 0 : index
    %c0_185 = arith.constant 0 : index
    %540 = vector.load %arg15[%c0_184, %c0_185] : memref<32x128xbf16, #tpu.memory_space<vmem>>, vector<32x128xbf16>
    %cst_186 = arith.constant dense<0.000000e+00> : vector<8x128xf32>
    %541 = tpu.matmul %539, %540, %cst_186 {dimension_numbers = #tpu.dot_dimension_numbers<[1], [0], [0], [1], [0, 0, 1, 1], [], []>} : vector<8x32xbf16>, vector<32x128xbf16>, vector<8x128xf32> -> vector<8x128xf32>
    %542 = arith.addf %541, %14 : vector<8x128xf32>
    %543 = vector.extract_strided_slice %542 {offsets = [0, 0], sizes = [8, 64], strides = [1, 1]} : vector<8x128xf32> to vector<8x64xf32>
    %544 = arith.negf %543 : vector<8x64xf32>
    %545 = math.exp %544 : vector<8x64xf32>
    %cst_187 = arith.constant 1.000000e+00 : f32
    %546 = vector.broadcast %cst_187 : f32 to vector<8x64xf32>
    %547 = arith.addf %546, %545 : vector<8x64xf32>
    %548 = arith.divf %546, %547 : vector<8x64xf32>
    %549 = vector.extract_strided_slice %542 {offsets = [0, 64], sizes = [8, 32], strides = [1, 1]} : vector<8x128xf32> to vector<8x32xf32>
    %550 = vector.extract_strided_slice %548 {offsets = [0, 0], sizes = [8, 32], strides = [1, 1]} : vector<8x64xf32> to vector<8x32xf32>
    %551 = vector.extract_strided_slice %542 {offsets = [0, 96], sizes = [8, 32], strides = [1, 1]} : vector<8x128xf32> to vector<8x32xf32>
    %552 = arith.mulf %550, %551 : vector<8x32xf32>
    %553 = arith.addf %549, %552 : vector<8x32xf32>
    %554 = math.tanh %553 : vector<8x32xf32>
    %555 = vector.extract_strided_slice %548 {offsets = [0, 32], sizes = [8, 32], strides = [1, 1]} : vector<8x64xf32> to vector<8x32xf32>
    %cst_188 = arith.constant 1.000000e+00 : f32
    %556 = vector.broadcast %cst_188 : f32 to vector<8x32xf32>
    %557 = arith.subf %556, %555 : vector<8x32xf32>
    %558 = arith.mulf %557, %554 : vector<8x32xf32>
    %559 = vector.extract_strided_slice %548 {offsets = [0, 32], sizes = [8, 32], strides = [1, 1]} : vector<8x64xf32> to vector<8x32xf32>
    %560 = arith.mulf %559, %538 : vector<8x32xf32>
    %561 = arith.addf %558, %560 : vector<8x32xf32>
    %c8_189 = arith.constant 8 : index
    %c0_190 = arith.constant 0 : index
    %562 = vector.load %arg25[%c8_189, %c0_190] : memref<32x32xf32, #tpu.memory_space<vmem>>, vector<8x32xf32>
    tpu.vector_store %arg25[%c8_189, %c0_190], %561 {strides = array<i32>} : memref<32x32xf32, #tpu.memory_space<vmem>>, vector<8x32xf32>,
    %563 = arith.truncf %561 : vector<8x32xf32> to vector<8x32xbf16>
    %c0_191 = arith.constant 0 : index
    %c0_192 = arith.constant 0 : index
    %564 = vector.load %arg17[%c0_191, %c0_192] : memref<32x32xbf16, #tpu.memory_space<vmem>>, vector<32x32xbf16>
    %cst_193 = arith.constant dense<0.000000e+00> : vector<8x32xf32>
    %565 = tpu.matmul %563, %564, %cst_193 {dimension_numbers = #tpu.dot_dimension_numbers<[1], [0], [0], [1], [0, 0, 1, 1], [], []>} : vector<8x32xbf16>, vector<32x32xbf16>, vector<8x32xf32> -> vector<8x32xf32>
    %566 = arith.addf %565, %17 : vector<8x32xf32>
    %567 = math.tanh %566 : vector<8x32xf32>
    %568 = arith.truncf %567 : vector<8x32xf32> to vector<8x32xbf16>
    %c0_194 = arith.constant 0 : index
    %c0_195 = arith.constant 0 : index
    %569 = vector.load %arg11[%c0_194, %c0_195] : memref<32x128xbf16, #tpu.memory_space<vmem>>, vector<32x128xbf16>
    %cst_196 = arith.constant dense<0.000000e+00> : vector<8x128xf32>
    %570 = tpu.matmul %568, %569, %cst_196 {dimension_numbers = #tpu.dot_dimension_numbers<[1], [0], [0], [1], [0, 0, 1, 1], [], []>} : vector<8x32xbf16>, vector<32x128xbf16>, vector<8x128xf32> -> vector<8x128xf32>
    %571 = arith.addf %570, %11 : vector<8x128xf32>
    %572 = arith.truncf %561 : vector<8x32xf32> to vector<8x32xbf16>
    %c0_197 = arith.constant 0 : index
    %c0_198 = arith.constant 0 : index
    %573 = vector.load %arg12[%c0_197, %c0_198] : memref<32x128xbf16, #tpu.memory_space<vmem>>, vector<32x128xbf16>
    %cst_199 = arith.constant dense<0.000000e+00> : vector<8x128xf32>
    %574 = tpu.matmul %572, %573, %cst_199 {dimension_numbers = #tpu.dot_dimension_numbers<[1], [0], [0], [1], [0, 0, 1, 1], [], []>} : vector<8x32xbf16>, vector<32x128xbf16>, vector<8x128xf32> -> vector<8x128xf32>
    %575 = vector.extract_strided_slice %571 {offsets = [0, 0], sizes = [8, 64], strides = [1, 1]} : vector<8x128xf32> to vector<8x64xf32>
    %576 = vector.extract_strided_slice %574 {offsets = [0, 0], sizes = [8, 64], strides = [1, 1]} : vector<8x128xf32> to vector<8x64xf32>
    %577 = arith.addf %575, %576 : vector<8x64xf32>
    %578 = arith.negf %577 : vector<8x64xf32>
    %579 = math.exp %578 : vector<8x64xf32>
    %cst_200 = arith.constant 1.000000e+00 : f32
    %580 = vector.broadcast %cst_200 : f32 to vector<8x64xf32>
    %581 = arith.addf %580, %579 : vector<8x64xf32>
    %582 = arith.divf %580, %581 : vector<8x64xf32>
    %583 = vector.extract_strided_slice %582 {offsets = [0, 0], sizes = [8, 32], strides = [1, 1]} : vector<8x64xf32> to vector<8x32xf32>
    %584 = vector.extract_strided_slice %582 {offsets = [0, 32], sizes = [8, 32], strides = [1, 1]} : vector<8x64xf32> to vector<8x32xf32>
    %585 = vector.extract_strided_slice %571 {offsets = [0, 64], sizes = [8, 32], strides = [1, 1]} : vector<8x128xf32> to vector<8x32xf32>
    %586 = vector.extract_strided_slice %574 {offsets = [0, 64], sizes = [8, 32], strides = [1, 1]} : vector<8x128xf32> to vector<8x32xf32>
    %587 = arith.addf %586, %8 : vector<8x32xf32>
    %588 = arith.mulf %583, %587 : vector<8x32xf32>
    %589 = arith.addf %585, %588 : vector<8x32xf32>
    %590 = math.tanh %589 : vector<8x32xf32>
    %cst_201 = arith.constant 1.000000e+00 : f32
    %591 = vector.broadcast %cst_201 : f32 to vector<8x32xf32>
    %592 = arith.subf %591, %584 : vector<8x32xf32>
    %593 = arith.mulf %592, %590 : vector<8x32xf32>
    %594 = arith.mulf %584, %561 : vector<8x32xf32>
    %595 = arith.addf %593, %594 : vector<8x32xf32>
    %596 = arith.truncf %595 : vector<8x32xf32> to vector<8x32xbf16>
    %c0_202 = arith.constant 0 : index
    %c0_203 = arith.constant 0 : index
    %597 = vector.load %arg15[%c0_202, %c0_203] : memref<32x128xbf16, #tpu.memory_space<vmem>>, vector<32x128xbf16>
    %cst_204 = arith.constant dense<0.000000e+00> : vector<8x128xf32>
    %598 = tpu.matmul %596, %597, %cst_204 {dimension_numbers = #tpu.dot_dimension_numbers<[1], [0], [0], [1], [0, 0, 1, 1], [], []>} : vector<8x32xbf16>, vector<32x128xbf16>, vector<8x128xf32> -> vector<8x128xf32>
    %599 = arith.addf %598, %14 : vector<8x128xf32>
    %600 = vector.extract_strided_slice %599 {offsets = [0, 0], sizes = [8, 64], strides = [1, 1]} : vector<8x128xf32> to vector<8x64xf32>
    %601 = arith.negf %600 : vector<8x64xf32>
    %602 = math.exp %601 : vector<8x64xf32>
    %cst_205 = arith.constant 1.000000e+00 : f32
    %603 = vector.broadcast %cst_205 : f32 to vector<8x64xf32>
    %604 = arith.addf %603, %602 : vector<8x64xf32>
    %605 = arith.divf %603, %604 : vector<8x64xf32>
    %606 = vector.extract_strided_slice %599 {offsets = [0, 64], sizes = [8, 32], strides = [1, 1]} : vector<8x128xf32> to vector<8x32xf32>
    %607 = vector.extract_strided_slice %605 {offsets = [0, 0], sizes = [8, 32], strides = [1, 1]} : vector<8x64xf32> to vector<8x32xf32>
    %608 = vector.extract_strided_slice %599 {offsets = [0, 96], sizes = [8, 32], strides = [1, 1]} : vector<8x128xf32> to vector<8x32xf32>
    %609 = arith.mulf %607, %608 : vector<8x32xf32>
    %610 = arith.addf %606, %609 : vector<8x32xf32>
    %611 = math.tanh %610 : vector<8x32xf32>
    %612 = vector.extract_strided_slice %605 {offsets = [0, 32], sizes = [8, 32], strides = [1, 1]} : vector<8x64xf32> to vector<8x32xf32>
    %cst_206 = arith.constant 1.000000e+00 : f32
    %613 = vector.broadcast %cst_206 : f32 to vector<8x32xf32>
    %614 = arith.subf %613, %612 : vector<8x32xf32>
    %615 = arith.mulf %614, %611 : vector<8x32xf32>
    %616 = vector.extract_strided_slice %605 {offsets = [0, 32], sizes = [8, 32], strides = [1, 1]} : vector<8x64xf32> to vector<8x32xf32>
    %617 = arith.mulf %616, %595 : vector<8x32xf32>
    %618 = arith.addf %615, %617 : vector<8x32xf32>
    %c16_207 = arith.constant 16 : index
    %c0_208 = arith.constant 0 : index
    %619 = vector.load %arg25[%c16_207, %c0_208] : memref<32x32xf32, #tpu.memory_space<vmem>>, vector<8x32xf32>
    tpu.vector_store %arg25[%c16_207, %c0_208], %618 {strides = array<i32>} : memref<32x32xf32, #tpu.memory_space<vmem>>, vector<8x32xf32>,
    %620 = arith.truncf %618 : vector<8x32xf32> to vector<8x32xbf16>
    %c0_209 = arith.constant 0 : index
    %c0_210 = arith.constant 0 : index
    %621 = vector.load %arg17[%c0_209, %c0_210] : memref<32x32xbf16, #tpu.memory_space<vmem>>, vector<32x32xbf16>
    %cst_211 = arith.constant dense<0.000000e+00> : vector<8x32xf32>
    %622 = tpu.matmul %620, %621, %cst_211 {dimension_numbers = #tpu.dot_dimension_numbers<[1], [0], [0], [1], [0, 0, 1, 1], [], []>} : vector<8x32xbf16>, vector<32x32xbf16>, vector<8x32xf32> -> vector<8x32xf32>
    %623 = arith.addf %622, %17 : vector<8x32xf32>
    %624 = math.tanh %623 : vector<8x32xf32>
    %625 = arith.truncf %624 : vector<8x32xf32> to vector<8x32xbf16>
    %c0_212 = arith.constant 0 : index
    %c0_213 = arith.constant 0 : index
    %626 = vector.load %arg11[%c0_212, %c0_213] : memref<32x128xbf16, #tpu.memory_space<vmem>>, vector<32x128xbf16>
    %cst_214 = arith.constant dense<0.000000e+00> : vector<8x128xf32>
    %627 = tpu.matmul %625, %626, %cst_214 {dimension_numbers = #tpu.dot_dimension_numbers<[1], [0], [0], [1], [0, 0, 1, 1], [], []>} : vector<8x32xbf16>, vector<32x128xbf16>, vector<8x128xf32> -> vector<8x128xf32>
    %628 = arith.addf %627, %11 : vector<8x128xf32>
    %629 = arith.truncf %618 : vector<8x32xf32> to vector<8x32xbf16>
    %c0_215 = arith.constant 0 : index
    %c0_216 = arith.constant 0 : index
    %630 = vector.load %arg12[%c0_215, %c0_216] : memref<32x128xbf16, #tpu.memory_space<vmem>>, vector<32x128xbf16>
    %cst_217 = arith.constant dense<0.000000e+00> : vector<8x128xf32>
    %631 = tpu.matmul %629, %630, %cst_217 {dimension_numbers = #tpu.dot_dimension_numbers<[1], [0], [0], [1], [0, 0, 1, 1], [], []>} : vector<8x32xbf16>, vector<32x128xbf16>, vector<8x128xf32> -> vector<8x128xf32>
    %632 = vector.extract_strided_slice %628 {offsets = [0, 0], sizes = [8, 64], strides = [1, 1]} : vector<8x128xf32> to vector<8x64xf32>
    %633 = vector.extract_strided_slice %631 {offsets = [0, 0], sizes = [8, 64], strides = [1, 1]} : vector<8x128xf32> to vector<8x64xf32>
    %634 = arith.addf %632, %633 : vector<8x64xf32>
    %635 = arith.negf %634 : vector<8x64xf32>
    %636 = math.exp %635 : vector<8x64xf32>
    %cst_218 = arith.constant 1.000000e+00 : f32
    %637 = vector.broadcast %cst_218 : f32 to vector<8x64xf32>
    %638 = arith.addf %637, %636 : vector<8x64xf32>
    %639 = arith.divf %637, %638 : vector<8x64xf32>
    %640 = vector.extract_strided_slice %639 {offsets = [0, 0], sizes = [8, 32], strides = [1, 1]} : vector<8x64xf32> to vector<8x32xf32>
    %641 = vector.extract_strided_slice %639 {offsets = [0, 32], sizes = [8, 32], strides = [1, 1]} : vector<8x64xf32> to vector<8x32xf32>
    %642 = vector.extract_strided_slice %628 {offsets = [0, 64], sizes = [8, 32], strides = [1, 1]} : vector<8x128xf32> to vector<8x32xf32>
    %643 = vector.extract_strided_slice %631 {offsets = [0, 64], sizes = [8, 32], strides = [1, 1]} : vector<8x128xf32> to vector<8x32xf32>
    %644 = arith.addf %643, %8 : vector<8x32xf32>
    %645 = arith.mulf %640, %644 : vector<8x32xf32>
    %646 = arith.addf %642, %645 : vector<8x32xf32>
    %647 = math.tanh %646 : vector<8x32xf32>
    %cst_219 = arith.constant 1.000000e+00 : f32
    %648 = vector.broadcast %cst_219 : f32 to vector<8x32xf32>
    %649 = arith.subf %648, %641 : vector<8x32xf32>
    %650 = arith.mulf %649, %647 : vector<8x32xf32>
    %651 = arith.mulf %641, %618 : vector<8x32xf32>
    %652 = arith.addf %650, %651 : vector<8x32xf32>
    %653 = arith.truncf %652 : vector<8x32xf32> to vector<8x32xbf16>
    %c0_220 = arith.constant 0 : index
    %c0_221 = arith.constant 0 : index
    %654 = vector.load %arg15[%c0_220, %c0_221] : memref<32x128xbf16, #tpu.memory_space<vmem>>, vector<32x128xbf16>
    %cst_222 = arith.constant dense<0.000000e+00> : vector<8x128xf32>
    %655 = tpu.matmul %653, %654, %cst_222 {dimension_numbers = #tpu.dot_dimension_numbers<[1], [0], [0], [1], [0, 0, 1, 1], [], []>} : vector<8x32xbf16>, vector<32x128xbf16>, vector<8x128xf32> -> vector<8x128xf32>
    %656 = arith.addf %655, %14 : vector<8x128xf32>
    %657 = vector.extract_strided_slice %656 {offsets = [0, 0], sizes = [8, 64], strides = [1, 1]} : vector<8x128xf32> to vector<8x64xf32>
    %658 = arith.negf %657 : vector<8x64xf32>
    %659 = math.exp %658 : vector<8x64xf32>
    %cst_223 = arith.constant 1.000000e+00 : f32
    %660 = vector.broadcast %cst_223 : f32 to vector<8x64xf32>
    %661 = arith.addf %660, %659 : vector<8x64xf32>
    %662 = arith.divf %660, %661 : vector<8x64xf32>
    %663 = vector.extract_strided_slice %656 {offsets = [0, 64], sizes = [8, 32], strides = [1, 1]} : vector<8x128xf32> to vector<8x32xf32>
    %664 = vector.extract_strided_slice %662 {offsets = [0, 0], sizes = [8, 32], strides = [1, 1]} : vector<8x64xf32> to vector<8x32xf32>
    %665 = vector.extract_strided_slice %656 {offsets = [0, 96], sizes = [8, 32], strides = [1, 1]} : vector<8x128xf32> to vector<8x32xf32>
    %666 = arith.mulf %664, %665 : vector<8x32xf32>
    %667 = arith.addf %663, %666 : vector<8x32xf32>
    %668 = math.tanh %667 : vector<8x32xf32>
    %669 = vector.extract_strided_slice %662 {offsets = [0, 32], sizes = [8, 32], strides = [1, 1]} : vector<8x64xf32> to vector<8x32xf32>
    %cst_224 = arith.constant 1.000000e+00 : f32
    %670 = vector.broadcast %cst_224 : f32 to vector<8x32xf32>
    %671 = arith.subf %670, %669 : vector<8x32xf32>
    %672 = arith.mulf %671, %668 : vector<8x32xf32>
    %673 = vector.extract_strided_slice %662 {offsets = [0, 32], sizes = [8, 32], strides = [1, 1]} : vector<8x64xf32> to vector<8x32xf32>
    %674 = arith.mulf %673, %652 : vector<8x32xf32>
    %675 = arith.addf %672, %674 : vector<8x32xf32>
    %c24_225 = arith.constant 24 : index
    %c0_226 = arith.constant 0 : index
    %676 = vector.load %arg25[%c24_225, %c0_226] : memref<32x32xf32, #tpu.memory_space<vmem>>, vector<8x32xf32>
    tpu.vector_store %arg25[%c24_225, %c0_226], %675 {strides = array<i32>} : memref<32x32xf32, #tpu.memory_space<vmem>>, vector<8x32xf32>,
    %c0_227 = arith.constant 0 : index
    %c0_228 = arith.constant 0 : index
    %677 = vector.load %arg25[%c0_227, %c0_228] : memref<32x32xf32, #tpu.memory_space<vmem>>, vector<32x32xf32>
    %c0_229 = arith.constant 0 : index
    %c0_230 = arith.constant 0 : index
    %678 = vector.load %arg19[%c0_229, %c0_230] : memref<32x128xf32, #tpu.memory_space<vmem>>, vector<32x128xf32>
    %cst_231 = arith.constant dense<0.000000e+00> : vector<32x128xf32>
    %679 = tpu.matmul %677, %678, %cst_231 {dimension_numbers = #tpu.dot_dimension_numbers<[1], [0], [0], [1], [0, 0, 1, 1], [], []>} : vector<32x32xf32>, vector<32x128xf32>, vector<32x128xf32> -> vector<32x128xf32>
    %c0_232 = arith.constant 0 : index
    %c0_233 = arith.constant 0 : index
    %680 = vector.load %arg20[%c0_232, %c0_233] : memref<1x128xf32, #tpu.memory_space<vmem>>, vector<1x128xf32>
    %681 = vector.broadcast %680 : vector<1x128xf32> to vector<32x128xf32>
    %682 = arith.addf %679, %681 : vector<32x128xf32>
    %c0_234 = arith.constant 0 : index
    %c0_235 = arith.constant 0 : index
    %683 = vector.load %arg21[%c0_234, %c0_235] : memref<32x128xf32, #tpu.memory_space<vmem>>, vector<32x128xf32>
    tpu.vector_store %arg21[%c0_234, %c0_235], %682 {strides = array<i32>} : memref<32x128xf32, #tpu.memory_space<vmem>>, vector<32x128xf32>,
    return
  }
}

</mosaic_0001>

<bundles_post_ra>
// kernel: baseline_enc_dec_forward.1
= control target key start
LH: loop header
LB: loop body
LE: loop exit
PB: predicated region body
PF: predicated region fallthrough
CT: control target
= control target key end

     0   :  { %s5190_s0 = inlined_call_operand.vmem [shape: bf16[64,128], index: 0, kind: input, shape index: {}]   ;;  %s5191_s1 = inlined_call_operand.vmem [shape: bf16[128,32], index: 1, kind: input, shape index: {}]   ;;  %s5192_s2 = inlined_call_operand.vmem [shape: f32[1,32], index: 2, kind: input, shape index: {}]   ;;  %s5193_s3 = inlined_call_operand.vmem [shape: bf16[32,128], index: 3, kind: input, shape index: {}]   ;;  %s5194_s4 = inlined_call_operand.vmem [shape: bf16[32,128], index: 4, kind: input, shape index: {}]   ;;  %s5195_s5 = inlined_call_operand.hbm [shape: f32[1,128], index: 5, kind: input, shape index: {}]   ;;  %s5196_s6 = inlined_call_operand.vmem [shape: f32[1,32], index: 6, kind: input, shape index: {}]   ;;  %s5197_s7 = inlined_call_operand.vmem [shape: bf16[32,128], index: 7, kind: input, shape index: {}]   ;;  %s5198_s8 = inlined_call_operand.vmem [shape: bf16[32,128], index: 8, kind: input, shape index: {}]   ;;  %s5199_s9 = inlined_call_operand.vmem [shape: f32[1,128], index: 9, kind: input, shape index: {}]   ;;  %s5200_s10 = inlined_call_operand.vmem [shape: f32[1,32], index: 10, kind: input, shape index: {}]   ;;  %s5201_s11 = inlined_call_operand.vmem [shape: bf16[32,128], index: 11, kind: input, shape index: {}]   ;;  %s5202_s12 = inlined_call_operand.vmem [shape: bf16[32,128], index: 12, kind: input, shape index: {}]   ;;  %s5203_s13 = inlined_call_operand.hbm [shape: f32[1,128], index: 13, kind: input, shape index: {}]   ;;  %s5204_s14 = inlined_call_operand.hbm [shape: f32[1,32], index: 14, kind: input, shape index: {}]   ;;  %s5205_s15 = inlined_call_operand.vmem [shape: bf16[32,128], index: 15, kind: input, shape index: {}]   ;;  %s5206_s16 = inlined_call_operand.hbm [shape: f32[1,128], index: 16, kind: input, shape index: {}]   ;;  %s5207_s17 = inlined_call_operand.vmem [shape: bf16[32,32], index: 17, kind: input, shape index: {}]   ;;  %s5208_s18 = inlined_call_operand.hbm [shape: f32[1,32], index: 18, kind: input, shape index: {}]   ;;  %s5209_s19 = inlined_call_operand.vmem [shape: f32[32,128], index: 19, kind: input, shape index: {}]   ;;  %s5210_s20 = inlined_call_operand.hbm [shape: f32[1,128], index: 20, kind: input, shape index: {}]   ;;  %s5211_s21 = inlined_call_operand.vmem [shape: f32[32,128], index: 21, kind: output, shape index: {}]  }
   0x1   :  { %5217 = sst [smem:[#allocation20_spill]] %s5190_s0 }
   0x2   :  { %5218 = sst [smem:[#allocation21_spill]] %s5191_s1 }
   0x3   :  { %5219 = sst [smem:[#allocation22_spill]] %s5192_s2 }
   0x4   :  { %5220 = sst [smem:[#allocation23_spill]] %s5193_s3 }
   0x5   :  { %5221 = sst [smem:[#allocation24_spill]] %s5194_s4 }
   0x6   :  { %5222 = sst [smem:[#allocation25_spill]] %s5195_s5 }
   0x7   :  { %26 = vsyncpa [#allocation7], 0 }
   0x8   :  { %27 = vsyncpa [#allocation9], 0 }
   0x9   :  { %28 = vsyncpa [#allocation12], 0 }
   0xa   :  { %29 = vsyncpa [#allocation15], 0  ;;  %s4283_s2 = smov [#allocation8]   ;;  %s4284_s26 = smov [#allocation11]  }
   0xb   :  { %s70_s25 = sshll.u32 %s4283_s2, 4  ;;  %s92_s27 = sshll.u32 %s4284_s26, 4  ;;  %s71_s25 = int_to_ptr.vmem [resolvable:$true] %s70_s25  ;;  %s93_s27 = int_to_ptr.vmem [resolvable:$true] %s92_s27 }
   0xc   :  { %s4143_s29 = scalar_lea.hbm %s5203_s13, 16 }
   0xd   :  { %p4144_p0 = scmp.ne.s32.totalorder %s5203_s13, %s4143_s29  ;;  %p4147_p1 = scmp.lt.u32.totalorder %s4143_s29, %s5203_s13 }
   0xf   :  { %p4149_p2 = pnand %p4147_p1, %p4144_p0 }
  0x11   :  { %4152 = shalt.err (!%p4149_p2)
}
  0x12   :  { %s4153_s22 = scalar_lea.vmem %s71_s25, 16  ;;  %s4157_s23 = scalar_lea.vmem %s71_s25, 32 }
  0x13   :  { %p4154_p3 = scmp.ne.s32.totalorder %s71_s25, %s4153_s22  ;;  %p4158_p4 = scmp.lt.s32.totalorder %s71_s25, %s71_s25 }
  0x14   :  { %p4159_p5 = scmp.lt.s32.totalorder %s4157_s23, %s4153_s22 }
  0x16   :  { %p4160_p6 = por %p4159_p5, %p4158_p4 }
  0x18   :  { %p4161_p7 = pnand %p4160_p6, %p4154_p3 }
  0x1a   :  { %4164 = shalt.err (!%p4161_p7)
}
  0x1b   :  { %73 = dma.hbm_to_vmem [thread:$0]  %s5203_s13, 16, %s71_s25, [#allocation9]  }
  0x1c   :  { %s4165_s3 = scalar_lea.hbm %s5206_s16, 16 }
  0x1d   :  { %p4166_p8 = scmp.ne.s32.totalorder %s5206_s16, %s4165_s3  ;;  %p4169_p9 = scmp.lt.u32.totalorder %s4165_s3, %s5206_s16 }
  0x1f   :  { %p4171_p10 = pnand %p4169_p9, %p4166_p8 }
  0x21   :  { %4174 = shalt.err (!%p4171_p10)
}
  0x22   :  { %s4175_s30 = scalar_lea.vmem %s93_s27, 16  ;;  %s4179_s5 = scalar_lea.vmem %s93_s27, 32 }
  0x23   :  { %p4176_p11 = scmp.ne.s32.totalorder %s93_s27, %s4175_s30  ;;  %p4180_p12 = scmp.lt.s32.totalorder %s93_s27, %s93_s27 }
  0x24   :  { %p4181_p13 = scmp.lt.s32.totalorder %s4179_s5, %s4175_s30 }
  0x26   :  { %p4182_p0 = por %p4181_p13, %p4180_p12 }
  0x28   :  { %p4183_p1 = pnand %p4182_p0, %p4176_p11 }
  0x2a   :  { %4186 = shalt.err (!%p4183_p1)
}
  0x2b   :  { %95 = dma.hbm_to_vmem [thread:$0]  %s5206_s16, 16, %s93_s27, [#allocation12]  }
  0x2c   :  { %s4285_s22 = smov [#allocation6]   ;;  %s4286_s1 = smov [#allocation10]  }
  0x2d   :  { %s46_s23 = sshll.u32 %s4285_s22, 4  ;;  %s80_s24 = sshll.u32 %s4286_s1, 4  ;;  %s47_s23 = int_to_ptr.vmem [resolvable:$true] %s46_s23  ;;  %s81_s24 = int_to_ptr.vmem [resolvable:$true] %s80_s24 }
  0x2e   :  { %s5223_s3 = sld [smem:[#allocation25_spill]] }
  0x34   :  { %s4187_s28 = scalar_lea.hbm %s5223_s3, 16 }
  0x35   :  { %p4188_p2 = scmp.ne.s32.totalorder %s5223_s3, %s4187_s28  ;;  %p4191_p3 = scmp.lt.u32.totalorder %s4187_s28, %s5223_s3 }
  0x37   :  { %p4193_p4 = pnand %p4191_p3, %p4188_p2 }
  0x39   :  { %4196 = shalt.err (!%p4193_p4)
}
  0x3a   :  { %s4197_s16 = scalar_lea.vmem %s47_s23, 16  ;;  %s4201_s27 = scalar_lea.vmem %s47_s23, 32 }
  0x3b   :  { %p4198_p5 = scmp.ne.s32.totalorder %s47_s23, %s4197_s16  ;;  %p4202_p6 = scmp.lt.s32.totalorder %s47_s23, %s47_s23 }
  0x3c   :  { %p4203_p7 = scmp.lt.s32.totalorder %s4201_s27, %s4197_s16 }
  0x3e   :  { %p4204_p8 = por %p4203_p7, %p4202_p6 }
  0x40   :  { %p4205_p9 = pnand %p4204_p8, %p4198_p5 }
  0x42   :  { %4208 = shalt.err (!%p4205_p9)
}
  0x43   :  { %49 = dma.hbm_to_vmem [thread:$0]  %s5223_s3, 16, %s47_s23, [#allocation7]  }
  0x44   :  { %s4209_s1 = scalar_lea.hbm %s5204_s14, 16 }
  0x45   :  { %p4210_p10 = scmp.ne.s32.totalorder %s5204_s14, %s4209_s1  ;;  %p4213_p11 = scmp.lt.u32.totalorder %s4209_s1, %s5204_s14 }
  0x47   :  { %p4215_p12 = pnand %p4213_p11, %p4210_p10 }
  0x49   :  { %4218 = shalt.err (!%p4215_p12)
}
  0x4a   :  { %s4219_s0 = scalar_lea.vmem %s81_s24, 16  ;;  %s4223_s4 = scalar_lea.vmem %s81_s24, 32 }
  0x4b   :  { %p4220_p13 = scmp.ne.s32.totalorder %s81_s24, %s4219_s0  ;;  %p4224_p0 = scmp.lt.s32.totalorder %s81_s24, %s81_s24 }
  0x4c   :  { %p4225_p1 = scmp.lt.s32.totalorder %s4223_s4, %s4219_s0 }
  0x4e   :  { %p4226_p2 = por %p4225_p1, %p4224_p0 }
  0x50   :  { %p4227_p3 = pnand %p4226_p2, %p4220_p13 }
  0x52   :  { %4230 = shalt.err (!%p4227_p3)
}
  0x53   :  { %83 = dma.hbm_to_vmem [thread:$0]  %s5204_s14, 16, %s81_s24, [#allocation9]  }
  0x54   :  { %s4287_s30 = smov [#allocation13]   ;;  %s4288_s27 = smov [#allocation14]  }
  0x55   :  { %s104_s16 = sshll.u32 %s4287_s30, 4  ;;  %s116_s5 = sshll.u32 %s4288_s27, 4  ;;  %s105_s16 = int_to_ptr.vmem [resolvable:$true] %s104_s16  ;;  %s117_s5 = int_to_ptr.vmem [resolvable:$true] %s116_s5 }
  0x56   :  { %s4231_s22 = scalar_lea.hbm %s5208_s18, 16 }
  0x57   :  { %p4232_p4 = scmp.ne.s32.totalorder %s5208_s18, %s4231_s22  ;;  %p4235_p5 = scmp.lt.u32.totalorder %s4231_s22, %s5208_s18 }
  0x59   :  { %p4237_p6 = pnand %p4235_p5, %p4232_p4 }
  0x5b   :  { %4240 = shalt.err (!%p4237_p6)
}
  0x5c   :  { %s4241_s14 = scalar_lea.vmem %s105_s16, 16  ;;  %s4245_s24 = scalar_lea.vmem %s105_s16, 32 }
  0x5d   :  { %p4242_p7 = scmp.ne.s32.totalorder %s105_s16, %s4241_s14  ;;  %p4246_p8 = scmp.lt.s32.totalorder %s105_s16, %s105_s16 }
  0x5e   :  { %p4247_p9 = scmp.lt.s32.totalorder %s4245_s24, %s4241_s14 }
  0x60   :  { %p4248_p10 = por %p4247_p9, %p4246_p8 }
  0x62   :  { %p4249_p11 = pnand %p4248_p10, %p4242_p7 }
  0x64   :  { %4252 = shalt.err (!%p4249_p11)
}
  0x65   :  { %107 = dma.hbm_to_vmem [thread:$0]  %s5208_s18, 16, %s105_s16, [#allocation12]  }
  0x66   :  { %s4253_s3 = scalar_lea.hbm %s5210_s20, 16 }
  0x67   :  { %p4254_p12 = scmp.ne.s32.totalorder %s5210_s20, %s4253_s3  ;;  %p4257_p13 = scmp.lt.u32.totalorder %s4253_s3, %s5210_s20 }
  0x69   :  { %p4259_p0 = pnand %p4257_p13, %p4254_p12 }
  0x6b   :  { %4262 = shalt.err (!%p4259_p0)
}
  0x6c   :  { %s4263_s22 = scalar_lea.vmem %s117_s5, 16  ;;  %s4267_s1 = scalar_lea.vmem %s117_s5, 32 }
  0x6d   :  { %p4264_p1 = scmp.ne.s32.totalorder %s117_s5, %s4263_s22  ;;  %p4268_p2 = scmp.lt.s32.totalorder %s117_s5, %s117_s5 }
  0x6e   :  { %p4269_p3 = scmp.lt.s32.totalorder %s4267_s1, %s4263_s22 }
  0x70   :  { %p4270_p4 = por %p4269_p3, %p4268_p2 }
  0x72   :  { %p4271_p5 = pnand %p4270_p4, %p4264_p1 }
  0x74   :  { %4274 = shalt.err (!%p4271_p5)
}
  0x75   :  { %119 = dma.hbm_to_vmem [thread:$0]  %s5210_s20, 16, %s117_s5, [#allocation15]  }
  0x76   :  { %4275 = dma.done.wait [#allocation7], 16  }
  0x77   :  { %4276 = vsyncadd [#allocation7], 4294967280 }
  0x78   :  { %4277 = dma.done.wait [#allocation9], 32  }
  0x79   :  { %4278 = vsyncadd [#allocation9], 4294967264 }
  0x7a   :  { %4279 = dma.done.wait [#allocation12], 32  }
  0x7b   :  { %4280 = vsyncadd [#allocation12], 4294967264 }
  0x7c   :  { %4281 = dma.done.wait [#allocation15], 16  }
  0x7d   :  { %4282 = vsyncadd [#allocation15], 4294967280  ;;  %s5224_s28 = sld [smem:[#allocation21_spill]]  ;;  %s5225_s3 = sld [smem:[#allocation20_spill]]  ;;  %v4289_v14 = vmov 0.0   ;;  %vm4290_vm0 = vmmov 0  }
  0x7e   :  { %s5226_s0 = sld [smem:[#allocation23_spill]]  ;;  %v3300_v15 = vld [vmem:[%s5196_s6] ss:$0 sm:$0xff]  ;;  %s4291_s27 = smov 64   ;;  %vm381_vm1 = vcmask 261120   ;;  %v4292_v47 = vmov 0  }
  0x7f   :  { %534 = vrot.lane.b32.xlu0 %v3300_v15, %s4291_s27  ;;  %s5227_s22 = sld [smem:[#allocation22_spill]]  ;;  %s5228_s18 = sld [smem:[#allocation24_spill]]  ;;  %v3319_v48 = vld [vmem:[#allocation6] ss:$0 sm:$0xff] }
  0x80   :  { %s4293_s5 = smov 96  }
  0x83   :  { %v3909_v0 = vld [vmem:[%s5224_s28] sm:$0xff]   ;;  %v3910_v1 = vld [vmem:[%s5224_s28 + $0x8] sm:$0xff]   ;;  %v3911_v2 = vld [vmem:[%s5224_s28 + $0x10] sm:$0xff]  }
  0x84   :  { %3571 = vmatprep.subr.bf16.mxu0 %v3909_v0  ;;  %v3912_v3 = vld [vmem:[%s5224_s28 + $0x18] sm:$0xff]   ;;  %v3917_v4 = vld [vmem:[%s5225_s3] sm:$0xff]   ;;  %v3914_v6 = vld [vmem:[%s5224_s28 + $0x28] sm:$0xff]  }
  0x85   :  { %3572 = vmatpush3.bf16.msra.mxu0 %v3909_v0  ;;  %3587 = vmatprep.mubr.bf16.mxu0 %v3917_v4  ;;  %v3913_v5 = vld [vmem:[%s5224_s28 + $0x20] sm:$0xff]   ;;  %v3915_v7 = vld [vmem:[%s5224_s28 + $0x30] sm:$0xff]   ;;  %v3916_v8 = vld [vmem:[%s5224_s28 + $0x38] sm:$0xff]  }
  0x86   :  { %3573 = vmatprep.subr.bf16.mxu0 %v3910_v1  ;;  %v3918_v9 = vld [vmem:[%s5225_s3 + $0x8] sm:$0xff]   ;;  %v3919_v10 = vld [vmem:[%s5225_s3 + $0x10] sm:$0xff]   ;;  %v3920_v11 = vld [vmem:[%s5225_s3 + $0x18] sm:$0xff]  }
  0x87   :  { %v3921_v12 = vld [vmem:[%s5226_s0] sm:$0xff]   ;;  %v3922_v13 = vld [vmem:[%s5226_s0 + $0x8] sm:$0xff]  }
  0x88   :  { %3595 = vmatprep.subr.bf16.mxu1 %v3921_v12  ;;  %v3306_v16 = vld [vmem:[%s5227_s22] ss:$0 sm:$0xff]  ;;  %v3924_v41 = vld [vmem:[%s5228_s18 + $0x8] sm:$0xff]  }
  0x89   :  { %3574 = vmatpush3.bf16.msra.mxu0 %v3910_v1  ;;  %3596 = vmatpush3.bf16.msra.mxu1 %v3921_v12  ;;  %v3923_v39 = vld [vmem:[%s5228_s18] sm:$0xff]  }
  0x8a   :  { %3575 = vmatprep.subr.bf16.mxu0 %v3911_v2  ;;  %3597 = vmatprep.subr.bf16.mxu1 %v3922_v13 }
  0x8d   :  { %3576 = vmatpush3.bf16.msra.mxu0 %v3911_v2  ;;  %3598 = vmatpush3.bf16.msra.mxu1 %v3922_v13 }
  0x8e   :  { %3577 = vmatprep.subr.bf16.mxu0 %v3912_v3  ;;  %3607 = vmatprep.subr.bf16.mxu1 %v4289_v14 }
  0x91   :  { %3578 = vmatpush3.bf16.msra.mxu0 %v3912_v3 }
  0x92   :  { %3579 = vmatprep.subr.bf16.mxu0 %v3913_v5 }
  0x95   :  { %3580 = vmatpush3.bf16.msra.mxu0 %v3913_v5 }
  0x96   :  { %3581 = vmatprep.subr.bf16.mxu0 %v3914_v6 }
  0x99   :  { %3582 = vmatpush3.bf16.msra.mxu0 %v3914_v6 }
  0x9a   :  { %3583 = vmatprep.subr.bf16.mxu0 %v3915_v7 }
  0x9d   :  { %3584 = vmatpush3.bf16.msra.mxu0 %v3915_v7 }
  0x9e   :  { %3585 = vmatprep.subr.bf16.mxu0 %v3916_v8 }
  0xa1   :  { %3586 = vmatpush3.bf16.msra.mxu0 %v3916_v8 }
  0xa2   :  { %3631 = vmatprep.subr.bf16.mxu0 %v4289_v14 }
  0xa4   :  { %3588 = vmatmul.mubr.bf16.vlgmr.msra.gmra.mrb[0].mxu0 %v3918_v9 }
  0xa5   :  { %3591 = vmatprep.mubr.bf16.mxu0 %v3919_v10 }
  0xac   :  { %3592 = vmatmul.mubr.bf16.gmra.mrb[4].mxu0 %v3920_v11 }
  0xad   :  { %3635 = vmatprep.mubr.msk.bf16.mxu0 %vm4290_vm0, %v4289_v14 }
  0xf1   :  { %v4560_v0 = vpop.permute.xlu0 %534 }
 0x177   :  { %v3589_v17 = vpop.f32.mrb[0].mxu0 }
 0x178   :  { %v324_v18 = vadd.f32 %v3589_v17, %v3306_v16  ;;  %v315_v19 = vpop.f32.mrb[1].mxu0  ;;  %v3925_v17 = vld [vmem:[%s5228_s18] sm:$0xff]  }
 0x179   :  { %v316_v20 = vadd.f32 %v3306_v16, %v315_v19  ;;  %v3590_v21 = vpop.f32.mrb[2].mxu0 }
 0x17a   :  { %3975 = vtanh.f32 %v324_v18  ;;  %v327_v22 = vadd.f32 %v3590_v21, %v3306_v16  ;;  %v318_v23 = vpop.f32.mrb[3].mxu0  ;;  %v3926_v18 = vld [vmem:[%s5228_s18 + $0x8] sm:$0xff]  }
 0x17b   :  { %3977 = vtanh.f32 %v316_v20  ;;  %v319_v24 = vadd.f32 %v3306_v16, %v318_v23 }
 0x17c   :  { %3979 = vtanh.f32 %v327_v22 }
 0x17d   :  { %3981 = vtanh.f32 %v319_v24 }
 0x17f   :  { %v3593_v25 = vpop.f32.mrb[4].mxu0 }
 0x180   :  { %v340_v26 = vadd.f32 %v3593_v25, %v3306_v16  ;;  %v331_v27 = vpop.f32.mrb[5].mxu0 }
 0x181   :  { %v332_v28 = vadd.f32 %v3306_v16, %v331_v27  ;;  %v3594_v29 = vpop.f32.mrb[6].mxu0 }
 0x182   :  { %3983 = vtanh.f32 %v340_v26  ;;  %v343_v30 = vadd.f32 %v3594_v29, %v3306_v16  ;;  %v334_v31 = vpop.f32.mrb[7].mxu0 }
 0x183   :  { %3985 = vtanh.f32 %v332_v28  ;;  %v335_v32 = vadd.f32 %v3306_v16, %v334_v31 }
 0x184   :  { %v3976_v33 = vpop.eup %3975  ;;  %3987 = vtanh.f32 %v343_v30 }
 0x185   :  { %v3978_v34 = vpop.eup %3977  ;;  %3989 = vtanh.f32 %v335_v32 }
 0x186   :  { %v3980_v35 = vpop.eup %3979 }
 0x187   :  { %v3982_v36 = vpop.eup %3981  ;;  %v355_v37 = vpack.c.bf16 %v3980_v35, %v3976_v33 }
 0x188   :  { %v354_v38 = vpack.c.bf16 %v3982_v36, %v3978_v34 }
 0x18a   :  { %3599 = vmatprep.mubr.msk.bf16.mxu1 %vm381_vm1, %v354_v38 }
 0x18b   :  { %3600 = vmatmul.mubr.msk.bf16.vlgmr.msra.gmra.mrb[0].mxu1 %vm381_vm1, %v355_v37 }
 0x18c   :  { %v3984_v40 = vpop.eup %3983  ;;  %3608 = vmatpush3.bf16.msra.mxu1 %v3923_v39 }
 0x18d   :  { %v3986_v42 = vpop.eup %3985  ;;  %3609 = vmatprep.subr.bf16.mxu1 %v4289_v14 }
 0x18e   :  { %v3988_v43 = vpop.eup %3987 }
 0x18f   :  { %v3990_v44 = vpop.eup %3989  ;;  %v357_v45 = vpack.c.bf16 %v3988_v43, %v3984_v40 }
 0x190   :  { %v356_v46 = vpack.c.bf16 %v3990_v44, %v3986_v42  ;;  %3610 = vmatpush3.bf16.msra.mxu1 %v3924_v41  ;;  %v3927_v41 = vld [vmem:[%s5228_s18] sm:$0xff]   ;;  %v3928_v42 = vld [vmem:[%s5228_s18 + $0x8] sm:$0xff]  }
 0x191   :  { %3615 = vmatprep.subr.bf16.mxu1 %v4289_v14 }
 0x192   :  { %3603 = vmatprep.mubr.msk.bf16.mxu1 %vm381_vm1, %v356_v46 }
 0x193   :  { %3604 = vmatmul.mubr.msk.bf16.gmra.mrb[4].mxu1 %vm381_vm1, %v357_v45 }
 0x194   :  { %3611 = vmatprep.mubr.msk.bf16.mxu1 %vm4290_vm0, %v4289_v14 }
 0x19b   :  { %3612 = vmatmul.mubr.bf16.vlgmr.msra.gmra.mrb[8].mxu1 %v4292_v47 }
 0x19c   :  { %3619 = vmatprep.mubr.msk.bf16.mxu1 %vm4290_vm0, %v4289_v14  ;;  %3616 = vmatpush3.bf16.msra.mxu1 %v3925_v17 }
 0x19d   :  { %3617 = vmatprep.subr.bf16.mxu1 %v4289_v14 }
 0x1a0   :  { %3618 = vmatpush3.bf16.msra.mxu1 %v3926_v18 }
 0x1a1   :  { %3623 = vmatprep.subr.bf16.mxu1 %v4289_v14 }
 0x25e   :  { %v3601_v49 = vpop.f32.mrb[0].mxu1 }
 0x25f   :  { %v4546_v50 = vadd.f32 %v3601_v49, %v3319_v48  ;;  %v428_v51 = vpop.f32.mrb[1].mxu1 }
 0x260   :  { %v3602_v52 = vpop.f32.mrb[2].mxu1  ;;  %v429_v6 = vadd.f32 %v3319_v48, %v428_v51 }
 0x261   :  { %v4548_v53 = vadd.f32 %v3602_v52, %v3319_v48  ;;  %v431_v54 = vpop.f32.mrb[3].mxu1 }
 0x262   :  { %v4550_v55 = vadd.f32 %v3319_v48, %v431_v54 }
 0x266   :  { %v3605_v56 = vpop.f32.mrb[4].mxu1 }
 0x267   :  { %v4552_v57 = vadd.f32 %v3605_v56, %v3319_v48  ;;  %v444_v58 = vpop.f32.mrb[5].mxu1 }
 0x268   :  { %v4554_v59 = vadd.f32 %v3319_v48, %v444_v58  ;;  %v3606_v60 = vpop.f32.mrb[6].mxu1 }
 0x269   :  { %v4556_v61 = vadd.f32 %v3606_v60, %v3319_v48  ;;  %v447_v62 = vpop.f32.mrb[7].mxu1 }
 0x26a   :  { %v4558_v63 = vadd.f32 %v3319_v48, %v447_v62 }
 0x26e   :  { %v521_v1 = vpop.f32.mrb[8].mxu1 }
 0x26f   :  { %v3613_v2 = vpop.f32.mrb[9].mxu1  ;;  %v537_v3 = vadd.f32 %v4560_v0, %v521_v1  ;;  %v527_v7 = vadd.f32 %v521_v1, %v429_v6 }
 0x270   :  { %v524_v4 = vpop.f32.mrb[10].mxu1 }
 0x271   :  { %v3614_v5 = vpop.f32.mrb[11].mxu1  ;;  %539 = vrot.lane.b32.xlu0 %v537_v3, %s4291_s27  ;;  %v3328_v8 = vmul.f32 -1.442695, %v527_v7 }
 0x273   :  { %3991 = vpow2.f32 %v3328_v8  ;;  %v3929_v8 = vld [vmem:[%s5228_s18] sm:$0xff]  }
 0x274   :  { %3632 = vmatpush3.bf16.msra.mxu0 %v3929_v8 }
 0x275   :  { %3633 = vmatprep.subr.bf16.mxu0 %v4289_v14 }
 0x27d   :  { %v3992_v9 = vpop.eup %3991 }
 0x27e   :  { %v531_v10 = vadd.f32 1.0, %v3992_v9  ;;  %v3930_v9 = vld [vmem:[%s5228_s18 + $0x8] sm:$0xff]  }
 0x27f   :  { %3634 = vmatpush3.bf16.msra.mxu0 %v3930_v9 }
 0x280   :  { %3993 = vrcp.f32 %v531_v10  ;;  %3647 = vmatprep.subr.bf16.mxu0 %v4289_v14 }
 0x28a   :  { %v3994_v11 = vpop.eup %3993 }
 0x28b   :  { %v549_v20 = vsub.f32 1.0, %v3994_v11  ;;  %v555_v22 = vmul.f32 0.0, %v3994_v11 }
 0x2e3   :  { %v540_v12 = vpop.permute.xlu0 %539 }
 0x2e4   :  { %v542_v13 = vmul.f32 %v3994_v11, %v540_v12 }
 0x2e6   :  { %544 = vrot.lane.b32.xlu1 %v542_v13, %s4291_s27 }
 0x358   :  { %v545_v15 = vpop.permute.xlu1 %544 }
 0x359   :  { %v547_v16 = vadd.f32 %v545_v15, %v429_v6 }
 0x35b   :  { %3995 = vtanh.f32 %v547_v16 }
 0x365   :  { %v3996_v19 = vpop.eup %3995 }
 0x366   :  { %551 = vrot.lane.b32.xlu1 %v3996_v19, %s4293_s5 }
 0x3d8   :  { %v552_v21 = vpop.permute.xlu1 %551 }
 0x3d9   :  { %v554_v23 = vmul.f32 %v552_v21, %v549_v20 }
 0x3db   :  { %v4574_v24 = vadd.f32 %v555_v22, %v554_v23 }
 0x3dd   :  { %v563_v25 = vpack.c.bf16 %v4574_v24, %v4574_v24 }
 0x3df   :  { %569 = vrot.lane.b32.xlu0 %v563_v25, %s4293_s5 }
 0x451   :  { %v570_v26 = vpop.permute.xlu0 %569 }
 0x452   :  { %3620 = vmatmul.mubr.msk.bf16.vlgmr.msra.gmra.mrb[12].mxu1 %vm381_vm1, %v570_v26 }
 0x453   :  { %3627 = vmatprep.mubr.msk.bf16.mxu1 %vm4290_vm0, %v4289_v14  ;;  %3624 = vmatpush3.bf16.msra.mxu1 %v3927_v41 }
 0x454   :  { %3625 = vmatprep.subr.bf16.mxu1 %v4289_v14 }
 0x457   :  { %3626 = vmatpush3.bf16.msra.mxu1 %v3928_v42 }
 0x458   :  { %3639 = vmatprep.subr.bf16.mxu1 %v4289_v14 }
 0x525   :  { %v620_v27 = vpop.f32.mrb[12].mxu1 }
 0x526   :  { %v633_v28 = vadd.f32 %v620_v27, %v4560_v0  ;;  %v3621_v29 = vpop.f32.mrb[13].mxu1  ;;  %v626_v32 = vadd.f32 %v620_v27, %v4550_v55 }
 0x527   :  { %v623_v30 = vpop.f32.mrb[14].mxu1 }
 0x528   :  { %635 = vrot.lane.b32.xlu1 %v633_v28, %s4291_s27  ;;  %v3622_v31 = vpop.f32.mrb[15].mxu1  ;;  %v3332_v33 = vmul.f32 -1.442695, %v626_v32 }
 0x52a   :  { %3997 = vpow2.f32 %v3332_v33  ;;  %v3931_v33 = vld [vmem:[%s5228_s18] sm:$0xff]  }
 0x534   :  { %v3998_v34 = vpop.eup %3997 }
 0x535   :  { %v630_v35 = vadd.f32 1.0, %v3998_v34  ;;  %v3932_v34 = vld [vmem:[%s5228_s18 + $0x8] sm:$0xff]  }
 0x537   :  { %3999 = vrcp.f32 %v630_v35 }
 0x541   :  { %v4000_v36 = vpop.eup %3999 }
 0x542   :  { %v645_v44 = vsub.f32 1.0, %v4000_v36  ;;  %v651_v46 = vmul.f32 %v4000_v36, %v4574_v24 }
 0x59a   :  { %v636_v37 = vpop.permute.xlu1 %635 }
 0x59b   :  { %v638_v38 = vmul.f32 %v4000_v36, %v636_v37 }
 0x59d   :  { %640 = vrot.lane.b32.xlu0 %v638_v38, %s4291_s27 }
 0x60f   :  { %v641_v39 = vpop.permute.xlu0 %640 }
 0x610   :  { %v643_v40 = vadd.f32 %v641_v39, %v4550_v55 }
 0x612   :  { %4001 = vtanh.f32 %v643_v40 }
 0x61c   :  { %v4002_v43 = vpop.eup %4001 }
 0x61d   :  { %647 = vrot.lane.b32.xlu1 %v4002_v43, %s4293_s5 }
 0x68f   :  { %v648_v45 = vpop.permute.xlu1 %647 }
 0x690   :  { %v650_v47 = vmul.f32 %v648_v45, %v645_v44 }
 0x692   :  { %v4597_v48 = vadd.f32 %v651_v46, %v650_v47 }
 0x694   :  { %v659_v49 = vpack.c.bf16 %v4597_v48, %v4597_v48 }
 0x696   :  { %665 = vrot.lane.b32.xlu0 %v659_v49, %s4293_s5 }
 0x708   :  { %v666_v51 = vpop.permute.xlu0 %665 }
 0x709   :  { %3628 = vmatmul.mubr.msk.bf16.vlgmr.msra.gmra.mrb[16].mxu1 %vm381_vm1, %v666_v51 }
 0x70a   :  { %3643 = vmatprep.mubr.msk.bf16.mxu1 %vm4290_vm0, %v4289_v14  ;;  %3640 = vmatpush3.bf16.msra.mxu1 %v3931_v33 }
 0x70b   :  { %3641 = vmatprep.subr.bf16.mxu1 %v4289_v14 }
 0x70e   :  { %3642 = vmatpush3.bf16.msra.mxu1 %v3932_v34 }
 0x70f   :  { %3655 = vmatprep.subr.bf16.mxu1 %v4289_v14 }
 0x7dc   :  { %v716_v52 = vpop.f32.mrb[16].mxu1 }
 0x7dd   :  { %v729_v54 = vadd.f32 %v716_v52, %v4560_v0  ;;  %v3629_v55 = vpop.f32.mrb[17].mxu1  ;;  %v722_v60 = vadd.f32 %v716_v52, %v4546_v50 }
 0x7de   :  { %v719_v56 = vpop.f32.mrb[18].mxu1 }
 0x7df   :  { %731 = vrot.lane.b32.xlu1 %v729_v54, %s4291_s27  ;;  %v3630_v58 = vpop.f32.mrb[19].mxu1  ;;  %v3336_v62 = vmul.f32 -1.442695, %v722_v60 }
 0x7e1   :  { %4003 = vpow2.f32 %v3336_v62  ;;  %v3933_v62 = vld [vmem:[%s5228_s18] sm:$0xff]  }
 0x7eb   :  { %v4004_v1 = vpop.eup %4003 }
 0x7ec   :  { %v726_v2 = vadd.f32 1.0, %v4004_v1  ;;  %v3934_v1 = vld [vmem:[%s5228_s18 + $0x8] sm:$0xff]  }
 0x7ee   :  { %4005 = vrcp.f32 %v726_v2 }
 0x7f8   :  { %v4006_v3 = vpop.eup %4005 }
 0x7f9   :  { %v741_v11 = vsub.f32 1.0, %v4006_v3  ;;  %v747_v12 = vmul.f32 %v4006_v3, %v4597_v48 }
 0x851   :  { %v732_v4 = vpop.permute.xlu1 %731 }
 0x852   :  { %v734_v5 = vmul.f32 %v4006_v3, %v732_v4 }
 0x854   :  { %736 = vrot.lane.b32.xlu0 %v734_v5, %s4291_s27 }
 0x8c6   :  { %v737_v6 = vpop.permute.xlu0 %736 }
 0x8c7   :  { %v739_v7 = vadd.f32 %v737_v6, %v4546_v50 }
 0x8c9   :  { %4007 = vtanh.f32 %v739_v7 }
 0x8d3   :  { %v4008_v10 = vpop.eup %4007 }
 0x8d4   :  { %743 = vrot.lane.b32.xlu1 %v4008_v10, %s4293_s5 }
 0x946   :  { %v744_v50 = vpop.permute.xlu1 %743 }
 0x947   :  { %v746_v13 = vmul.f32 %v744_v50, %v741_v11 }
 0x949   :  { %v4620_v15 = vadd.f32 %v747_v12, %v746_v13 }
 0x94b   :  { %v755_v16 = vpack.c.bf16 %v4620_v15, %v4620_v15 }
 0x94d   :  { %761 = vrot.lane.b32.xlu0 %v755_v16, %s4293_s5 }
 0x9bf   :  { %v762_v17 = vpop.permute.xlu0 %761 }
 0x9c0   :  { %3636 = vmatmul.mubr.msk.bf16.vlgmr.msra.gmra.mrb[8].mxu0 %vm381_vm1, %v762_v17 }
 0x9c1   :  { %3651 = vmatprep.mubr.msk.bf16.mxu0 %vm4290_vm0, %v4289_v14  ;;  %3648 = vmatpush3.bf16.msra.mxu0 %v3933_v62 }
 0x9c2   :  { %3649 = vmatprep.subr.bf16.mxu0 %v4289_v14 }
 0x9c5   :  { %3650 = vmatpush3.bf16.msra.mxu0 %v3934_v1 }
 0x9c6   :  { %3663 = vmatprep.subr.bf16.mxu0 %v4289_v14 }
 0xa93   :  { %v812_v18 = vpop.f32.mrb[8].mxu0 }
 0xa94   :  { %v825_v19 = vadd.f32 %v812_v18, %v4560_v0  ;;  %v3637_v20 = vpop.f32.mrb[9].mxu0  ;;  %v818_v23 = vadd.f32 %v812_v18, %v4548_v53 }
 0xa95   :  { %v815_v21 = vpop.f32.mrb[10].mxu0 }
 0xa96   :  { %827 = vrot.lane.b32.xlu1 %v825_v19, %s4291_s27  ;;  %v3638_v22 = vpop.f32.mrb[11].mxu0  ;;  %v3340_v25 = vmul.f32 -1.442695, %v818_v23 }
 0xa98   :  { %4009 = vpow2.f32 %v3340_v25  ;;  %v3935_v25 = vld [vmem:[%s5228_s18] sm:$0xff]  }
 0xaa2   :  { %v4010_v26 = vpop.eup %4009 }
 0xaa3   :  { %v822_v27 = vadd.f32 1.0, %v4010_v26  ;;  %v3936_v26 = vld [vmem:[%s5228_s18 + $0x8] sm:$0xff]  }
 0xaa5   :  { %4011 = vrcp.f32 %v822_v27 }
 0xaaf   :  { %v4012_v28 = vpop.eup %4011 }
 0xab0   :  { %v837_v36 = vsub.f32 1.0, %v4012_v28  ;;  %v843_v37 = vmul.f32 %v4012_v28, %v4620_v15 }
 0xb08   :  { %v828_v29 = vpop.permute.xlu1 %827 }
 0xb09   :  { %v830_v30 = vmul.f32 %v4012_v28, %v828_v29 }
 0xb0b   :  { %832 = vrot.lane.b32.xlu0 %v830_v30, %s4291_s27 }
 0xb7d   :  { %v833_v31 = vpop.permute.xlu0 %832 }
 0xb7e   :  { %v835_v32 = vadd.f32 %v833_v31, %v4548_v53 }
 0xb80   :  { %4013 = vtanh.f32 %v835_v32 }
 0xb8a   :  { %v4014_v35 = vpop.eup %4013 }
 0xb8b   :  { %839 = vrot.lane.b32.xlu1 %v4014_v35, %s4293_s5 }
 0xbfd   :  { %v840_v53 = vpop.permute.xlu1 %839 }
 0xbfe   :  { %v842_v38 = vmul.f32 %v840_v53, %v837_v36 }
 0xc00   :  { %v4643_v39 = vadd.f32 %v843_v37, %v842_v38 }
 0xc02   :  { %v851_v40 = vpack.c.bf16 %v4643_v39, %v4643_v39 }
 0xc04   :  { %857 = vrot.lane.b32.xlu0 %v851_v40, %s4293_s5 }
 0xc76   :  { %v858_v41 = vpop.permute.xlu0 %857 }
 0xc77   :  { %3644 = vmatmul.mubr.msk.bf16.vlgmr.msra.gmra.mrb[20].mxu1 %vm381_vm1, %v858_v41 }
 0xc78   :  { %3659 = vmatprep.mubr.msk.bf16.mxu1 %vm4290_vm0, %v4289_v14  ;;  %3656 = vmatpush3.bf16.msra.mxu1 %v3935_v25 }
 0xc79   :  { %3657 = vmatprep.subr.bf16.mxu1 %v4289_v14 }
 0xc7c   :  { %3658 = vmatpush3.bf16.msra.mxu1 %v3936_v26  ;;  %v3301_v26 = vld [vmem:[%s5200_s10] ss:$0 sm:$0xff] }
 0xd4a   :  { %v908_v42 = vpop.f32.mrb[20].mxu1 }
 0xd4b   :  { %v921_v43 = vadd.f32 %v908_v42, %v4560_v0  ;;  %v3645_v44 = vpop.f32.mrb[21].mxu1  ;;  %v914_v47 = vadd.f32 %v908_v42, %v4554_v59 }
 0xd4c   :  { %v911_v45 = vpop.f32.mrb[22].mxu1 }
 0xd4d   :  { %923 = vrot.lane.b32.xlu1 %v921_v43, %s4291_s27  ;;  %v3646_v46 = vpop.f32.mrb[23].mxu1  ;;  %v3344_v49 = vmul.f32 -1.442695, %v914_v47 }
 0xd4f   :  { %4015 = vpow2.f32 %v3344_v49  ;;  %v3937_v49 = vld [vmem:[%s5228_s18] sm:$0xff]  }
 0xd59   :  { %v4016_v51 = vpop.eup %4015 }
 0xd5a   :  { %v918_v52 = vadd.f32 1.0, %v4016_v51  ;;  %v3938_v51 = vld [vmem:[%s5228_s18 + $0x8] sm:$0xff]  }
 0xd5c   :  { %4017 = vrcp.f32 %v918_v52 }
 0xd66   :  { %v4018_v54 = vpop.eup %4017 }
 0xd67   :  { %v933_v3 = vsub.f32 1.0, %v4018_v54  ;;  %v939_v4 = vmul.f32 %v4018_v54, %v4643_v39 }
 0xdbf   :  { %v924_v55 = vpop.permute.xlu1 %923 }
 0xdc0   :  { %v926_v56 = vmul.f32 %v4018_v54, %v924_v55 }
 0xdc2   :  { %928 = vrot.lane.b32.xlu0 %v926_v56, %s4291_s27 }
 0xe34   :  { %v929_v58 = vpop.permute.xlu0 %928 }
 0xe35   :  { %v931_v60 = vadd.f32 %v929_v58, %v4554_v59 }
 0xe37   :  { %4019 = vtanh.f32 %v931_v60 }
 0xe41   :  { %v4020_v2 = vpop.eup %4019 }
 0xe42   :  { %935 = vrot.lane.b32.xlu1 %v4020_v2, %s4293_s5 }
 0xeb4   :  { %v936_v59 = vpop.permute.xlu1 %935 }
 0xeb5   :  { %v938_v5 = vmul.f32 %v936_v59, %v933_v3 }
 0xeb7   :  { %v4666_v6 = vadd.f32 %v939_v4, %v938_v5 }
 0xeb9   :  { %v947_v7 = vpack.c.bf16 %v4666_v6, %v4666_v6 }
 0xebb   :  { %953 = vrot.lane.b32.xlu0 %v947_v7, %s4293_s5 }
 0xf2d   :  { %v954_v8 = vpop.permute.xlu0 %953 }
 0xf2e   :  { %3652 = vmatmul.mubr.msk.bf16.vlgmr.msra.gmra.mrb[12].mxu0 %vm381_vm1, %v954_v8 }
 0xf2f   :  { %3667 = vmatprep.mubr.msk.bf16.mxu0 %vm4290_vm0, %v4289_v14  ;;  %3664 = vmatpush3.bf16.msra.mxu0 %v3937_v49 }
 0xf30   :  { %3665 = vmatprep.subr.bf16.mxu0 %v4289_v14 }
 0xf33   :  { %3666 = vmatpush3.bf16.msra.mxu0 %v3938_v51 }
 0xf34   :  { %3683 = vmatprep.subr.bf16.mxu0 %v4289_v14 }
0x1001   :  { %v1004_v9 = vpop.f32.mrb[12].mxu0 }
0x1002   :  { %v1017_v10 = vadd.f32 %v1004_v9, %v4560_v0  ;;  %v3653_v11 = vpop.f32.mrb[13].mxu0  ;;  %v1010_v13 = vadd.f32 %v1004_v9, %v4558_v63 }
0x1003   :  { %v1007_v50 = vpop.f32.mrb[14].mxu0 }
0x1004   :  { %1019 = vrot.lane.b32.xlu1 %v1017_v10, %s4291_s27  ;;  %v3654_v12 = vpop.f32.mrb[15].mxu0  ;;  %v3348_v16 = vmul.f32 -1.442695, %v1010_v13 }
0x1006   :  { %4021 = vpow2.f32 %v3348_v16  ;;  %v4726_v16 = vld [vmem:[%s5198_s8] sm:$0xff]  }
0x1010   :  { %v4022_v17 = vpop.eup %4021 }
0x1011   :  { %v1014_v18 = vadd.f32 1.0, %v4022_v17  ;;  %v4732_v17 = vld [vmem:[%s5198_s8 + $0x8] sm:$0xff]   ;;  %s4294_s8 = smov 32  }
0x1013   :  { %4023 = vrcp.f32 %v1014_v18 }
0x101d   :  { %v4024_v19 = vpop.eup %4023 }
0x101e   :  { %v1029_v28 = vsub.f32 1.0, %v4024_v19 }
0x1076   :  { %v1020_v20 = vpop.permute.xlu1 %1019 }
0x1077   :  { %v1022_v21 = vmul.f32 %v4024_v19, %v1020_v20 }
0x1079   :  { %1024 = vrot.lane.b32.xlu0 %v1022_v21, %s4291_s27  ;;  %v3941_v21 = vld [vmem:[%s5197_s7] sm:$0xff]  }
0x107a   :  { %3671 = vmatprep.subr.bf16.mxu1 %v3941_v21 }
0x10eb   :  { %v1025_v22 = vpop.permute.xlu0 %1024 }
0x10ec   :  { %v1027_v23 = vadd.f32 %v1025_v22, %v4558_v63  ;;  %v1035_v63 = vmul.f32 %v4024_v19, %v4666_v6 }
0x10ee   :  { %4025 = vtanh.f32 %v1027_v23 }
0x10f8   :  { %v4026_v27 = vpop.eup %4025 }
0x10f9   :  { %1031 = vrot.lane.b32.xlu1 %v4026_v27, %s4293_s5 }
0x116b   :  { %v1032_v29 = vpop.permute.xlu1 %1031 }
0x116c   :  { %v1034_v30 = vmul.f32 %v1032_v29, %v1029_v28 }
0x116e   :  { %v4688_v31 = vadd.f32 %v1035_v63, %v1034_v30 }
0x1170   :  { %v1043_v32 = vpack.c.bf16 %v4688_v31, %v4688_v31 }
0x1172   :  { %1049 = vrot.lane.b32.xlu0 %v1043_v32, %s4293_s5 }
0x11e4   :  { %v1050_v33 = vpop.permute.xlu0 %1049 }
0x11e5   :  { %3660 = vmatmul.mubr.msk.bf16.vlgmr.msra.gmra.mrb[24].mxu1 %vm381_vm1, %v1050_v33 }
0x11e6   :  { %3672 = vmatpush3.bf16.msra.mxu1 %v3941_v21 }
0x12b8   :  { %v1100_v34 = vpop.f32.mrb[24].mxu1 }
0x12b9   :  { %v1113_v35 = vadd.f32 %v1100_v34, %v4560_v0  ;;  %v3661_v36 = vpop.f32.mrb[25].mxu1  ;;  %v1106_v38 = vadd.f32 %v1100_v34, %v4552_v57 }
0x12ba   :  { %v1103_v53 = vpop.f32.mrb[26].mxu1 }
0x12bb   :  { %1115 = vrot.lane.b32.xlu1 %v1113_v35, %s4291_s27  ;;  %v3662_v37 = vpop.f32.mrb[27].mxu1  ;;  %v3352_v40 = vmul.f32 -1.442695, %v1106_v38 }
0x12bd   :  { %4027 = vpow2.f32 %v3352_v40 }
0x12c7   :  { %v4028_v41 = vpop.eup %4027 }
0x12c8   :  { %v1110_v42 = vadd.f32 1.0, %v4028_v41 }
0x12ca   :  { %4029 = vrcp.f32 %v1110_v42 }
0x12d4   :  { %v4030_v43 = vpop.eup %4029 }
0x12d5   :  { %v1125_v54 = vsub.f32 1.0, %v4030_v43  ;;  %v1131_v55 = vmul.f32 %v4030_v43, %v4688_v31 }
0x132d   :  { %v1116_v44 = vpop.permute.xlu1 %1115 }
0x132e   :  { %v1118_v45 = vmul.f32 %v4030_v43, %v1116_v44  ;;  %v4790_v44 = vld [vmem:[%s5199_s9] ss:$0 sm:$0xff] }
0x1330   :  { %1120 = vrot.lane.b32.xlu0 %v1118_v45, %s4291_s27 }
0x13a2   :  { %v1121_v46 = vpop.permute.xlu0 %1120 }
0x13a3   :  { %v1123_v47 = vadd.f32 %v1121_v46, %v4552_v57 }
0x13a5   :  { %4031 = vtanh.f32 %v1123_v47 }
0x13af   :  { %v4032_v52 = vpop.eup %4031 }
0x13b0   :  { %1127 = vrot.lane.b32.xlu1 %v4032_v52, %s4293_s5 }
0x1422   :  { %v1128_v57 = vpop.permute.xlu1 %1127 }
0x1423   :  { %v1130_v56 = vmul.f32 %v1128_v57, %v1125_v54 }
0x1425   :  { %v4709_v58 = vadd.f32 %v1131_v55, %v1130_v56 }
0x1427   :  { %v1139_v60 = vpack.c.bf16 %v4709_v58, %v4709_v58 }
0x1429   :  { %1145 = vrot.lane.b32.xlu0 %v1139_v60, %s4293_s5 }
0x149b   :  { %v1146_v62 = vpop.permute.xlu0 %1145 }
0x149c   :  { %3668 = vmatmul.mubr.msk.bf16.vlgmr.msra.gmra.mrb[16].mxu0 %vm381_vm1, %v1146_v62 }
0x149d   :  { %3687 = vmatprep.mubr.msk.bf16.mxu0 %vm4290_vm0, %v4289_v14  ;;  %3684 = vmatpush3.bf16.msra.mxu0 %v4726_v16 }
0x149e   :  { %3685 = vmatprep.subr.bf16.mxu0 %v4289_v14 }
0x14a1   :  { %3686 = vmatpush3.bf16.msra.mxu0 %v4732_v17 }
0x14a2   :  { %3691 = vmatprep.subr.bf16.mxu0 %v4289_v14 }
0x156f   :  { %v1196_v1 = vpop.f32.mrb[16].mxu0 }
0x1570   :  { %v1209_v2 = vadd.f32 %v1196_v1, %v4560_v0  ;;  %v3669_v3 = vpop.f32.mrb[17].mxu0  ;;  %v1202_v5 = vadd.f32 %v1196_v1, %v4556_v61 }
0x1571   :  { %v1199_v59 = vpop.f32.mrb[18].mxu0 }
0x1572   :  { %1211 = vrot.lane.b32.xlu1 %v1209_v2, %s4291_s27  ;;  %v3670_v4 = vpop.f32.mrb[19].mxu0  ;;  %v3356_v7 = vmul.f32 -1.442695, %v1202_v5 }
0x1574   :  { %4033 = vpow2.f32 %v3356_v7 }
0x157e   :  { %v4034_v8 = vpop.eup %4033 }
0x157f   :  { %v1206_v9 = vadd.f32 1.0, %v4034_v8 }
0x1581   :  { %4035 = vrcp.f32 %v1206_v9 }
0x158b   :  { %v4036_v10 = vpop.eup %4035 }
0x158c   :  { %v1227_v19 = vmul.f32 %v4036_v10, %v4709_v58 }
0x15e4   :  { %v1212_v11 = vpop.permute.xlu1 %1211 }
0x15e5   :  { %v1214_v50 = vmul.f32 %v4036_v10, %v1212_v11 }
0x15e7   :  { %1216 = vrot.lane.b32.xlu0 %v1214_v50, %s4291_s27 }
0x1659   :  { %v1217_v12 = vpop.permute.xlu0 %1216 }
0x165a   :  { %v1219_v0 = vadd.f32 %v1217_v12, %v4556_v61  ;;  %v1221_v61 = vsub.f32 1.0, %v4036_v10 }
0x165c   :  { %4037 = vtanh.f32 %v1219_v0 }
0x1666   :  { %v4038_v13 = vpop.eup %4037 }
0x1667   :  { %1223 = vrot.lane.b32.xlu1 %v4038_v13, %s4293_s5 }
0x166b   :  { %558 = vrot.lane.b32.xlu1 %v4574_v24, %s4293_s5  ;;  %v3942_v24 = vld [vmem:[%s5197_s7 + $0x8] sm:$0xff]  }
0x166c   :  { %3673 = vmatprep.subr.bf16.mxu1 %v3942_v24 }
0x166d   :  { %3674 = vmatpush3.bf16.msra.mxu1 %v3942_v24 }
0x166e   :  { %3699 = vmatprep.subr.bf16.mxu1 %v4289_v14 }
0x166f   :  { %750 = vrot.lane.b32.xlu1 %v4620_v15, %s4293_s5 }
0x1673   :  { %1425 = vrot.lane.b32.xlu1 %v3301_v26, %s4291_s27 }
0x16d9   :  { %v1224_v18 = vpop.permute.xlu1 %1223 }
0x16da   :  { %v1226_v20 = vmul.f32 %v1224_v18, %v1221_v61 }
0x16dc   :  { %v4748_v22 = vadd.f32 %v1227_v19, %v1226_v20 }
0x16dd   :  { %v559_v23 = vpop.permute.xlu1 %558 }
0x16de   :  { %561 = vst.msk [vmem:[#allocation4] sm:$0xff] %vm381_vm1, %v559_v23  ;;  %v1355_v15 = vpack.c.bf16 %v4748_v22, %v4748_v22 }
0x16e0   :  { %1361 = vrot.lane.b32.xlu0 %v1355_v15, %s4293_s5 }
0x16e1   :  { %v751_v25 = vpop.permute.xlu1 %750 }
0x16e2   :  { %753 = vst.msk [vmem:[#allocation4 + $0x10] sm:$0xff] %vm381_vm1, %v751_v25 }
0x16e4   :  { %654 = vrot.lane.b32.xlu0 %v4597_v48, %s4293_s5 }
0x16e5   :  { %v4779_v34 = vpop.permute.xlu1 %1425 }
0x16e8   :  { %846 = vrot.lane.b32.xlu0 %v4643_v39, %s4293_s5  ;;  %v1234_v39 = vld [vmem:[#allocation4] sm:$0xff] }
0x16e9   :  { %v1236_v30 = vld [vmem:[#allocation4 + $0x10] sm:$0xff] }
0x1752   :  { %v1362_v27 = vpop.permute.xlu0 %1361 }
0x1753   :  { %3688 = vmatmul.mubr.msk.bf16.vlgmr.msra.gmra.mrb[20].mxu0 %vm381_vm1, %v1362_v27 }
0x1754   :  { %3692 = vmatpush3.bf16.msra.mxu0 %v4726_v16  ;;  %3695 = vmatprep.mubr.msk.bf16.mxu0 %vm4290_vm0, %v4289_v14 }
0x1755   :  { %3693 = vmatprep.subr.bf16.mxu0 %v4289_v14 }
0x1756   :  { %v655_v48 = vpop.permute.xlu0 %654 }
0x1757   :  { %657 = vst.msk [vmem:[#allocation4 + $0x8] sm:$0xff] %vm381_vm1, %v655_v48 }
0x1758   :  { %3694 = vmatpush3.bf16.msra.mxu0 %v4732_v17 }
0x1759   :  { %3707 = vmatprep.subr.bf16.mxu0 %v4289_v14 }
0x175a   :  { %v847_v28 = vpop.permute.xlu0 %846 }
0x175b   :  { %849 = vst.msk [vmem:[#allocation4 + $0x18] sm:$0xff] %vm381_vm1, %v847_v28 }
0x175e   :  { %v1235_v29 = vld [vmem:[#allocation4 + $0x8] sm:$0xff] }
0x175f   :  { %v1242_v63 = vpack.c.bf16 %v1235_v29, %v1234_v39 }
0x1761   :  { %3675 = vmatprep.mubr.msk.bf16.mxu1 %vm381_vm1, %v1242_v63 }
0x1762   :  { %v1237_v32 = vld [vmem:[#allocation4 + $0x18] sm:$0xff] }
0x1763   :  { %v1243_v33 = vpack.c.bf16 %v1237_v32, %v1236_v30 }
0x1765   :  { %3676 = vmatmul.mubr.msk.bf16.vlgmr.msra.gmra.mrb[28].mxu1 %vm381_vm1, %v1243_v33 }
0x1766   :  { %3700 = vmatpush3.bf16.msra.mxu1 %v4726_v16 }
0x1767   :  { %3701 = vmatprep.subr.bf16.mxu1 %v4289_v14 }
0x176a   :  { %3702 = vmatpush3.bf16.msra.mxu1 %v4732_v17 }
0x176b   :  { %3715 = vmatprep.subr.bf16.mxu1 %v4289_v14 }
0x1826   :  { %v1412_v35 = vpop.f32.mrb[20].mxu0 }
0x1827   :  { %v1428_v36 = vadd.f32 %v4779_v34, %v1412_v35  ;;  %v3689_v53 = vpop.f32.mrb[21].mxu0 }
0x1828   :  { %v1415_v37 = vpop.f32.mrb[22].mxu0 }
0x1829   :  { %1430 = vrot.lane.b32.xlu0 %v1428_v36, %s4291_s27  ;;  %v3690_v38 = vpop.f32.mrb[23].mxu0 }
0x1838   :  { %v4783_v40 = vpop.f32.mrb[28].mxu1 }
0x1839   :  { %v1315_v41 = vpop.f32.mrb[29].mxu1 }
0x183a   :  { %v4785_v42 = vpop.f32.mrb[30].mxu1  ;;  %v1316_v45 = vadd.f32 %v4790_v44, %v1315_v41 }
0x183b   :  { %v1318_v43 = vpop.f32.mrb[31].mxu1 }
0x183c   :  { %v1418_v46 = vadd.f32 %v1412_v35, %v1316_v45  ;;  %v1319_v50 = vadd.f32 %v4790_v44, %v1318_v43 }
0x183e   :  { %v3367_v47 = vmul.f32 -1.442695, %v1418_v46 }
0x1840   :  { %4039 = vpow2.f32 %v3367_v47 }
0x184a   :  { %v4040_v49 = vpop.eup %4039 }
0x184b   :  { %v1422_v51 = vadd.f32 1.0, %v4040_v49  ;;  %v1324_v49 = vadd.f32 %v4783_v40, %v4790_v44 }
0x184d   :  { %4041 = vrcp.f32 %v1422_v51 }
0x1857   :  { %v4042_v52 = vpop.eup %4041 }
0x1858   :  { %v1440_v62 = vsub.f32 1.0, %v4042_v52  ;;  %v1446_v2 = vmul.f32 %v4042_v52, %v4748_v22 }
0x189b   :  { %v1431_v54 = vpop.permute.xlu0 %1430 }
0x189c   :  { %v1433_v57 = vmul.f32 %v4042_v52, %v1431_v54 }
0x189e   :  { %1435 = vrot.lane.b32.xlu1 %v1433_v57, %s4291_s27 }
0x1910   :  { %v1436_v55 = vpop.permute.xlu1 %1435 }
0x1911   :  { %v1438_v56 = vadd.f32 %v1436_v55, %v1316_v45 }
0x1913   :  { %4043 = vtanh.f32 %v1438_v56 }
0x191d   :  { %v4044_v60 = vpop.eup %4043 }
0x191e   :  { %1442 = vrot.lane.b32.xlu0 %v4044_v60, %s4293_s5 }
0x1990   :  { %v1443_v1 = vpop.permute.xlu0 %1442 }
0x1991   :  { %v1445_v3 = vmul.f32 %v1443_v1, %v1440_v62 }
0x1993   :  { %v1447_v59 = vadd.f32 %v1446_v2, %v1445_v3 }
0x1995   :  { %v1449_v4 = vpack.c.bf16 %v1447_v59, %v1447_v59 }
0x1997   :  { %1451 = vrot.lane.b32.xlu1 %v1449_v4, %s4293_s5 }
0x1a09   :  { %v1452_v5 = vpop.permute.xlu1 %1451 }
0x1a0a   :  { %3696 = vmatmul.mubr.msk.bf16.vlgmr.msra.gmra.mrb[24].mxu0 %vm381_vm1, %v1452_v5 }
0x1a0b   :  { %3708 = vmatpush3.bf16.msra.mxu0 %v4726_v16  ;;  %3711 = vmatprep.mubr.msk.bf16.mxu0 %vm4290_vm0, %v4289_v14 }
0x1a0c   :  { %3709 = vmatprep.subr.bf16.mxu0 %v4289_v14 }
0x1a0f   :  { %3710 = vmatpush3.bf16.msra.mxu0 %v4732_v17 }
0x1a10   :  { %3723 = vmatprep.subr.bf16.mxu0 %v4289_v14 }
0x1add   :  { %v1490_v7 = vpop.f32.mrb[24].mxu0 }
0x1ade   :  { %v1503_v8 = vadd.f32 %v1490_v7, %v4779_v34  ;;  %v3697_v9 = vpop.f32.mrb[25].mxu0  ;;  %v1496_v12 = vadd.f32 %v1490_v7, %v1319_v50 }
0x1adf   :  { %v1493_v10 = vpop.f32.mrb[26].mxu0 }
0x1ae0   :  { %1505 = vrot.lane.b32.xlu0 %v1503_v8, %s4291_s27  ;;  %v3698_v11 = vpop.f32.mrb[27].mxu0  ;;  %v3369_v0 = vmul.f32 -1.442695, %v1496_v12 }
0x1ae2   :  { %4045 = vpow2.f32 %v3369_v0  ;;  %v1327_v0 = vadd.f32 %v4785_v42, %v4790_v44 }
0x1aec   :  { %v4046_v13 = vpop.eup %4045 }
0x1aed   :  { %v1500_v61 = vadd.f32 1.0, %v4046_v13 }
0x1aef   :  { %4047 = vrcp.f32 %v1500_v61 }
0x1af9   :  { %v4048_v18 = vpop.eup %4047 }
0x1afa   :  { %v1521_v26 = vmul.f32 %v4048_v18, %v1447_v59 }
0x1b52   :  { %v1506_v19 = vpop.permute.xlu0 %1505 }
0x1b53   :  { %v1508_v20 = vmul.f32 %v4048_v18, %v1506_v19 }
0x1b55   :  { %1510 = vrot.lane.b32.xlu1 %v1508_v20, %s4291_s27 }
0x1b59   :  { %942 = vrot.lane.b32.xlu1 %v4666_v6, %s4293_s5  ;;  %v1515_v6 = vsub.f32 1.0, %v4048_v18 }
0x1b5d   :  { %1134 = vrot.lane.b32.xlu1 %v4709_v58, %s4293_s5 }
0x1bc7   :  { %v1511_v21 = vpop.permute.xlu1 %1510 }
0x1bc8   :  { %v1513_v24 = vadd.f32 %v1511_v21, %v1319_v50 }
0x1bca   :  { %4049 = vtanh.f32 %v1513_v24 }
0x1bcb   :  { %v943_v23 = vpop.permute.xlu1 %942 }
0x1bcc   :  { %945 = vst.msk [vmem:[#allocation4 + $0x20] sm:$0xff] %vm381_vm1, %v943_v23 }
0x1bcf   :  { %v1135_v15 = vpop.permute.xlu1 %1134 }
0x1bd0   :  { %1137 = vst.msk [vmem:[#allocation4 + $0x30] sm:$0xff] %vm381_vm1, %v1135_v15 }
0x1bd3   :  { %v1238_v63 = vld [vmem:[#allocation4 + $0x20] sm:$0xff] }
0x1bd4   :  { %v4050_v25 = vpop.eup %4049 }
0x1bd5   :  { %1517 = vrot.lane.b32.xlu0 %v4050_v25, %s4293_s5 }
0x1bd9   :  { %1038 = vrot.lane.b32.xlu0 %v4688_v31, %s4293_s5 }
0x1bdd   :  { %1230 = vrot.lane.b32.xlu0 %v4748_v22, %s4293_s5  ;;  %v1240_v22 = vld [vmem:[#allocation4 + $0x30] sm:$0xff] }
0x1c47   :  { %v1518_v58 = vpop.permute.xlu0 %1517 }
0x1c48   :  { %v1520_v27 = vmul.f32 %v1518_v58, %v1515_v6 }
0x1c4a   :  { %v1522_v48 = vadd.f32 %v1521_v26, %v1520_v27 }
0x1c4b   :  { %v1039_v28 = vpop.permute.xlu0 %1038 }
0x1c4c   :  { %1041 = vst.msk [vmem:[#allocation4 + $0x28] sm:$0xff] %vm381_vm1, %v1039_v28  ;;  %v1524_v39 = vpack.c.bf16 %v1522_v48, %v1522_v48 }
0x1c4e   :  { %1526 = vrot.lane.b32.xlu1 %v1524_v39, %s4293_s5 }
0x1c4f   :  { %v1231_v29 = vpop.permute.xlu0 %1230 }
0x1c50   :  { %1233 = vst.msk [vmem:[#allocation4 + $0x38] sm:$0xff] %vm381_vm1, %v1231_v29 }
0x1c53   :  { %v1239_v30 = vld [vmem:[#allocation4 + $0x28] sm:$0xff] }
0x1c54   :  { %v1244_v31 = vpack.c.bf16 %v1239_v30, %v1238_v63 }
0x1c56   :  { %3679 = vmatprep.mubr.msk.bf16.mxu1 %vm381_vm1, %v1244_v31 }
0x1c57   :  { %v1241_v32 = vld [vmem:[#allocation4 + $0x38] sm:$0xff] }
0x1c58   :  { %v1245_v33 = vpack.c.bf16 %v1241_v32, %v1240_v22 }
0x1c5a   :  { %3680 = vmatmul.mubr.msk.bf16.gmra.mrb[32].mxu1 %vm381_vm1, %v1245_v33 }
0x1c5b   :  { %3703 = vmatprep.mubr.msk.bf16.mxu1 %vm4290_vm0, %v4289_v14 }
0x1cc0   :  { %v1527_v35 = vpop.permute.xlu1 %1526 }
0x1cc1   :  { %3704 = vmatmul.mubr.msk.bf16.vlgmr.msra.gmra.mrb[36].mxu1 %vm381_vm1, %v1527_v35 }
0x1cc2   :  { %3716 = vmatpush3.bf16.msra.mxu1 %v4726_v16  ;;  %3719 = vmatprep.mubr.msk.bf16.mxu1 %vm4290_vm0, %v4289_v14 }
0x1cc3   :  { %3717 = vmatprep.subr.bf16.mxu1 %v4289_v14 }
0x1cc6   :  { %3718 = vmatpush3.bf16.msra.mxu1 %v4732_v17 }
0x1cc7   :  { %3731 = vmatprep.subr.bf16.mxu1 %v4289_v14 }
0x1d2d   :  { %v4833_v36 = vpop.f32.mrb[32].mxu1 }
0x1d2e   :  { %v4835_v53 = vpop.f32.mrb[33].mxu1 }
0x1d2f   :  { %v4837_v37 = vpop.f32.mrb[34].mxu1  ;;  %v1332_v22 = vadd.f32 %v4790_v44, %v4835_v53 }
0x1d30   :  { %v4839_v38 = vpop.f32.mrb[35].mxu1 }
0x1d94   :  { %v1565_v41 = vpop.f32.mrb[36].mxu1 }
0x1d95   :  { %v1578_v43 = vadd.f32 %v1565_v41, %v4779_v34  ;;  %v3705_v45 = vpop.f32.mrb[37].mxu1  ;;  %v1571_v51 = vadd.f32 %v1565_v41, %v1324_v49 }
0x1d96   :  { %v1568_v46 = vpop.f32.mrb[38].mxu1 }
0x1d97   :  { %1580 = vrot.lane.b32.xlu0 %v1578_v43, %s4291_s27  ;;  %v3706_v47 = vpop.f32.mrb[39].mxu1  ;;  %v3371_v52 = vmul.f32 -1.442695, %v1571_v51 }
0x1d99   :  { %4051 = vpow2.f32 %v3371_v52 }
0x1da3   :  { %v4052_v54 = vpop.eup %4051 }
0x1da4   :  { %v1575_v57 = vadd.f32 1.0, %v4052_v54 }
0x1da6   :  { %4053 = vrcp.f32 %v1575_v57 }
0x1db0   :  { %v4054_v55 = vpop.eup %4053 }
0x1db1   :  { %v1590_v3 = vsub.f32 1.0, %v4054_v55  ;;  %v1596_v40 = vmul.f32 %v4054_v55, %v1522_v48 }
0x1e09   :  { %v1581_v56 = vpop.permute.xlu0 %1580 }
0x1e0a   :  { %v1583_v60 = vmul.f32 %v4054_v55, %v1581_v56 }
0x1e0c   :  { %1585 = vrot.lane.b32.xlu1 %v1583_v60, %s4291_s27 }
0x1e7e   :  { %v1586_v62 = vpop.permute.xlu1 %1585 }
0x1e7f   :  { %v1588_v1 = vadd.f32 %v1586_v62, %v1324_v49 }
0x1e81   :  { %4055 = vtanh.f32 %v1588_v1 }
0x1e8b   :  { %v4056_v2 = vpop.eup %4055 }
0x1e8c   :  { %1592 = vrot.lane.b32.xlu0 %v4056_v2, %s4293_s5 }
0x1efe   :  { %v1593_v59 = vpop.permute.xlu0 %1592 }
0x1eff   :  { %v1595_v4 = vmul.f32 %v1593_v59, %v1590_v3 }
0x1f01   :  { %v1597_v5 = vadd.f32 %v1596_v40, %v1595_v4 }
0x1f03   :  { %v1599_v7 = vpack.c.bf16 %v1597_v5, %v1597_v5 }
0x1f05   :  { %1601 = vrot.lane.b32.xlu1 %v1599_v7, %s4293_s5 }
0x1f77   :  { %v1602_v8 = vpop.permute.xlu1 %1601 }
0x1f78   :  { %3712 = vmatmul.mubr.msk.bf16.vlgmr.msra.gmra.mrb[28].mxu0 %vm381_vm1, %v1602_v8 }
0x1f79   :  { %3724 = vmatpush3.bf16.msra.mxu0 %v4726_v16  ;;  %3727 = vmatprep.mubr.msk.bf16.mxu0 %vm4290_vm0, %v4289_v14 }
0x1f7a   :  { %3725 = vmatprep.subr.bf16.mxu0 %v4289_v14 }
0x1f7d   :  { %3726 = vmatpush3.bf16.msra.mxu0 %v4732_v17 }
0x1f7e   :  { %3739 = vmatprep.subr.bf16.mxu0 %v4289_v14 }
0x204b   :  { %v1640_v9 = vpop.f32.mrb[28].mxu0 }
0x204c   :  { %v1653_v10 = vadd.f32 %v1640_v9, %v4779_v34  ;;  %v3713_v11 = vpop.f32.mrb[29].mxu0  ;;  %v1646_v13 = vadd.f32 %v1640_v9, %v1327_v0 }
0x204d   :  { %v1643_v50 = vpop.f32.mrb[30].mxu0 }
0x204e   :  { %1655 = vrot.lane.b32.xlu0 %v1653_v10, %s4291_s27  ;;  %v3714_v12 = vpop.f32.mrb[31].mxu0  ;;  %v3373_v61 = vmul.f32 -1.442695, %v1646_v13 }
0x2050   :  { %4057 = vpow2.f32 %v3373_v61 }
0x205a   :  { %v4058_v18 = vpop.eup %4057 }
0x205b   :  { %v1650_v19 = vadd.f32 1.0, %v4058_v18 }
0x205d   :  { %4059 = vrcp.f32 %v1650_v19 }
0x2067   :  { %v4060_v20 = vpop.eup %4059 }
0x2068   :  { %v1665_v6 = vsub.f32 1.0, %v4060_v20  ;;  %v1671_v42 = vmul.f32 %v4060_v20, %v1597_v5 }
0x20c0   :  { %v1656_v21 = vpop.permute.xlu0 %1655 }
0x20c1   :  { %v1658_v24 = vmul.f32 %v4060_v20, %v1656_v21 }
0x20c3   :  { %1660 = vrot.lane.b32.xlu1 %v1658_v24, %s4291_s27 }
0x2135   :  { %v1661_v23 = vpop.permute.xlu1 %1660 }
0x2136   :  { %v1663_v15 = vadd.f32 %v1661_v23, %v1327_v0 }
0x2138   :  { %4061 = vtanh.f32 %v1663_v15 }
0x2142   :  { %v4062_v25 = vpop.eup %4061 }
0x2143   :  { %1667 = vrot.lane.b32.xlu0 %v4062_v25, %s4293_s5  ;;  %v1340_v25 = vadd.f32 %v4833_v36, %v4790_v44  ;;  %v3944_v36 = vld [vmem:[%s5207_s17 + $0x8] sm:$0xff]  }
0x21b5   :  { %v1668_v58 = vpop.permute.xlu0 %1667 }
0x21b6   :  { %v1670_v26 = vmul.f32 %v1668_v58, %v1665_v6 }
0x21b8   :  { %v1672_v27 = vadd.f32 %v1671_v42, %v1670_v26 }
0x21ba   :  { %v1674_v48 = vpack.c.bf16 %v1672_v27, %v1672_v27 }
0x21bc   :  { %1676 = vrot.lane.b32.xlu1 %v1674_v48, %s4293_s5 }
0x222e   :  { %v1677_v28 = vpop.permute.xlu1 %1676 }
0x222f   :  { %3720 = vmatmul.mubr.msk.bf16.vlgmr.msra.gmra.mrb[40].mxu1 %vm381_vm1, %v1677_v28 }
0x2230   :  { %3732 = vmatpush3.bf16.msra.mxu1 %v4726_v16  ;;  %3735 = vmatprep.mubr.msk.bf16.mxu1 %vm4290_vm0, %v4289_v14 }
0x2231   :  { %3733 = vmatprep.subr.bf16.mxu1 %v4289_v14 }
0x2234   :  { %3734 = vmatpush3.bf16.msra.mxu1 %v4732_v17 }
0x2235   :  { %3747 = vmatprep.subr.bf16.mxu1 %v4289_v14 }
0x2302   :  { %v1715_v39 = vpop.f32.mrb[40].mxu1 }
0x2303   :  { %v1728_v29 = vadd.f32 %v1715_v39, %v4779_v34  ;;  %v3721_v63 = vpop.f32.mrb[41].mxu1  ;;  %v1721_v32 = vadd.f32 %v1715_v39, %v1332_v22 }
0x2304   :  { %v1718_v30 = vpop.f32.mrb[42].mxu1  ;;  %v3943_v63 = vld [vmem:[%s5207_s17] sm:$0xff]  }
0x2305   :  { %1730 = vrot.lane.b32.xlu0 %v1728_v29, %s4291_s27  ;;  %v3722_v31 = vpop.f32.mrb[43].mxu1  ;;  %v3375_v33 = vmul.f32 -1.442695, %v1721_v32 }
0x2307   :  { %4063 = vpow2.f32 %v3375_v33 }
0x2311   :  { %v4064_v35 = vpop.eup %4063 }
0x2312   :  { %v1725_v41 = vadd.f32 1.0, %v4064_v35 }
0x2314   :  { %4065 = vrcp.f32 %v1725_v41 }
0x231e   :  { %v4066_v43 = vpop.eup %4065 }
0x231f   :  { %v1740_v52 = vsub.f32 1.0, %v4066_v43  ;;  %v1746_v53 = vmul.f32 %v4066_v43, %v1672_v27 }
0x2377   :  { %v1731_v45 = vpop.permute.xlu0 %1730 }
0x2378   :  { %v1733_v46 = vmul.f32 %v4066_v43, %v1731_v45  ;;  %v3945_v45 = vld [vmem:[%s5201_s11] sm:$0xff]  }
0x237a   :  { %1735 = vrot.lane.b32.xlu1 %v1733_v46, %s4291_s27  ;;  %v3946_v46 = vld [vmem:[%s5201_s11 + $0x8] sm:$0xff]  }
0x23ec   :  { %v1736_v47 = vpop.permute.xlu1 %1735 }
0x23ed   :  { %v1738_v49 = vadd.f32 %v1736_v47, %v1332_v22  ;;  %v4922_v47 = vld [vmem:[#allocation13] ss:$0 sm:$0xff] }
0x23ef   :  { %4067 = vtanh.f32 %v1738_v49 }
0x23f9   :  { %v4068_v51 = vpop.eup %4067 }
0x23fa   :  { %1742 = vrot.lane.b32.xlu0 %v4068_v51, %s4293_s5 }
0x246c   :  { %v1743_v54 = vpop.permute.xlu0 %1742 }
0x246d   :  { %v1745_v57 = vmul.f32 %v1743_v54, %v1740_v52 }
0x246f   :  { %v1747_v55 = vadd.f32 %v1746_v53, %v1745_v57 }
0x2471   :  { %v1749_v56 = vpack.c.bf16 %v1747_v55, %v1747_v55 }
0x2473   :  { %1751 = vrot.lane.b32.xlu1 %v1749_v56, %s4293_s5 }
0x24e5   :  { %v1752_v60 = vpop.permute.xlu1 %1751 }
0x24e6   :  { %3728 = vmatmul.mubr.msk.bf16.vlgmr.msra.gmra.mrb[32].mxu0 %vm381_vm1, %v1752_v60 }
0x24e7   :  { %3740 = vmatpush3.bf16.msra.mxu0 %v4726_v16  ;;  %3743 = vmatprep.mubr.msk.bf16.mxu0 %vm4290_vm0, %v4289_v14  ;;  %v1335_v16 = vadd.f32 %v4790_v44, %v4839_v38 }
0x24e8   :  { %3741 = vmatprep.subr.bf16.mxu0 %v4289_v14 }
0x24eb   :  { %3742 = vmatpush3.bf16.msra.mxu0 %v4732_v17 }
0x24ec   :  { %3755 = vmatprep.subr.bf16.mxu0 %v4289_v14 }
0x25b9   :  { %v1790_v62 = vpop.f32.mrb[32].mxu0 }
0x25ba   :  { %v1803_v1 = vadd.f32 %v1790_v62, %v4779_v34  ;;  %v3729_v2 = vpop.f32.mrb[33].mxu0  ;;  %v1796_v40 = vadd.f32 %v1790_v62, %v1335_v16 }
0x25bb   :  { %v1793_v3 = vpop.f32.mrb[34].mxu0 }
0x25bc   :  { %1805 = vrot.lane.b32.xlu0 %v1803_v1, %s4291_s27  ;;  %v3730_v59 = vpop.f32.mrb[35].mxu0  ;;  %v3377_v4 = vmul.f32 -1.442695, %v1796_v40 }
0x25be   :  { %4069 = vpow2.f32 %v3377_v4 }
0x25c8   :  { %v4070_v5 = vpop.eup %4069 }
0x25c9   :  { %v1800_v7 = vadd.f32 1.0, %v4070_v5 }
0x25cb   :  { %4071 = vrcp.f32 %v1800_v7 }
0x25d5   :  { %v4072_v17 = vpop.eup %4071 }
0x25d6   :  { %v1815_v12 = vsub.f32 1.0, %v4072_v17  ;;  %v1821_v38 = vmul.f32 %v4072_v17, %v1747_v55 }
0x262e   :  { %v1806_v8 = vpop.permute.xlu0 %1805 }
0x262f   :  { %v1808_v9 = vmul.f32 %v4072_v17, %v1806_v8 }
0x2631   :  { %1810 = vrot.lane.b32.xlu1 %v1808_v9, %s4291_s27 }
0x26a3   :  { %v1811_v10 = vpop.permute.xlu1 %1810 }
0x26a4   :  { %v1813_v11 = vadd.f32 %v1811_v10, %v1335_v16 }
0x26a6   :  { %4073 = vtanh.f32 %v1813_v11 }
0x26b0   :  { %v4074_v50 = vpop.eup %4073 }
0x26b1   :  { %1817 = vrot.lane.b32.xlu0 %v4074_v50, %s4293_s5 }
0x2723   :  { %v1818_v0 = vpop.permute.xlu0 %1817 }
0x2724   :  { %v1820_v13 = vmul.f32 %v1818_v0, %v1815_v12  ;;  %v3302_v0 = vld [vmem:[#allocation10] ss:$0 sm:$0xff] }
0x2726   :  { %v1822_v61 = vadd.f32 %v1821_v38, %v1820_v13 }
0x2728   :  { %v1824_v18 = vpack.c.bf16 %v1822_v61, %v1822_v61 }
0x272a   :  { %1826 = vrot.lane.b32.xlu1 %v1824_v18, %s4293_s5 }
0x279c   :  { %v1827_v19 = vpop.permute.xlu1 %1826 }
0x279d   :  { %3736 = vmatmul.mubr.msk.bf16.vlgmr.msra.gmra.mrb[44].mxu1 %vm381_vm1, %v1827_v19 }
0x279e   :  { %3751 = vmatprep.mubr.msk.bf16.mxu1 %vm4290_vm0, %v4289_v14  ;;  %3748 = vmatpush3.bf16.msra.mxu1 %v3943_v63 }
0x279f   :  { %3749 = vmatprep.subr.bf16.mxu1 %v4289_v14 }
0x27a2   :  { %3750 = vmatpush3.bf16.msra.mxu1 %v3944_v36 }
0x27a3   :  { %3763 = vmatprep.subr.bf16.mxu1 %v4289_v14 }
0x2870   :  { %v1865_v20 = vpop.f32.mrb[44].mxu1 }
0x2871   :  { %v1878_v21 = vadd.f32 %v1865_v20, %v4779_v34  ;;  %v3737_v24 = vpop.f32.mrb[45].mxu1  ;;  %v1871_v6 = vadd.f32 %v1865_v20, %v1340_v25 }
0x2872   :  { %v1868_v23 = vpop.f32.mrb[46].mxu1 }
0x2873   :  { %1880 = vrot.lane.b32.xlu0 %v1878_v21, %s4291_s27  ;;  %v3738_v15 = vpop.f32.mrb[47].mxu1  ;;  %v3379_v58 = vmul.f32 -1.442695, %v1871_v6 }
0x2875   :  { %4075 = vpow2.f32 %v3379_v58 }
0x287f   :  { %v4076_v42 = vpop.eup %4075 }
0x2880   :  { %v1875_v26 = vadd.f32 1.0, %v4076_v42  ;;  %v4951_v42 = vld [vmem:[#allocation8] ss:$0 sm:$0xff] }
0x2882   :  { %4077 = vrcp.f32 %v1875_v26 }
0x288c   :  { %v4078_v27 = vpop.eup %4077 }
0x288d   :  { %v1890_v31 = vsub.f32 1.0, %v4078_v27  ;;  %v1896_v32 = vmul.f32 %v4078_v27, %v1822_v61 }
0x28e5   :  { %v1881_v48 = vpop.permute.xlu0 %1880 }
0x28e6   :  { %v1883_v28 = vmul.f32 %v4078_v27, %v1881_v48 }
0x28e8   :  { %1885 = vrot.lane.b32.xlu1 %v1883_v28, %s4291_s27 }
0x295a   :  { %v1886_v39 = vpop.permute.xlu1 %1885 }
0x295b   :  { %v1888_v29 = vadd.f32 %v1886_v39, %v1340_v25 }
0x295d   :  { %4079 = vtanh.f32 %v1888_v29 }
0x2967   :  { %v4080_v30 = vpop.eup %4079 }
0x2968   :  { %1892 = vrot.lane.b32.xlu0 %v4080_v30, %s4293_s5 }
0x29da   :  { %v1893_v22 = vpop.permute.xlu0 %1892 }
0x29db   :  { %v1895_v33 = vmul.f32 %v1893_v22, %v1890_v31  ;;  %v3949_v22 = vld [vmem:[%s5205_s15] sm:$0xff]  }
0x29dd   :  { %v1897_v35 = vadd.f32 %v1896_v32, %v1895_v33  ;;  %v3950_v32 = vld [vmem:[%s5205_s15 + $0x8] sm:$0xff]  }
0x29df   :  { %v1899_v41 = vpack.c.bf16 %v1897_v35, %v1897_v35 }
0x29e1   :  { %1901 = vrot.lane.b32.xlu1 %v1899_v41, %s4293_s5 }
0x2a53   :  { %v1902_v43 = vpop.permute.xlu1 %1901 }
0x2a54   :  { %3744 = vmatmul.mubr.msk.bf16.vlgmr.msra.gmra.mrb[36].mxu0 %vm381_vm1, %v1902_v43  ;;  %3752 = vmatmul.mubr.msk.bf16.vlgmr.msra.gmra.mrb[48].mxu1 %vm381_vm1, %v1902_v43 }
0x2a55   :  { %3759 = vmatprep.mubr.msk.bf16.mxu0 %vm4290_vm0, %v4289_v14  ;;  %3767 = vmatprep.mubr.msk.bf16.mxu1 %vm4290_vm0, %v4289_v14 }
0x2a56   :  { %3756 = vmatpush3.bf16.msra.mxu0 %v3945_v45 }
0x2a57   :  { %3757 = vmatprep.subr.bf16.mxu0 %v4289_v14 }
0x2a5a   :  { %3758 = vmatpush3.bf16.msra.mxu0 %v3946_v46 }
0x2a5b   :  { %3771 = vmatprep.subr.bf16.mxu0 %v4289_v14 }
0x2b27   :  { %v1940_v49 = vpop.f32.mrb[36].mxu0  ;;  %v2023_v51 = vpop.f32.mrb[48].mxu1 }
0x2b28   :  { %v1953_v52 = vadd.f32 %v1940_v49, %v4779_v34  ;;  %v2024_v54 = vadd.f32 %v4922_v47, %v2023_v51  ;;  %v3745_v53 = vpop.f32.mrb[37].mxu0  ;;  %v3753_v57 = vpop.f32.mrb[49].mxu1  ;;  %v1343_v34 = vadd.f32 %v4837_v37, %v4790_v44  ;;  %v3947_v44 = vld [vmem:[%s5202_s12] sm:$0xff]   ;;  %v3948_v37 = vld [vmem:[%s5202_s12 + $0x8] sm:$0xff]  }
0x2b29   :  { %v1943_v55 = vpop.f32.mrb[38].mxu0  ;;  %v2026_v56 = vpop.f32.mrb[50].mxu1  ;;  %3764 = vmatpush3.bf16.msra.mxu1 %v3947_v44 }
0x2b2a   :  { %4081 = vtanh.f32 %v2024_v54  ;;  %v3754_v60 = vpop.f32.mrb[51].mxu1  ;;  %1955 = vrot.lane.b32.xlu0 %v1953_v52, %s4291_s27  ;;  %v3746_v62 = vpop.f32.mrb[39].mxu0  ;;  %v1946_v3 = vadd.f32 %v1940_v49, %v1343_v34  ;;  %3765 = vmatprep.subr.bf16.mxu1 %v4289_v14  ;;  %v4968_v52 = vld [vmem:[#allocation11] ss:$0 sm:$0xff] }
0x2b2c   :  { %v3381_v59 = vmul.f32 -1.442695, %v1946_v3 }
0x2b2d   :  { %3766 = vmatpush3.bf16.msra.mxu1 %v3948_v37  ;;  %v3954_v37 = vld [vmem:[%s5202_s12 + $0x8] sm:$0xff]  }
0x2b2e   :  { %4083 = vpow2.f32 %v3381_v59  ;;  %3779 = vmatprep.subr.bf16.mxu1 %v4289_v14 }
0x2b34   :  { %v4082_v1 = vpop.eup %4081 }
0x2b35   :  { %v2030_v2 = vpack.c.bf16 %v4082_v1, %v4082_v1 }
0x2b37   :  { %3760 = vmatmul.mubr.msk.bf16.vlgmr.msra.gmra.mrb[40].mxu0 %vm381_vm1, %v2030_v2 }
0x2b38   :  { %3775 = vmatprep.mubr.msk.bf16.mxu0 %vm4290_vm0, %v4289_v14  ;;  %v4084_v16 = vpop.eup %4083  ;;  %3772 = vmatpush3.bf16.msra.mxu0 %v3949_v22 }
0x2b39   :  { %v1950_v40 = vadd.f32 1.0, %v4084_v16  ;;  %3773 = vmatprep.subr.bf16.mxu0 %v4289_v14 }
0x2b3b   :  { %4085 = vrcp.f32 %v1950_v40  ;;  %v3951_v40 = vld [vmem:[%s5207_s17] sm:$0xff]  }
0x2b3c   :  { %3774 = vmatpush3.bf16.msra.mxu0 %v3950_v32 }
0x2b3d   :  { %3787 = vmatprep.subr.bf16.mxu0 %v4289_v14 }
0x2b45   :  { %v4086_v4 = vpop.eup %4085 }
0x2b46   :  { %v1965_v38 = vsub.f32 1.0, %v4086_v4  ;;  %v1971_v61 = vmul.f32 %v4086_v4, %v1897_v35 }
0x2b9c   :  { %v1956_v5 = vpop.permute.xlu0 %1955 }
0x2b9d   :  { %v1958_v7 = vmul.f32 %v4086_v4, %v1956_v5  ;;  %v3952_v4 = vld [vmem:[%s5207_s17 + $0x8] sm:$0xff]  }
0x2b9f   :  { %1960 = vrot.lane.b32.xlu1 %v1958_v7, %s4291_s27 }
0x2c0a   :  { %v2084_v17 = vpop.f32.mrb[40].mxu0 }
0x2c0b   :  { %v3761_v8 = vpop.f32.mrb[41].mxu0  ;;  %v2085_v26 = vadd.f32 %v4951_v42, %v2084_v17 }
0x2c0c   :  { %v2087_v9 = vpop.f32.mrb[42].mxu0 }
0x2c0d   :  { %v3762_v10 = vpop.f32.mrb[43].mxu0 }
0x2c11   :  { %v1961_v11 = vpop.permute.xlu1 %1960 }
0x2c12   :  { %v1963_v50 = vadd.f32 %v1961_v11, %v1343_v34 }
0x2c14   :  { %4087 = vtanh.f32 %v1963_v50  ;;  %v3953_v50 = vld [vmem:[%s5202_s12] sm:$0xff]  }
0x2c1e   :  { %v4088_v12 = vpop.eup %4087 }
0x2c1f   :  { %1967 = vrot.lane.b32.xlu0 %v4088_v12, %s4293_s5  ;;  %v3955_v12 = vld [vmem:[%s5201_s11] sm:$0xff]  }
0x2c23   :  { %2160 = vrot.lane.b32.xlu0 %v3302_v0, %s4291_s27  ;;  %v3956_v0 = vld [vmem:[%s5201_s11 + $0x8] sm:$0xff]  }
0x2c91   :  { %v1968_v13 = vpop.permute.xlu0 %1967 }
0x2c92   :  { %v1970_v18 = vmul.f32 %v1968_v13, %v1965_v38 }
0x2c94   :  { %v1972_v19 = vadd.f32 %v1971_v61, %v1970_v18 }
0x2c95   :  { %v4947_v24 = vpop.permute.xlu0 %2160 }
0x2c96   :  { %v2090_v20 = vpack.c.bf16 %v1972_v19, %v1972_v19 }
0x2c98   :  { %2096 = vrot.lane.b32.xlu1 %v2090_v20, %s4293_s5 }
0x2d0a   :  { %v2097_v21 = vpop.permute.xlu1 %2096 }
0x2d0b   :  { %3768 = vmatmul.mubr.msk.bf16.vlgmr.msra.gmra.mrb[52].mxu1 %vm381_vm1, %v2097_v21 }
0x2d0c   :  { %3783 = vmatprep.mubr.msk.bf16.mxu1 %vm4290_vm0, %v4289_v14  ;;  %3780 = vmatpush3.bf16.msra.mxu1 %v3951_v40 }
0x2d0d   :  { %3781 = vmatprep.subr.bf16.mxu1 %v4289_v14 }
0x2d10   :  { %3782 = vmatpush3.bf16.msra.mxu1 %v3952_v4 }
0x2d11   :  { %3795 = vmatprep.subr.bf16.mxu1 %v4289_v14 }
0x2dde   :  { %v2147_v23 = vpop.f32.mrb[52].mxu1 }
0x2ddf   :  { %v3769_v15 = vpop.f32.mrb[53].mxu1  ;;  %v2163_v25 = vadd.f32 %v4947_v24, %v2147_v23  ;;  %v2153_v27 = vadd.f32 %v2147_v23, %v2085_v26 }
0x2de0   :  { %v2150_v6 = vpop.f32.mrb[54].mxu1 }
0x2de1   :  { %v3770_v58 = vpop.f32.mrb[55].mxu1  ;;  %2165 = vrot.lane.b32.xlu1 %v2163_v25, %s4291_s27  ;;  %v3391_v48 = vmul.f32 -1.442695, %v2153_v27 }
0x2de3   :  { %4089 = vpow2.f32 %v3391_v48 }
0x2ded   :  { %v4090_v28 = vpop.eup %4089 }
0x2dee   :  { %v2157_v39 = vadd.f32 1.0, %v4090_v28 }
0x2df0   :  { %4091 = vrcp.f32 %v2157_v39 }
0x2dfa   :  { %v4092_v29 = vpop.eup %4091 }
0x2dfb   :  { %v2175_v35 = vsub.f32 1.0, %v4092_v29  ;;  %v2181_v43 = vmul.f32 %v4092_v29, %v1972_v19 }
0x2e53   :  { %v2166_v63 = vpop.permute.xlu1 %2165 }
0x2e54   :  { %v2168_v36 = vmul.f32 %v4092_v29, %v2166_v63 }
0x2e56   :  { %2170 = vrot.lane.b32.xlu0 %v2168_v36, %s4291_s27 }
0x2ec8   :  { %v2171_v30 = vpop.permute.xlu0 %2170 }
0x2ec9   :  { %v2173_v31 = vadd.f32 %v2171_v30, %v2085_v26 }
0x2ecb   :  { %4093 = vtanh.f32 %v2173_v31 }
0x2ed5   :  { %v4094_v33 = vpop.eup %4093 }
0x2ed6   :  { %2177 = vrot.lane.b32.xlu1 %v4094_v33, %s4293_s5 }
0x2f48   :  { %v2178_v41 = vpop.permute.xlu1 %2177 }
0x2f49   :  { %v2180_v45 = vmul.f32 %v2178_v41, %v2175_v35  ;;  %v3957_v41 = vld [vmem:[%s5205_s15] sm:$0xff]  }
0x2f4b   :  { %v2182_v46 = vadd.f32 %v2181_v43, %v2180_v45  ;;  %v3958_v43 = vld [vmem:[%s5205_s15 + $0x8] sm:$0xff]  }
0x2f4d   :  { %v2183_v49 = vpack.c.bf16 %v2182_v46, %v2182_v46 }
0x2f4f   :  { %2189 = vrot.lane.b32.xlu0 %v2183_v49, %s4293_s5 }
0x2fc1   :  { %v2190_v51 = vpop.permute.xlu0 %2189 }
0x2fc2   :  { %3776 = vmatmul.mubr.msk.bf16.vlgmr.msra.gmra.mrb[44].mxu0 %vm381_vm1, %v2190_v51 }
0x2fc3   :  { %3791 = vmatprep.mubr.msk.bf16.mxu0 %vm4290_vm0, %v4289_v14  ;;  %3788 = vmatpush3.bf16.msra.mxu0 %v3955_v12 }
0x2fc4   :  { %3789 = vmatprep.subr.bf16.mxu0 %v4289_v14 }
0x2fc7   :  { %3790 = vmatpush3.bf16.msra.mxu0 %v3956_v0 }
0x2fc8   :  { %3803 = vmatprep.subr.bf16.mxu0 %v4289_v14 }
0x3095   :  { %v2240_v54 = vpop.f32.mrb[44].mxu0 }
0x3096   :  { %v2241_v53 = vadd.f32 %v4968_v52, %v2240_v54  ;;  %v3777_v57 = vpop.f32.mrb[45].mxu0 }
0x3097   :  { %v2243_v55 = vpop.f32.mrb[46].mxu0 }
0x3098   :  { %2253 = vrot.lane.b32.xlu1 %v2241_v53, %s4294_s8  ;;  %v3778_v56 = vpop.f32.mrb[47].mxu0  ;;  %v3395_v60 = vmul.f32 -1.442695, %v2241_v53 }
0x309a   :  { %4095 = vpow2.f32 %v3395_v60 }
0x30a4   :  { %v4096_v62 = vpop.eup %4095 }
0x30a5   :  { %v2249_v1 = vadd.f32 1.0, %v4096_v62 }
0x30a7   :  { %4097 = vrcp.f32 %v2249_v1 }
0x30b1   :  { %v4098_v2 = vpop.eup %4097 }
0x30b2   :  { %v2263_v7 = vsub.f32 1.0, %v4098_v2  ;;  %v2269_v8 = vmul.f32 %v4098_v2, %v2182_v46 }
0x310a   :  { %v2254_v34 = vpop.permute.xlu1 %2253 }
0x310b   :  { %v2256_v3 = vmul.f32 %v4098_v2, %v2254_v34 }
0x310d   :  { %2258 = vrot.lane.b32.xlu0 %v2256_v3, %s4291_s27 }
0x317f   :  { %v2259_v59 = vpop.permute.xlu0 %2258 }
0x3180   :  { %v2261_v16 = vadd.f32 %v2259_v59, %v2241_v53 }
0x3182   :  { %4099 = vtanh.f32 %v2261_v16 }
0x318c   :  { %v4100_v5 = vpop.eup %4099 }
0x318d   :  { %2265 = vrot.lane.b32.xlu1 %v4100_v5, %s4293_s5 }
0x31ff   :  { %v2266_v17 = vpop.permute.xlu1 %2265 }
0x3200   :  { %v2268_v9 = vmul.f32 %v2266_v17, %v2263_v7  ;;  %v3959_v17 = vld [vmem:[%s5207_s17] sm:$0xff]  }
0x3202   :  { %v4982_v10 = vadd.f32 %v2269_v8, %v2268_v9  ;;  %v3960_v8 = vld [vmem:[%s5207_s17 + $0x8] sm:$0xff]  }
0x3204   :  { %v2276_v11 = vpack.c.bf16 %v4982_v10, %v4982_v10 }
0x3206   :  { %2282 = vrot.lane.b32.xlu0 %v2276_v11, %s4293_s5 }
0x3278   :  { %v2283_v44 = vpop.permute.xlu0 %2282 }
0x3279   :  { %3784 = vmatmul.mubr.msk.bf16.vlgmr.msra.gmra.mrb[56].mxu1 %vm381_vm1, %v2283_v44 }
0x327a   :  { %3796 = vmatpush3.bf16.msra.mxu1 %v3953_v50  ;;  %3799 = vmatprep.mubr.msk.bf16.mxu1 %vm4290_vm0, %v4289_v14 }
0x327b   :  { %3797 = vmatprep.subr.bf16.mxu1 %v4289_v14 }
0x327e   :  { %3798 = vmatpush3.bf16.msra.mxu1 %v3954_v37 }
0x327f   :  { %3811 = vmatprep.subr.bf16.mxu1 %v4289_v14 }
0x3281   :  { %3800 = vmatmul.mubr.msk.bf16.vlgmr.msra.gmra.mrb[60].mxu1 %vm381_vm1, %v2283_v44 }
0x3282   :  { %3815 = vmatprep.mubr.msk.bf16.mxu1 %vm4290_vm0, %v4289_v14  ;;  %3812 = vmatpush3.bf16.msra.mxu1 %v3959_v17 }
0x3283   :  { %3813 = vmatprep.subr.bf16.mxu1 %v4289_v14 }
0x3286   :  { %3814 = vmatpush3.bf16.msra.mxu1 %v3960_v8 }
0x3287   :  { %3827 = vmatprep.subr.bf16.mxu1 %v4289_v14 }
0x334c   :  { %v2333_v38 = vpop.f32.mrb[56].mxu1 }
0x334d   :  { %v2334_v13 = vadd.f32 %v4922_v47, %v2333_v38  ;;  %v3785_v61 = vpop.f32.mrb[57].mxu1  ;;  %v3961_v38 = vld [vmem:[%s5202_s12] sm:$0xff]  }
0x334e   :  { %v2336_v18 = vpop.f32.mrb[58].mxu1  ;;  %v3962_v61 = vld [vmem:[%s5202_s12 + $0x8] sm:$0xff]  }
0x334f   :  { %4101 = vtanh.f32 %v2334_v13  ;;  %v3786_v19 = vpop.f32.mrb[59].mxu1  ;;  %v3963_v18 = vld [vmem:[%s5201_s11] sm:$0xff]  }
0x3350   :  { %v3964_v19 = vld [vmem:[%s5201_s11 + $0x8] sm:$0xff]  }
0x3354   :  { %v2450_v20 = vpop.f32.mrb[60].mxu1 }
0x3355   :  { %v2463_v21 = vadd.f32 %v2450_v20, %v4947_v24  ;;  %v3801_v23 = vpop.f32.mrb[61].mxu1 }
0x3356   :  { %v2453_v15 = vpop.f32.mrb[62].mxu1 }
0x3357   :  { %2465 = vrot.lane.b32.xlu1 %v2463_v21, %s4291_s27  ;;  %v3802_v25 = vpop.f32.mrb[63].mxu1 }
0x3359   :  { %v4102_v6 = vpop.eup %4101 }
0x335a   :  { %v2340_v58 = vpack.c.bf16 %v4102_v6, %v4102_v6 }
0x335c   :  { %3792 = vmatmul.mubr.msk.bf16.vlgmr.msra.gmra.mrb[48].mxu0 %vm381_vm1, %v2340_v58 }
0x335d   :  { %3807 = vmatprep.mubr.msk.bf16.mxu0 %vm4290_vm0, %v4289_v14  ;;  %3804 = vmatpush3.bf16.msra.mxu0 %v3957_v41 }
0x335e   :  { %3805 = vmatprep.subr.bf16.mxu0 %v4289_v14 }
0x3361   :  { %3806 = vmatpush3.bf16.msra.mxu0 %v3958_v43 }
0x3362   :  { %3819 = vmatprep.subr.bf16.mxu0 %v4289_v14 }
0x33c9   :  { %v2466_v22 = vpop.permute.xlu1 %2465 }
0x342f   :  { %v2394_v26 = vpop.f32.mrb[48].mxu0 }
0x3430   :  { %v2395_v27 = vadd.f32 %v4951_v42, %v2394_v26  ;;  %v3793_v48 = vpop.f32.mrb[49].mxu0 }
0x3431   :  { %v2397_v28 = vpop.f32.mrb[50].mxu0 }
0x3432   :  { %v2456_v39 = vadd.f32 %v2450_v20, %v2395_v27  ;;  %v3794_v29 = vpop.f32.mrb[51].mxu0 }
0x3434   :  { %v3405_v63 = vmul.f32 -1.442695, %v2456_v39 }
0x3436   :  { %4103 = vpow2.f32 %v3405_v63 }
0x3440   :  { %v4104_v36 = vpop.eup %4103 }
0x3441   :  { %v2460_v30 = vadd.f32 1.0, %v4104_v36 }
0x3443   :  { %4105 = vrcp.f32 %v2460_v30 }
0x344d   :  { %v4106_v31 = vpop.eup %4105 }
0x344e   :  { %v2468_v32 = vmul.f32 %v4106_v31, %v2466_v22  ;;  %v2475_v46 = vsub.f32 1.0, %v4106_v31  ;;  %v2481_v51 = vmul.f32 %v4106_v31, %v4982_v10 }
0x3450   :  { %2470 = vrot.lane.b32.xlu0 %v2468_v32, %s4291_s27 }
0x34c2   :  { %v2471_v33 = vpop.permute.xlu0 %2470 }
0x34c3   :  { %v2473_v35 = vadd.f32 %v2471_v33, %v2395_v27 }
0x34c5   :  { %4107 = vtanh.f32 %v2473_v35 }
0x34cf   :  { %v4108_v45 = vpop.eup %4107 }
0x34d0   :  { %2477 = vrot.lane.b32.xlu1 %v4108_v45, %s4293_s5 }
0x3542   :  { %v2478_v49 = vpop.permute.xlu1 %2477 }
0x3543   :  { %v2480_v54 = vmul.f32 %v2478_v49, %v2475_v46 }
0x3545   :  { %v2482_v53 = vadd.f32 %v2481_v51, %v2480_v54  ;;  %v3965_v51 = vld [vmem:[%s5205_s15] sm:$0xff]   ;;  %v3966_v54 = vld [vmem:[%s5205_s15 + $0x8] sm:$0xff]  }
0x3547   :  { %v2483_v57 = vpack.c.bf16 %v2482_v53, %v2482_v53 }
0x3549   :  { %2489 = vrot.lane.b32.xlu0 %v2483_v57, %s4293_s5 }
0x35bb   :  { %v2490_v55 = vpop.permute.xlu0 %2489 }
0x35bc   :  { %3808 = vmatmul.mubr.msk.bf16.vlgmr.msra.gmra.mrb[52].mxu0 %vm381_vm1, %v2490_v55 }
0x35bd   :  { %3823 = vmatprep.mubr.msk.bf16.mxu0 %vm4290_vm0, %v4289_v14  ;;  %3820 = vmatpush3.bf16.msra.mxu0 %v3963_v18 }
0x35be   :  { %3821 = vmatprep.subr.bf16.mxu0 %v4289_v14 }
0x35c1   :  { %3822 = vmatpush3.bf16.msra.mxu0 %v3964_v19 }
0x35c2   :  { %3835 = vmatprep.subr.bf16.mxu0 %v4289_v14 }
0x368f   :  { %v2540_v56 = vpop.f32.mrb[52].mxu0 }
0x3690   :  { %v2541_v60 = vadd.f32 %v4968_v52, %v2540_v56  ;;  %v3809_v62 = vpop.f32.mrb[53].mxu0 }
0x3691   :  { %v2543_v1 = vpop.f32.mrb[54].mxu0 }
0x3692   :  { %2553 = vrot.lane.b32.xlu1 %v2541_v60, %s4294_s8  ;;  %v3810_v2 = vpop.f32.mrb[55].mxu0  ;;  %v3409_v34 = vmul.f32 -1.442695, %v2541_v60 }
0x3694   :  { %4109 = vpow2.f32 %v3409_v34 }
0x369e   :  { %v4110_v3 = vpop.eup %4109 }
0x369f   :  { %v2549_v59 = vadd.f32 1.0, %v4110_v3 }
0x36a1   :  { %4111 = vrcp.f32 %v2549_v59 }
0x36ab   :  { %v4112_v16 = vpop.eup %4111 }
0x36ac   :  { %v2563_v11 = vsub.f32 1.0, %v4112_v16  ;;  %v2569_v44 = vmul.f32 %v4112_v16, %v2482_v53 }
0x3704   :  { %v2554_v40 = vpop.permute.xlu1 %2553 }
0x3705   :  { %v2556_v4 = vmul.f32 %v4112_v16, %v2554_v40 }
0x3707   :  { %2558 = vrot.lane.b32.xlu0 %v2556_v4, %s4291_s27 }
0x3779   :  { %v2559_v5 = vpop.permute.xlu0 %2558 }
0x377a   :  { %v2561_v7 = vadd.f32 %v2559_v5, %v2541_v60 }
0x377c   :  { %4113 = vtanh.f32 %v2561_v7 }
0x3786   :  { %v4114_v9 = vpop.eup %4113 }
0x3787   :  { %2565 = vrot.lane.b32.xlu1 %v4114_v9, %s4293_s5 }
0x37f9   :  { %v2566_v50 = vpop.permute.xlu1 %2565 }
0x37fa   :  { %v2568_v37 = vmul.f32 %v2566_v50, %v2563_v11 }
0x37fc   :  { %v5043_v12 = vadd.f32 %v2569_v44, %v2568_v37  ;;  %v3967_v44 = vld [vmem:[%s5207_s17] sm:$0xff]   ;;  %v3968_v37 = vld [vmem:[%s5207_s17 + $0x8] sm:$0xff]  }
0x37fe   :  { %v2576_v0 = vpack.c.bf16 %v5043_v12, %v5043_v12 }
0x3800   :  { %2582 = vrot.lane.b32.xlu0 %v2576_v0, %s4293_s5 }
0x3872   :  { %v2583_v13 = vpop.permute.xlu0 %2582 }
0x3873   :  { %3816 = vmatmul.mubr.msk.bf16.vlgmr.msra.gmra.mrb[64].mxu1 %vm381_vm1, %v2583_v13 }
0x3874   :  { %3828 = vmatpush3.bf16.msra.mxu1 %v3961_v38  ;;  %3831 = vmatprep.mubr.msk.bf16.mxu1 %vm4290_vm0, %v4289_v14 }
0x3875   :  { %3829 = vmatprep.subr.bf16.mxu1 %v4289_v14 }
0x3878   :  { %3830 = vmatpush3.bf16.msra.mxu1 %v3962_v61 }
0x3879   :  { %3843 = vmatprep.subr.bf16.mxu1 %v4289_v14 }
0x387b   :  { %3832 = vmatmul.mubr.msk.bf16.vlgmr.msra.gmra.mrb[68].mxu1 %vm381_vm1, %v2583_v13 }
0x387c   :  { %3847 = vmatprep.mubr.msk.bf16.mxu1 %vm4290_vm0, %v4289_v14  ;;  %3844 = vmatpush3.bf16.msra.mxu1 %v3967_v44 }
0x387d   :  { %3845 = vmatprep.subr.bf16.mxu1 %v4289_v14 }
0x3880   :  { %3846 = vmatpush3.bf16.msra.mxu1 %v3968_v37  ;;  %v3180_v37 = vld [vmem:[%s5209_s19] sm:$0xff] }
0x3881   :  { %3859 = vmatprep.subr.bf16.mxu1 %v4289_v14 }
0x3946   :  { %v2633_v20 = vpop.f32.mrb[64].mxu1 }
0x3947   :  { %v2634_v21 = vadd.f32 %v4922_v47, %v2633_v20  ;;  %v3817_v23 = vpop.f32.mrb[65].mxu1 }
0x3948   :  { %v2636_v15 = vpop.f32.mrb[66].mxu1 }
0x3949   :  { %4115 = vtanh.f32 %v2634_v21  ;;  %v3818_v25 = vpop.f32.mrb[67].mxu1  ;;  %v3969_v21 = vld [vmem:[%s5202_s12] sm:$0xff]   ;;  %v3970_v15 = vld [vmem:[%s5202_s12 + $0x8] sm:$0xff]  }
0x394a   :  { %v3971_v25 = vld [vmem:[%s5201_s11] sm:$0xff]  }
0x394e   :  { %v2750_v6 = vpop.f32.mrb[68].mxu1 }
0x394f   :  { %v2763_v58 = vadd.f32 %v2750_v6, %v4947_v24  ;;  %v3833_v26 = vpop.f32.mrb[69].mxu1 }
0x3950   :  { %v2753_v27 = vpop.f32.mrb[70].mxu1 }
0x3951   :  { %2765 = vrot.lane.b32.xlu1 %v2763_v58, %s4291_s27  ;;  %v3834_v48 = vpop.f32.mrb[71].mxu1 }
0x3953   :  { %v4116_v28 = vpop.eup %4115 }
0x3954   :  { %v2640_v39 = vpack.c.bf16 %v4116_v28, %v4116_v28 }
0x3956   :  { %3824 = vmatmul.mubr.msk.bf16.vlgmr.msra.gmra.mrb[56].mxu0 %vm381_vm1, %v2640_v39 }
0x3957   :  { %3839 = vmatprep.mubr.msk.bf16.mxu0 %vm4290_vm0, %v4289_v14  ;;  %3836 = vmatpush3.bf16.msra.mxu0 %v3965_v51 }
0x3958   :  { %3837 = vmatprep.subr.bf16.mxu0 %v4289_v14 }
0x395b   :  { %3838 = vmatpush3.bf16.msra.mxu0 %v3966_v54 }
0x395c   :  { %3851 = vmatprep.subr.bf16.mxu0 %v4289_v14 }
0x39c3   :  { %v2766_v43 = vpop.permute.xlu1 %2765 }
0x3a29   :  { %v2694_v29 = vpop.f32.mrb[56].mxu0 }
0x3a2a   :  { %v2695_v63 = vadd.f32 %v4951_v42, %v2694_v29  ;;  %v3825_v36 = vpop.f32.mrb[57].mxu0 }
0x3a2b   :  { %v2697_v30 = vpop.f32.mrb[58].mxu0 }
0x3a2c   :  { %v2756_v31 = vadd.f32 %v2750_v6, %v2695_v63  ;;  %v3826_v22 = vpop.f32.mrb[59].mxu0  ;;  %v3972_v6 = vld [vmem:[%s5201_s11 + $0x8] sm:$0xff]  }
0x3a2e   :  { %v3419_v32 = vmul.f32 -1.442695, %v2756_v31 }
0x3a30   :  { %4117 = vpow2.f32 %v3419_v32 }
0x3a3a   :  { %v4118_v33 = vpop.eup %4117 }
0x3a3b   :  { %v2760_v35 = vadd.f32 1.0, %v4118_v33 }
0x3a3d   :  { %4119 = vrcp.f32 %v2760_v35 }
0x3a47   :  { %v4120_v41 = vpop.eup %4119 }
0x3a48   :  { %v2768_v45 = vmul.f32 %v4120_v41, %v2766_v43  ;;  %v2775_v57 = vsub.f32 1.0, %v4120_v41  ;;  %v2781_v56 = vmul.f32 %v4120_v41, %v5043_v12 }
0x3a4a   :  { %2770 = vrot.lane.b32.xlu0 %v2768_v45, %s4291_s27 }
0x3abc   :  { %v2771_v46 = vpop.permute.xlu0 %2770 }
0x3abd   :  { %v2773_v49 = vadd.f32 %v2771_v46, %v2695_v63 }
0x3abf   :  { %4121 = vtanh.f32 %v2773_v49 }
0x3ac9   :  { %v4122_v53 = vpop.eup %4121 }
0x3aca   :  { %2777 = vrot.lane.b32.xlu1 %v4122_v53, %s4293_s5 }
0x3b3c   :  { %v2778_v55 = vpop.permute.xlu1 %2777 }
0x3b3d   :  { %v2780_v60 = vmul.f32 %v2778_v55, %v2775_v57  ;;  %v3974_v55 = vld [vmem:[%s5205_s15 + $0x8] sm:$0xff]  }
0x3b3f   :  { %v2782_v62 = vadd.f32 %v2781_v56, %v2780_v60 }
0x3b41   :  { %v2783_v1 = vpack.c.bf16 %v2782_v62, %v2782_v62 }
0x3b43   :  { %2789 = vrot.lane.b32.xlu0 %v2783_v1, %s4293_s5 }
0x3bb5   :  { %v2790_v2 = vpop.permute.xlu0 %2789 }
0x3bb6   :  { %3840 = vmatmul.mubr.msk.bf16.vlgmr.msra.gmra.mrb[60].mxu0 %vm381_vm1, %v2790_v2 }
0x3bb7   :  { %3855 = vmatprep.mubr.msk.bf16.mxu0 %vm4290_vm0, %v4289_v14  ;;  %3852 = vmatpush3.bf16.msra.mxu0 %v3971_v25 }
0x3bb8   :  { %3853 = vmatprep.subr.bf16.mxu0 %v4289_v14 }
0x3bbb   :  { %3854 = vmatpush3.bf16.msra.mxu0 %v3972_v6 }
0x3bbc   :  { %3867 = vmatprep.subr.bf16.mxu0 %v4289_v14 }
0x3c89   :  { %v2840_v34 = vpop.f32.mrb[60].mxu0 }
0x3c8a   :  { %v2841_v3 = vadd.f32 %v4968_v52, %v2840_v34  ;;  %v3841_v59 = vpop.f32.mrb[61].mxu0 }
0x3c8b   :  { %v2843_v16 = vpop.f32.mrb[62].mxu0 }
0x3c8c   :  { %2853 = vrot.lane.b32.xlu1 %v2841_v3, %s4294_s8  ;;  %v3842_v40 = vpop.f32.mrb[63].mxu0  ;;  %v3423_v4 = vmul.f32 -1.442695, %v2841_v3 }
0x3c8e   :  { %4123 = vpow2.f32 %v3423_v4 }
0x3c98   :  { %v4124_v5 = vpop.eup %4123 }
0x3c99   :  { %v2849_v7 = vadd.f32 1.0, %v4124_v5 }
0x3c9b   :  { %4125 = vrcp.f32 %v2849_v7 }
0x3ca5   :  { %v4126_v17 = vpop.eup %4125 }
0x3ca6   :  { %v2863_v38 = vsub.f32 1.0, %v4126_v17  ;;  %v2869_v61 = vmul.f32 %v4126_v17, %v2782_v62 }
0x3cfe   :  { %v2854_v8 = vpop.permute.xlu1 %2853 }
0x3cff   :  { %v2856_v9 = vmul.f32 %v4126_v17, %v2854_v8 }
0x3d01   :  { %2858 = vrot.lane.b32.xlu0 %v2856_v9, %s4291_s27 }
0x3d73   :  { %v2859_v11 = vpop.permute.xlu0 %2858 }
0x3d74   :  { %v2861_v50 = vadd.f32 %v2859_v11, %v2841_v3 }
0x3d76   :  { %4127 = vtanh.f32 %v2861_v50 }
0x3d80   :  { %v4128_v0 = vpop.eup %4127 }
0x3d81   :  { %2865 = vrot.lane.b32.xlu1 %v4128_v0, %s4293_s5  ;;  %v3181_v0 = vld [vmem:[%s5209_s19 + $0x8] sm:$0xff] }
0x3df3   :  { %v2866_v13 = vpop.permute.xlu1 %2865 }
0x3df4   :  { %v2868_v18 = vmul.f32 %v2866_v13, %v2863_v38  ;;  %v3889_v38 = vpack.c.bf16 %v3181_v0, %v3180_v37 }
0x3df6   :  { %v5104_v19 = vadd.f32 %v2869_v61, %v2868_v18  ;;  %v3183_v61 = vld [vmem:[%s5209_s19 + $0x18] sm:$0xff] }
0x3df8   :  { %v2876_v20 = vpack.c.bf16 %v5104_v19, %v5104_v19 }
0x3dfa   :  { %2882 = vrot.lane.b32.xlu0 %v2876_v20, %s4293_s5 }
0x3e6c   :  { %v2883_v23 = vpop.permute.xlu0 %2882 }
0x3e6d   :  { %3848 = vmatmul.mubr.msk.bf16.vlgmr.msra.gmra.mrb[72].mxu1 %vm381_vm1, %v2883_v23 }
0x3e6e   :  { %3860 = vmatpush3.bf16.msra.mxu1 %v3969_v21  ;;  %3863 = vmatprep.mubr.msk.bf16.mxu1 %vm4290_vm0, %v4289_v14 }
0x3e6f   :  { %3861 = vmatprep.subr.bf16.mxu1 %v4289_v14 }
0x3e72   :  { %3862 = vmatpush3.bf16.msra.mxu1 %v3970_v15 }
0x3e73   :  { %3890 = vmatprep.subr.bf16.mxu1 %v3889_v38 }
0x3e75   :  { %3864 = vmatmul.mubr.msk.bf16.vlgmr.msra.gmra.mrb[76].mxu1 %vm381_vm1, %v2883_v23 }
0x3e76   :  { %3892 = vmatpush3.bf16.msra.mxu1 %v3889_v38 }
0x3f40   :  { %v2933_v58 = vpop.f32.mrb[72].mxu1 }
0x3f41   :  { %v2934_v26 = vadd.f32 %v4922_v47, %v2933_v58  ;;  %v3849_v27 = vpop.f32.mrb[73].mxu1 }
0x3f42   :  { %v2936_v48 = vpop.f32.mrb[74].mxu1 }
0x3f43   :  { %4129 = vtanh.f32 %v2934_v26  ;;  %v3850_v28 = vpop.f32.mrb[75].mxu1 }
0x3f48   :  { %v3050_v39 = vpop.f32.mrb[76].mxu1 }
0x3f49   :  { %v3063_v29 = vadd.f32 %v3050_v39, %v4947_v24  ;;  %v3865_v63 = vpop.f32.mrb[77].mxu1 }
0x3f4a   :  { %v3053_v36 = vpop.f32.mrb[78].mxu1 }
0x3f4b   :  { %3065 = vrot.lane.b32.xlu1 %v3063_v29, %s4291_s27  ;;  %v3866_v30 = vpop.f32.mrb[79].mxu1 }
0x3f4d   :  { %v4130_v31 = vpop.eup %4129 }
0x3f4e   :  { %v2940_v22 = vpack.c.bf16 %v4130_v31, %v4130_v31 }
0x3f50   :  { %3856 = vmatmul.mubr.msk.bf16.vlgmr.msra.gmra.mrb[64].mxu0 %vm381_vm1, %v2940_v22 }
0x3f51   :  { %3871 = vmatprep.mubr.msk.bf16.mxu0 %vm4290_vm0, %v4289_v14 }
0x3fbd   :  { %v3066_v51 = vpop.permute.xlu1 %3065 }
0x4023   :  { %v2994_v47 = vpop.f32.mrb[64].mxu0 }
0x4024   :  { %v2995_v32 = vadd.f32 %v4951_v42, %v2994_v47  ;;  %v3857_v33 = vpop.f32.mrb[65].mxu0  ;;  %v3973_v42 = vld [vmem:[%s5205_s15] sm:$0xff]  }
0x4025   :  { %v2997_v35 = vpop.f32.mrb[66].mxu0  ;;  %3868 = vmatpush3.bf16.msra.mxu0 %v3973_v42 }
0x4026   :  { %v3056_v41 = vadd.f32 %v3050_v39, %v2995_v32  ;;  %v3858_v43 = vpop.f32.mrb[67].mxu0  ;;  %3869 = vmatprep.subr.bf16.mxu0 %v4289_v14  ;;  %v3438_v39 = vld [vmem:[#allocation14] ss:$0 sm:$0xff] }
0x4028   :  { %v3433_v24 = vmul.f32 -1.442695, %v3056_v41 }
0x4029   :  { %3870 = vmatpush3.bf16.msra.mxu0 %v3974_v55 }
0x402a   :  { %4131 = vpow2.f32 %v3433_v24 }
0x4034   :  { %v4132_v45 = vpop.eup %4131 }
0x4035   :  { %v3060_v46 = vadd.f32 1.0, %v4132_v45 }
0x4037   :  { %4133 = vrcp.f32 %v3060_v46 }
0x4041   :  { %v4134_v49 = vpop.eup %4133 }
0x4042   :  { %v3068_v54 = vmul.f32 %v4134_v49, %v3066_v51  ;;  %v3075_v60 = vsub.f32 1.0, %v4134_v49  ;;  %v3081_v1 = vmul.f32 %v4134_v49, %v5104_v19 }
0x4044   :  { %3070 = vrot.lane.b32.xlu0 %v3068_v54, %s4291_s27 }
0x40b6   :  { %v3071_v53 = vpop.permute.xlu0 %3070 }
0x40b7   :  { %v3073_v57 = vadd.f32 %v3071_v53, %v2995_v32 }
0x40b9   :  { %4135 = vtanh.f32 %v3073_v57 }
0x40c3   :  { %v4136_v56 = vpop.eup %4135 }
0x40c4   :  { %3077 = vrot.lane.b32.xlu1 %v4136_v56, %s4293_s5 }
0x4136   :  { %v3078_v62 = vpop.permute.xlu1 %3077 }
0x4137   :  { %v3080_v2 = vmul.f32 %v3078_v62, %v3075_v60 }
0x4139   :  { %v3082_v34 = vadd.f32 %v3081_v1, %v3080_v2 }
0x413b   :  { %v3083_v3 = vpack.c.bf16 %v3082_v34, %v3082_v34 }
0x413d   :  { %3089 = vrot.lane.b32.xlu0 %v3083_v3, %s4293_s5 }
0x41af   :  { %v3090_v59 = vpop.permute.xlu0 %3089 }
0x41b0   :  { %3872 = vmatmul.mubr.msk.bf16.vlgmr.msra.gmra.mrb[68].mxu0 %vm381_vm1, %v3090_v59 }
0x4283   :  { %v3140_v16 = vpop.f32.mrb[68].mxu0 }
0x4284   :  { %v3141_v40 = vadd.f32 %v4968_v52, %v3140_v16  ;;  %v3873_v14 = vpop.f32.mrb[69].mxu0 }
0x4285   :  { %v3143_v4 = vpop.f32.mrb[70].mxu0 }
0x4286   :  { %3153 = vrot.lane.b32.xlu1 %v3141_v40, %s4294_s8  ;;  %v3874_v5 = vpop.f32.mrb[71].mxu0  ;;  %v3437_v7 = vmul.f32 -1.442695, %v3141_v40 }
0x4288   :  { %4137 = vpow2.f32 %v3437_v7 }
0x4292   :  { %v4138_v17 = vpop.eup %4137 }
0x4293   :  { %v3149_v8 = vadd.f32 1.0, %v4138_v17 }
0x4295   :  { %4139 = vrcp.f32 %v3149_v8 }
0x429f   :  { %v4140_v9 = vpop.eup %4139 }
0x42a0   :  { %v3163_v23 = vsub.f32 1.0, %v4140_v9  ;;  %v3169_v25 = vmul.f32 %v4140_v9, %v3082_v34 }
0x42f8   :  { %v3154_v11 = vpop.permute.xlu1 %3153 }
0x42f9   :  { %v3156_v50 = vmul.f32 %v4140_v9, %v3154_v11 }
0x42fb   :  { %3158 = vrot.lane.b32.xlu0 %v3156_v50, %s4291_s27 }
0x42ff   :  { %2272 = vrot.lane.b32.xlu0 %v4982_v10, %s4293_s5  ;;  %v3182_v10 = vld [vmem:[%s5209_s19 + $0x10] sm:$0xff] }
0x4300   :  { %v3893_v18 = vpack.c.bf16 %v3183_v61, %v3182_v10 }
0x4302   :  { %3894 = vmatprep.subr.bf16.mxu1 %v3893_v18 }
0x4303   :  { %2872 = vrot.lane.b32.xlu0 %v5104_v19, %s4293_s5  ;;  %3896 = vmatpush3.bf16.msra.mxu1 %v3893_v18 }
0x436d   :  { %v3159_v52 = vpop.permute.xlu0 %3158 }
0x436e   :  { %v3161_v44 = vadd.f32 %v3159_v52, %v3141_v40 }
0x4370   :  { %4141 = vtanh.f32 %v3161_v44 }
0x4371   :  { %v2273_v13 = vpop.permute.xlu0 %2272 }
0x4372   :  { %2275 = vst.msk [vmem:[#allocation5] sm:$0xff] %vm381_vm1, %v2273_v13 }
0x4375   :  { %v2873_v19 = vpop.permute.xlu0 %2872 }
0x4376   :  { %2875 = vst.msk [vmem:[#allocation5 + $0x10] sm:$0xff] %vm381_vm1, %v2873_v19 }
0x4379   :  { %v3176_v20 = vld [vmem:[#allocation5] sm:$0xff] }
0x437a   :  { %v4142_v21 = vpop.eup %4141  ;;  %3883 = vmatprep.mubr.msk.f32.mxu1 %vm381_vm1, %v3176_v20 }
0x437b   :  { %3165 = vrot.lane.b32.xlu1 %v4142_v21, %s4293_s5 }
0x437d   :  { %v3178_v48 = vld [vmem:[#allocation5 + $0x10] sm:$0xff] }
0x437f   :  { %2572 = vrot.lane.b32.xlu1 %v5043_v12, %s4293_s5 }
0x43ed   :  { %v3166_v15 = vpop.permute.xlu1 %3165 }
0x43ee   :  { %v3168_v6 = vmul.f32 %v3166_v15, %v3163_v23 }
0x43f0   :  { %v3170_v58 = vadd.f32 %v3169_v25, %v3168_v6 }
0x43f1   :  { %v2573_v26 = vpop.permute.xlu1 %2572 }
0x43f2   :  { %2575 = vst.msk [vmem:[#allocation5 + $0x8] sm:$0xff] %vm381_vm1, %v2573_v26  ;;  %3172 = vrot.lane.b32.xlu1 %v3170_v58, %s4293_s5 }
0x43f9   :  { %v3177_v27 = vld [vmem:[#allocation5 + $0x8] sm:$0xff] }
0x43fa   :  { %3884 = vmatmul.mubr.msk.f32.vlgmr.msra.gmra.mrb[80].mxu1 %vm381_vm1, %v3177_v27 }
0x43fb   :  { %3886 = vmatprep.mubr.msk.f32.mxu1 %vm381_vm1, %v3178_v48 }
0x4464   :  { %v3173_v28 = vpop.permute.xlu1 %3172 }
0x4465   :  { %3175 = vst.msk [vmem:[#allocation5 + $0x18] sm:$0xff] %vm381_vm1, %v3173_v28 }
0x446c   :  { %v3179_v12 = vld [vmem:[#allocation5 + $0x18] sm:$0xff] }
0x446d   :  { %3887 = vmatmul.mubr.msk.f32.gmra.mrb[82].mxu1 %vm381_vm1, %v3179_v12 }
0x44cd   :  { %v3885_v29 = vpop.f32.mrb[80].mxu1 }
0x44ce   :  { %v3275_v63 = vadd.f32 %v3885_v29, %v3438_v39  ;;  %v3269_v36 = vpop.f32.mrb[81].mxu1 }
0x44cf   :  { %v3270_v30 = vadd.f32 %v3438_v39, %v3269_v36 }
0x44d0   :  { %3289 = vst [vmem:[%s5211_s21 + $0x8] sm:$0xff] %v3275_v63 }
0x44d1   :  { %3288 = vst [vmem:[%s5211_s21] sm:$0xff] %v3270_v30 }
0x4540   :  { %v3888_v31 = vpop.f32.mrb[82].mxu1 }
0x4541   :  { %v3285_v22 = vadd.f32 %v3888_v31, %v3438_v39  ;;  %v3279_v47 = vpop.f32.mrb[83].mxu1 }
0x4542   :  { %v3280_v32 = vadd.f32 %v3438_v39, %v3279_v47 }
0x4543   :  { %3291 = vst [vmem:[%s5211_s21 + $0x18] sm:$0xff] %v3285_v22 }
0x4544   :  { %3290 = vst [vmem:[%s5211_s21 + $0x10] sm:$0xff] %v3280_v32 }
0x4545   :  { %3296 = vsyncpa [#allocation7], 1 }
0x4546   :  { %3297 = vsyncpa [#allocation9], 1 }
0x4547   :  { %3298 = vsyncpa [#allocation12], 1 }
0x4548   :  { %3299 = vsyncpa [#allocation15], 1 }

</bundles_post_ra>
